<compile_context>
chip_gen: v7x
topology: tpu7x:2x2x1
jax: 0.10.0
libtpu: 0.0.40
codegen_flags: <defaults>
</compile_context>

<pallas_src>
import functools

import jax
import jax.numpy as jnp
from jax.experimental import pallas as pl
from jax.experimental.pallas import tpu as pltpu

# ----------------------------- model config --------------------------------
IMG_DIM = 1          # image_dim
IMG_SIZE = 16        # image_size
N_DOWN = 2           # n_downsample
DIM = 8              # dim
N_RES = 0            # n_res  (ResBlocks skipped when 0, as in the module)
N_MLP = 2            # n_mlp  (MLP == 2 linear blocks)
MLP_DIM = 32         # mlp_dim
CONT = 4             # latent['continious']
CATG = 4             # latent['categorical']

BN_EPS = 1e-5
LRELU_SLOPE = 0.2

CONV_OUT_DIM = DIM * (2 ** (N_DOWN - 1))                  # 16
CONV_INP_SIZE = IMG_SIZE // (2 ** N_DOWN)                 # 4
ENC_FLAT = CONV_OUT_DIM * CONV_INP_SIZE * CONV_INP_SIZE   # 256
LATENT_OUT = 2 * CONT + CATG                              # 12
DEC_INP = CONT + CATG                                     # 8
DEC_FLAT = CONV_INP_SIZE * CONV_INP_SIZE * DIM            # 128

# spatial sizes (H*W) of each conv/deconv output
HW1 = (IMG_SIZE // 2) ** 2        # 64   encoder conv1 out  (8ch  x 8x8)
HW2 = CONV_INP_SIZE ** 2          # 16   encoder conv2 out  (16ch x 4x4)
HW3 = (2 * CONV_INP_SIZE) ** 2    # 64   decoder deconv1 out (4ch x 8x8)
HW4 = IMG_SIZE ** 2               # 256  decoder deconv2 out (1ch x 16x16)

# packed input / output slab layout
X_W = IMG_DIM * IMG_SIZE * IMG_SIZE          # 256  flattened image width
DATA_W = X_W + CONT + CATG                   # 264  [image | eps | unif]
REC_W = IMG_DIM * IMG_SIZE * IMG_SIZE        # 256
PACK_FULL = REC_W                            # 256
PACK_PROB = PACK_FULL + DEC_INP              # 264
PACK_MEAN = PACK_PROB + CATG                 # 268
PACK_LOGVAR = PACK_MEAN + CONT               # 272
OUT_USED = PACK_LOGVAR + CONT                # 276
OUT_W = 384                                  # lane-dense (3 * 128)
OUT_PAD = OUT_W - OUT_USED                   # 108


# ----------------- one-time (init) lowering of conv layers ------------------
def conv_dense_matrix(w, stride, padding, hin, win):
    """Dense operator of a PyTorch Conv2d over NCHW-flattened maps.

    w: (Cout, Cin, k, k).  Returns D of shape (Cin*hin*win, Cout*hout*wout)
    such that  y_flat = x_flat @ D   (bias excluded)."""
    cout, cin, k, _ = w.shape
    n_in = cin * hin * win
    basis = jnp.eye(n_in, dtype=jnp.float32).reshape(n_in, cin, hin, win)
    y = jax.lax.conv_general_dilated(
        basis, w, (stride, stride),
        [(padding, padding), (padding, padding)],
        dimension_numbers=("NCHW", "OIHW", "NCHW"))
    return y.reshape(n_in, -1)


def deconv_dense_matrix(w, stride, padding, hin, win):
    """Dense operator of a PyTorch ConvTranspose2d (stride s, padding p).

    w: (Cin, Cout, k, k).  Equivalent forward conv: dilate input by s,
    pad by (k-1-p), convolve with spatially-flipped channel-swapped weights."""
    cin, cout, k, _ = w.shape
    n_in = cin * hin * win
    w_conv = jnp.flip(w, axis=(2, 3)).transpose(1, 0, 2, 3)   # (Cout, Cin, k, k)
    basis = jnp.eye(n_in, dtype=jnp.float32).reshape(n_in, cin, hin, win)
    y = jax.lax.conv_general_dilated(
        basis, w_conv, (1, 1),
        [(k - 1 - padding, k - 1 - padding)] * 2,
        lhs_dilation=(stride, stride),
        dimension_numbers=("NCHW", "OIHW", "NCHW"))
    return y.reshape(n_in, -1)


def pool_matrix(c, hw):
    """0/1 matrix (c*hw, c): pools an NCHW-flat row into per-channel sums."""
    return jnp.repeat(jnp.eye(c, dtype=jnp.float32), hw, axis=0)


# ------------------------- parameter slab packing ----------------------------
def _pack_groups(group_entries):
    """group_entries: {gname: (width, [(pname, array), ...])}.

    Returns ({gname: packed (R, width) f32 array},
             {pname: (gname, row_offset, rows, cols)})  -- offsets 8-aligned."""
    groups, layout = {}, {}
    for gname, (width, entries) in group_entries.items():
        parts, off = [], 0
        for pname, a in entries:
            a = jnp.asarray(a, jnp.float32)
            if a.ndim == 1:
                a = a[None, :]
            r, c = a.shape
            rp = -(-r // 8) * 8                      # pad rows to sublane tile
            buf = jnp.zeros((rp, width), jnp.float32).at[:r, :c].set(a)
            parts.append(buf)
            layout[pname] = (gname, off, r, c)
            off += rp
        groups[gname] = jnp.concatenate(parts, axis=0)
    return groups, layout


def init_params(key):
    ks = jax.random.split(key, 16)
    ki = iter(ks)

    def nrm(shape, scale):
        return jax.random.normal(next(ki), shape, jnp.float32) * scale

    # ---- raw parameters (PyTorch layouts) ----
    w_c1 = nrm((DIM, IMG_DIM, 4, 4), (IMG_DIM * 16) ** -0.5)
    b_c1 = nrm((DIM,), 0.01)
    w_c2 = nrm((CONV_OUT_DIM, DIM, 4, 4), (DIM * 16) ** -0.5)
    b_c2 = nrm((CONV_OUT_DIM,), 0.01)
    w_efc1 = nrm((ENC_FLAT, MLP_DIM), ENC_FLAT ** -0.5)
    b_efc1 = nrm((MLP_DIM,), 0.01)
    w_efc2 = nrm((MLP_DIM, LATENT_OUT), MLP_DIM ** -0.5)
    b_efc2 = nrm((LATENT_OUT,), 0.01)
    w_dfc1 = nrm((DEC_INP, MLP_DIM), DEC_INP ** -0.5)
    b_dfc1 = nrm((MLP_DIM,), 0.01)
    w_dfc2 = nrm((MLP_DIM, DEC_FLAT), MLP_DIM ** -0.5)
    b_dfc2 = nrm((DEC_FLAT,), 0.01)
    w_dc1 = nrm((DIM, DIM // 2, 4, 4), (DIM * 16) ** -0.5)        # ConvT (Cin,Cout,k,k)
    b_dc1 = nrm((DIM // 2,), 0.01)
    w_dc2 = nrm((DIM // 2, IMG_DIM, 4, 4), ((DIM // 2) * 16) ** -0.5)
    b_dc2 = nrm((IMG_DIM,), 0.01)

    # ---- dense conv operators (forward never touches convs again) ----
    d_c1 = conv_dense_matrix(w_c1, 2, 1, IMG_SIZE, IMG_SIZE)               # (256, 512)
    d_c2 = conv_dense_matrix(w_c2, 2, 1, IMG_SIZE // 2, IMG_SIZE // 2)     # (512, 256)
    d_dc1 = deconv_dense_matrix(w_dc1, 2, 1, CONV_INP_SIZE, CONV_INP_SIZE)          # (128, 256)
    d_dc2 = deconv_dense_matrix(w_dc2, 2, 1, 2 * CONV_INP_SIZE, 2 * CONV_INP_SIZE)  # (256, 256)

    # ---- BN pooling matrices + channel-expanded bias/gamma/beta rows ----
    p_c1 = pool_matrix(DIM, HW1)              # (512, 8)
    p_c2 = pool_matrix(CONV_OUT_DIM, HW2)     # (256, 16)
    p_dc1 = pool_matrix(DIM // 2, HW3)        # (256, 4)

    entries = {
        "g512": (512, [
            ("e_c1_d", d_c1),
            ("e_c1_pt", p_c1.T),
            ("e_c1_b", jnp.repeat(b_c1, HW1)),
            ("e_c1_g", jnp.ones((DIM * HW1,), jnp.float32)),
            ("e_c1_beta", jnp.zeros((DIM * HW1,), jnp.float32)),
        ]),
        "g256": (256, [
            ("e_c2_d", d_c2),
            ("d_dc1_d", d_dc1),
            ("d_dc2_d", d_dc2),
            ("e_c2_pt", p_c2.T),
            ("d_dc1_pt", p_dc1.T),
            ("e_c2_b", jnp.repeat(b_c2, HW2)),
            ("e_c2_g", jnp.ones((CONV_OUT_DIM * HW2,), jnp.float32)),
            ("e_c2_beta", jnp.zeros((CONV_OUT_DIM * HW2,), jnp.float32)),
            ("d_dc1_b", jnp.repeat(b_dc1, HW3)),
            ("d_dc1_g", jnp.ones(((DIM // 2) * HW3,), jnp.float32)),
            ("d_dc1_beta", jnp.zeros(((DIM // 2) * HW3,), jnp.float32)),
            ("d_dc2_b", jnp.repeat(b_dc2, HW4)),
        ]),
        "g128": (128, [
            ("e_fc1_w", w_efc1), ("e_fc1_b", b_efc1),
            ("e_fc1_g", jnp.ones((MLP_DIM,), jnp.float32)),
            ("e_fc1_beta", jnp.zeros((MLP_DIM,), jnp.float32)),
            ("e_fc2_w", w_efc2), ("e_fc2_b", b_efc2),
            ("d_fc1_w", w_dfc1), ("d_fc1_b", b_dfc1),
            ("d_fc1_g", jnp.ones((MLP_DIM,), jnp.float32)),
            ("d_fc1_beta", jnp.zeros((MLP_DIM,), jnp.float32)),
            ("d_fc2_w", w_dfc2), ("d_fc2_b", b_dfc2),
            ("e_c1_p", p_c1), ("e_c2_p", p_c2), ("d_dc1_p", p_dc1),
        ]),
    }
    return _pack_groups(entries)


# ------------------------------ fused kernel ---------------------------------
def _catvae_kernel(layout, tempr_ref, data_ref, g512_ref, g256_ref, g128_ref,
                   out_ref):
    refs = {"g512": g512_ref, "g256": g256_ref, "g128": g128_ref}

    def par(name):
        gname, off, r, c = layout[name]
        return refs[gname][pl.ds(off, r), pl.ds(0, c)]

    def dot(a, b):
        return jnp.dot(a, b, preferred_element_type=jnp.float32)

    def lrelu(v):
        return jnp.where(v > 0, v, LRELU_SLOPE * v)

    def bn_fc(y, name):
        # BatchNorm1d, training mode: biased batch stats per feature.
        mu = jnp.mean(y, axis=0, keepdims=True)
        d = y - mu
        var = jnp.mean(d * d, axis=0, keepdims=True)
        return d * jax.lax.rsqrt(var + BN_EPS) * par(name + "_g") + par(name + "_beta")

    def bn_conv(y, name, hw):
        # BatchNorm2d on an NCHW-flat map (B, C*hw): per-channel stats over
        # (B, H, W), pooled / broadcast with 0-1 matmuls (MXU only, no reshapes).
        inv_cnt = 1.0 / (y.shape[0] * hw)
        p = par(name + "_p")      # (C*hw, C)
        pt = par(name + "_pt")    # (C, C*hw)
        mu = jnp.sum(dot(y, p), axis=0, keepdims=True) * inv_cnt        # (1, C)
        d = y - dot(mu, pt)
        var = jnp.sum(dot(d * d, p), axis=0, keepdims=True) * inv_cnt   # (1, C)
        scale = dot(jax.lax.rsqrt(var + BN_EPS), pt)                    # (1, C*hw)
        return d * scale * par(name + "_g") + par(name + "_beta")

    x = data_ref[:, pl.ds(0, X_W)]                  # (B, 256) NCHW-flat image
    eps = data_ref[:, pl.ds(X_W, CONT)]             # (B, 4)  N(0,1)
    unif = data_ref[:, pl.ds(X_W + CONT, CATG)]     # (B, 4)  U(0,1)

    # ------------------------------ encoder ---------------------------------
    h = dot(x, par("e_c1_d")) + par("e_c1_b")       # conv 1->8,  s2  (B, 512)
    h = lrelu(bn_conv(h, "e_c1", HW1))
    h = dot(h, par("e_c2_d")) + par("e_c2_b")       # conv 8->16, s2  (B, 256)
    h = lrelu(bn_conv(h, "e_c2", HW2))
    h = dot(h, par("e_fc1_w")) + par("e_fc1_b")     # fc 256->32
    h = lrelu(bn_fc(h, "e_fc1"))
    lat = dot(h, par("e_fc2_w")) + par("e_fc2_b")   # fc 32->12  (no norm/act)

    # --------------------------- latent heads -------------------------------
    # TODO(synk): Gaussian/Categorical/Gumbel prior classes were not provided;
    # standard semantics assumed (mean/logvar split, softmax, Gumbel-softmax).
    mean = lat[:, 0:CONT]
    logvar = lat[:, CONT:2 * CONT]
    logits = lat[:, 2 * CONT:2 * CONT + CATG]

    cont_s = mean + jnp.exp(0.5 * logvar) * eps     # reparameterization

    m = jnp.max(logits, axis=-1, keepdims=True)     # softmax probabilities
    e = jnp.exp(logits - m)
    prob = e / jnp.sum(e, axis=-1, keepdims=True)

    gum = -jnp.log(-jnp.log(unif + 1e-20) + 1e-20)  # Gumbel-softmax sample
    z = (logits + gum) / tempr_ref[0, 0]
    mz = jnp.max(z, axis=-1, keepdims=True)
    ez = jnp.exp(z - mz)
    catg_s = ez / jnp.sum(ez, axis=-1, keepdims=True)

    full = jnp.concatenate([cont_s, catg_s], axis=1)   # (B, 8)

    # ------------------------------ decoder ---------------------------------
    d = dot(full, par("d_fc1_w")) + par("d_fc1_b")     # fc 8->32
    d = lrelu(bn_fc(d, "d_fc1"))
    d = dot(d, par("d_fc2_w")) + par("d_fc2_b")        # fc 32->128 == (8,4,4)
    d = dot(d, par("d_dc1_d")) + par("d_dc1_b")        # deconv 8->4, s2 (B, 256)
    d = lrelu(bn_conv(d, "d_dc1", HW3))
    d = dot(d, par("d_dc2_d")) + par("d_dc2_b")        # deconv 4->1, s2 (B, 256)
    recons = jnp.tanh(d)

    # single lane-dense store: [recons | full | prob | mean | logvar | zero pad]
    pad = jnp.zeros((recons.shape[0], OUT_PAD), jnp.float32)
    out_ref[...] = jnp.concatenate([recons, full, prob, mean, logvar, pad],
                                   axis=1)


# ------------------------------- forward -------------------------------------
def catvae_forward(groups, layout, x, tempr, noise_key):
    B = x.shape[0]
    k_eps, k_unif = jax.random.split(noise_key)
    eps = jax.random.normal(k_eps, (B, CONT), jnp.float32)
    unif = jax.random.uniform(k_unif, (B, CATG), jnp.float32)
    data = jnp.concatenate([x.reshape(B, -1), eps, unif], axis=1)   # (B, 264)
    tempr_arr = jnp.full((1, 1), tempr, jnp.float32)

    out = pl.pallas_call(
        functools.partial(_catvae_kernel, layout),
        out_shape=jax.ShapeDtypeStruct((B, OUT_W), jnp.float32),
        in_specs=[
            pl.BlockSpec(memory_space=pltpu.MemorySpace.SMEM),   # temperature
            pl.BlockSpec(memory_space=pltpu.MemorySpace.VMEM),   # image + noise
            pl.BlockSpec(memory_space=pltpu.MemorySpace.VMEM),   # params, 512-wide
            pl.BlockSpec(memory_space=pltpu.MemorySpace.VMEM),   # params, 256-wide
            pl.BlockSpec(memory_space=pltpu.MemorySpace.VMEM),   # params, 128-wide
        ],
        out_specs=pl.BlockSpec(memory_space=pltpu.MemorySpace.VMEM),
    )(tempr_arr, data, groups["g512"], groups["g256"], groups["g128"])

    recons = out[:, :REC_W].reshape(B, IMG_DIM, IMG_SIZE, IMG_SIZE)
    full_samples = out[:, PACK_FULL:PACK_FULL + DEC_INP]
    categorical_distr_act = {"prob": out[:, PACK_PROB:PACK_PROB + CATG]}
    continious_distr_act = {"mean": out[:, PACK_MEAN:PACK_MEAN + CONT],
                            "logvar": out[:, PACK_LOGVAR:PACK_LOGVAR + CONT]}
    return recons, full_samples, categorical_distr_act, continious_distr_act


# --------------------------------- main ---------------------------------------
if __name__ == "__main__":
    key = jax.random.PRNGKey(0)
    pkey, xkey, nkey = jax.random.split(key, 3)

    groups, layout = init_params(pkey)
    x = jax.random.normal(xkey, (2, IMG_DIM, IMG_SIZE, IMG_SIZE), jnp.float32)

    forward = jax.jit(lambda g, xx, t, k: catvae_forward(g, layout, xx, t, k))
    out = forward(groups, x, 0.5, nkey)
    out = jax.block_until_ready(out)

    recons, full_samples, catg_act, cont_act = out
    assert recons.shape == (2, IMG_DIM, IMG_SIZE, IMG_SIZE)
    assert full_samples.shape == (2, CONT + CATG)
    assert catg_act["prob"].shape == (2, CATG)
    assert cont_act["mean"].shape == (2, CONT)
    assert cont_act["logvar"].shape == (2, CONT)
    for v in (recons, full_samples, catg_act["prob"],
              cont_act["mean"], cont_act["logvar"]):
        assert bool(jnp.all(jnp.isfinite(v)))
    assert bool(jnp.allclose(jnp.sum(catg_act["prob"], axis=-1), 1.0, atol=1e-4))
    print("KERNEL_OK")
</pallas_src>

<mosaic_0001>
module attributes {stable_mosaic.version = 11 : i64} {
  func.func @_catvae_kernel(%arg0: memref<1x1xf32, #tpu.memory_space<smem>>, %arg1: memref<2x264xf32, #tpu.memory_space<vmem>>, %arg2: memref<288x512xf32, #tpu.memory_space<vmem>>, %arg3: memref<976x256xf32, #tpu.memory_space<vmem>>, %arg4: memref<1416x128xf32, #tpu.memory_space<vmem>>, %arg5: memref<2x384xf32, #tpu.memory_space<vmem>>) attributes {dimension_semantics = [], scalar_prefetch = 0 : i64, scratch_operands = 0 : i64, tpu.core_type = #tpu.core_type<tc>} {
    %c0 = arith.constant 0 : index
    %c0_0 = arith.constant 0 : index
    %0 = vector.load %arg1[%c0, %c0_0] : memref<2x264xf32, #tpu.memory_space<vmem>>, vector<2x256xf32>
    %c0_1 = arith.constant 0 : index
    %c256 = arith.constant 256 : index
    %1 = vector.load %arg1[%c0_1, %c256] : memref<2x264xf32, #tpu.memory_space<vmem>>, vector<2x4xf32>
    %c0_2 = arith.constant 0 : index
    %c260 = arith.constant 260 : index
    %2 = vector.load %arg1[%c0_2, %c260] : memref<2x264xf32, #tpu.memory_space<vmem>>, vector<2x4xf32>
    %c0_3 = arith.constant 0 : index
    %c0_4 = arith.constant 0 : index
    %3 = vector.load %arg2[%c0_3, %c0_4] : memref<288x512xf32, #tpu.memory_space<vmem>>, vector<256x512xf32>
    %cst = arith.constant dense<0.000000e+00> : vector<2x512xf32>
    %4 = tpu.matmul %0, %3, %cst {dimension_numbers = #tpu.dot_dimension_numbers<[1], [0], [0], [1], [0, 0, 1, 1], [], []>} : vector<2x256xf32>, vector<256x512xf32>, vector<2x512xf32> -> vector<2x512xf32>
    %c264 = arith.constant 264 : index
    %c0_5 = arith.constant 0 : index
    %5 = vector.load %arg2[%c264, %c0_5] : memref<288x512xf32, #tpu.memory_space<vmem>>, vector<1x512xf32>
    %6 = vector.broadcast %5 : vector<1x512xf32> to vector<2x512xf32>
    %7 = arith.addf %4, %6 : vector<2x512xf32>
    %c392 = arith.constant 392 : index
    %c0_6 = arith.constant 0 : index
    %8 = vector.load %arg4[%c392, %c0_6] : memref<1416x128xf32, #tpu.memory_space<vmem>>, vector<512x8xf32>
    %c256_7 = arith.constant 256 : index
    %c0_8 = arith.constant 0 : index
    %9 = vector.load %arg2[%c256_7, %c0_8] : memref<288x512xf32, #tpu.memory_space<vmem>>, vector<8x512xf32>
    %cst_9 = arith.constant dense<0.000000e+00> : vector<2x8xf32>
    %10 = tpu.matmul %7, %8, %cst_9 {dimension_numbers = #tpu.dot_dimension_numbers<[1], [0], [0], [1], [0, 0, 1, 1], [], []>} : vector<2x512xf32>, vector<512x8xf32>, vector<2x8xf32> -> vector<2x8xf32>
    %cst_10 = arith.constant dense<0.000000e+00> : vector<8xf32>
    %11 = vector.multi_reduction <add>, %10, %cst_10 [0] : vector<2x8xf32> to vector<8xf32>
    %12 = vector.shape_cast %11 : vector<8xf32> to vector<1x8xf32>
    %cst_11 = arith.constant 7.812500e-03 : f32
    %13 = vector.broadcast %cst_11 : f32 to vector<1x8xf32>
    %14 = arith.mulf %12, %13 : vector<1x8xf32>
    %cst_12 = arith.constant dense<0.000000e+00> : vector<1x512xf32>
    %15 = tpu.matmul %14, %9, %cst_12 {dimension_numbers = #tpu.dot_dimension_numbers<[1], [0], [0], [1], [0, 0, 1, 1], [], []>} : vector<1x8xf32>, vector<8x512xf32>, vector<1x512xf32> -> vector<1x512xf32>
    %16 = vector.broadcast %15 : vector<1x512xf32> to vector<2x512xf32>
    %17 = arith.subf %7, %16 : vector<2x512xf32>
    %18 = arith.mulf %17, %17 : vector<2x512xf32>
    %cst_13 = arith.constant dense<0.000000e+00> : vector<2x8xf32>
    %19 = tpu.matmul %18, %8, %cst_13 {dimension_numbers = #tpu.dot_dimension_numbers<[1], [0], [0], [1], [0, 0, 1, 1], [], []>} : vector<2x512xf32>, vector<512x8xf32>, vector<2x8xf32> -> vector<2x8xf32>
    %cst_14 = arith.constant dense<0.000000e+00> : vector<8xf32>
    %20 = vector.multi_reduction <add>, %19, %cst_14 [0] : vector<2x8xf32> to vector<8xf32>
    %21 = vector.shape_cast %20 : vector<8xf32> to vector<1x8xf32>
    %cst_15 = arith.constant 7.812500e-03 : f32
    %22 = vector.broadcast %cst_15 : f32 to vector<1x8xf32>
    %23 = arith.mulf %21, %22 : vector<1x8xf32>
    %cst_16 = arith.constant 9.99999974E-6 : f32
    %24 = vector.broadcast %cst_16 : f32 to vector<1x8xf32>
    %25 = arith.addf %23, %24 : vector<1x8xf32>
    %26 = math.rsqrt %25 : vector<1x8xf32>
    %cst_17 = arith.constant dense<0.000000e+00> : vector<1x512xf32>
    %27 = tpu.matmul %26, %9, %cst_17 {dimension_numbers = #tpu.dot_dimension_numbers<[1], [0], [0], [1], [0, 0, 1, 1], [], []>} : vector<1x8xf32>, vector<8x512xf32>, vector<1x512xf32> -> vector<1x512xf32>
    %28 = vector.broadcast %27 : vector<1x512xf32> to vector<2x512xf32>
    %29 = arith.mulf %17, %28 : vector<2x512xf32>
    %c272 = arith.constant 272 : index
    %c0_18 = arith.constant 0 : index
    %30 = vector.load %arg2[%c272, %c0_18] : memref<288x512xf32, #tpu.memory_space<vmem>>, vector<1x512xf32>
    %31 = vector.broadcast %30 : vector<1x512xf32> to vector<2x512xf32>
    %32 = arith.mulf %29, %31 : vector<2x512xf32>
    %c280 = arith.constant 280 : index
    %c0_19 = arith.constant 0 : index
    %33 = vector.load %arg2[%c280, %c0_19] : memref<288x512xf32, #tpu.memory_space<vmem>>, vector<1x512xf32>
    %34 = vector.broadcast %33 : vector<1x512xf32> to vector<2x512xf32>
    %35 = arith.addf %32, %34 : vector<2x512xf32>
    %cst_20 = arith.constant 0.000000e+00 : f32
    %36 = vector.broadcast %cst_20 : f32 to vector<2x512xf32>
    %37 = arith.cmpf ogt, %35, %36 : vector<2x512xf32>
    %cst_21 = arith.constant 2.000000e-01 : f32
    %38 = vector.broadcast %cst_21 : f32 to vector<2x512xf32>
    %39 = arith.mulf %38, %35 : vector<2x512xf32>
    %40 = arith.select %37, %35, %39 : vector<2x512xi1>, vector<2x512xf32>
    %c0_22 = arith.constant 0 : index
    %c0_23 = arith.constant 0 : index
    %41 = vector.load %arg3[%c0_22, %c0_23] : memref<976x256xf32, #tpu.memory_space<vmem>>, vector<512x256xf32>
    %cst_24 = arith.constant dense<0.000000e+00> : vector<2x256xf32>
    %42 = tpu.matmul %40, %41, %cst_24 {dimension_numbers = #tpu.dot_dimension_numbers<[1], [0], [0], [1], [0, 0, 1, 1], [], []>} : vector<2x512xf32>, vector<512x256xf32>, vector<2x256xf32> -> vector<2x256xf32>
    %c920 = arith.constant 920 : index
    %c0_25 = arith.constant 0 : index
    %43 = vector.load %arg3[%c920, %c0_25] : memref<976x256xf32, #tpu.memory_space<vmem>>, vector<1x256xf32>
    %44 = vector.broadcast %43 : vector<1x256xf32> to vector<2x256xf32>
    %45 = arith.addf %42, %44 : vector<2x256xf32>
    %c904 = arith.constant 904 : index
    %c0_26 = arith.constant 0 : index
    %46 = vector.load %arg4[%c904, %c0_26] : memref<1416x128xf32, #tpu.memory_space<vmem>>, vector<256x16xf32>
    %c896 = arith.constant 896 : index
    %c0_27 = arith.constant 0 : index
    %47 = vector.load %arg3[%c896, %c0_27] : memref<976x256xf32, #tpu.memory_space<vmem>>, vector<16x256xf32>
    %cst_28 = arith.constant dense<0.000000e+00> : vector<2x16xf32>
    %48 = tpu.matmul %45, %46, %cst_28 {dimension_numbers = #tpu.dot_dimension_numbers<[1], [0], [0], [1], [0, 0, 1, 1], [], []>} : vector<2x256xf32>, vector<256x16xf32>, vector<2x16xf32> -> vector<2x16xf32>
    %cst_29 = arith.constant dense<0.000000e+00> : vector<16xf32>
    %49 = vector.multi_reduction <add>, %48, %cst_29 [0] : vector<2x16xf32> to vector<16xf32>
    %50 = vector.shape_cast %49 : vector<16xf32> to vector<1x16xf32>
    %cst_30 = arith.constant 3.125000e-02 : f32
    %51 = vector.broadcast %cst_30 : f32 to vector<1x16xf32>
    %52 = arith.mulf %50, %51 : vector<1x16xf32>
    %cst_31 = arith.constant dense<0.000000e+00> : vector<1x256xf32>
    %53 = tpu.matmul %52, %47, %cst_31 {dimension_numbers = #tpu.dot_dimension_numbers<[1], [0], [0], [1], [0, 0, 1, 1], [], []>} : vector<1x16xf32>, vector<16x256xf32>, vector<1x256xf32> -> vector<1x256xf32>
    %54 = vector.broadcast %53 : vector<1x256xf32> to vector<2x256xf32>
    %55 = arith.subf %45, %54 : vector<2x256xf32>
    %56 = arith.mulf %55, %55 : vector<2x256xf32>
    %cst_32 = arith.constant dense<0.000000e+00> : vector<2x16xf32>
    %57 = tpu.matmul %56, %46, %cst_32 {dimension_numbers = #tpu.dot_dimension_numbers<[1], [0], [0], [1], [0, 0, 1, 1], [], []>} : vector<2x256xf32>, vector<256x16xf32>, vector<2x16xf32> -> vector<2x16xf32>
    %cst_33 = arith.constant dense<0.000000e+00> : vector<16xf32>
    %58 = vector.multi_reduction <add>, %57, %cst_33 [0] : vector<2x16xf32> to vector<16xf32>
    %59 = vector.shape_cast %58 : vector<16xf32> to vector<1x16xf32>
    %cst_34 = arith.constant 3.125000e-02 : f32
    %60 = vector.broadcast %cst_34 : f32 to vector<1x16xf32>
    %61 = arith.mulf %59, %60 : vector<1x16xf32>
    %cst_35 = arith.constant 9.99999974E-6 : f32
    %62 = vector.broadcast %cst_35 : f32 to vector<1x16xf32>
    %63 = arith.addf %61, %62 : vector<1x16xf32>
    %64 = math.rsqrt %63 : vector<1x16xf32>
    %cst_36 = arith.constant dense<0.000000e+00> : vector<1x256xf32>
    %65 = tpu.matmul %64, %47, %cst_36 {dimension_numbers = #tpu.dot_dimension_numbers<[1], [0], [0], [1], [0, 0, 1, 1], [], []>} : vector<1x16xf32>, vector<16x256xf32>, vector<1x256xf32> -> vector<1x256xf32>
    %66 = vector.broadcast %65 : vector<1x256xf32> to vector<2x256xf32>
    %67 = arith.mulf %55, %66 : vector<2x256xf32>
    %c928 = arith.constant 928 : index
    %c0_37 = arith.constant 0 : index
    %68 = vector.load %arg3[%c928, %c0_37] : memref<976x256xf32, #tpu.memory_space<vmem>>, vector<1x256xf32>
    %69 = vector.broadcast %68 : vector<1x256xf32> to vector<2x256xf32>
    %70 = arith.mulf %67, %69 : vector<2x256xf32>
    %c936 = arith.constant 936 : index
    %c0_38 = arith.constant 0 : index
    %71 = vector.load %arg3[%c936, %c0_38] : memref<976x256xf32, #tpu.memory_space<vmem>>, vector<1x256xf32>
    %72 = vector.broadcast %71 : vector<1x256xf32> to vector<2x256xf32>
    %73 = arith.addf %70, %72 : vector<2x256xf32>
    %cst_39 = arith.constant 0.000000e+00 : f32
    %74 = vector.broadcast %cst_39 : f32 to vector<2x256xf32>
    %75 = arith.cmpf ogt, %73, %74 : vector<2x256xf32>
    %cst_40 = arith.constant 2.000000e-01 : f32
    %76 = vector.broadcast %cst_40 : f32 to vector<2x256xf32>
    %77 = arith.mulf %76, %73 : vector<2x256xf32>
    %78 = arith.select %75, %73, %77 : vector<2x256xi1>, vector<2x256xf32>
    %c0_41 = arith.constant 0 : index
    %c0_42 = arith.constant 0 : index
    %79 = vector.load %arg4[%c0_41, %c0_42] : memref<1416x128xf32, #tpu.memory_space<vmem>>, vector<256x32xf32>
    %cst_43 = arith.constant dense<0.000000e+00> : vector<2x32xf32>
    %80 = tpu.matmul %78, %79, %cst_43 {dimension_numbers = #tpu.dot_dimension_numbers<[1], [0], [0], [1], [0, 0, 1, 1], [], []>} : vector<2x256xf32>, vector<256x32xf32>, vector<2x32xf32> -> vector<2x32xf32>
    %c256_44 = arith.constant 256 : index
    %c0_45 = arith.constant 0 : index
    %81 = vector.load %arg4[%c256_44, %c0_45] : memref<1416x128xf32, #tpu.memory_space<vmem>>, vector<1x32xf32>
    %82 = vector.broadcast %81 : vector<1x32xf32> to vector<2x32xf32>
    %83 = arith.addf %80, %82 : vector<2x32xf32>
    %cst_46 = arith.constant dense<0.000000e+00> : vector<32xf32>
    %84 = vector.multi_reduction <add>, %83, %cst_46 [0] : vector<2x32xf32> to vector<32xf32>
    %85 = vector.shape_cast %84 : vector<32xf32> to vector<1x32xf32>
    %cst_47 = arith.constant 2.000000e+00 : f32
    %86 = vector.broadcast %cst_47 : f32 to vector<1x32xf32>
    %87 = arith.divf %85, %86 : vector<1x32xf32>
    %88 = vector.broadcast %87 : vector<1x32xf32> to vector<2x32xf32>
    %89 = arith.subf %83, %88 : vector<2x32xf32>
    %90 = arith.mulf %89, %89 : vector<2x32xf32>
    %cst_48 = arith.constant dense<0.000000e+00> : vector<32xf32>
    %91 = vector.multi_reduction <add>, %90, %cst_48 [0] : vector<2x32xf32> to vector<32xf32>
    %92 = vector.shape_cast %91 : vector<32xf32> to vector<1x32xf32>
    %cst_49 = arith.constant 2.000000e+00 : f32
    %93 = vector.broadcast %cst_49 : f32 to vector<1x32xf32>
    %94 = arith.divf %92, %93 : vector<1x32xf32>
    %cst_50 = arith.constant 9.99999974E-6 : f32
    %95 = vector.broadcast %cst_50 : f32 to vector<1x32xf32>
    %96 = arith.addf %94, %95 : vector<1x32xf32>
    %97 = math.rsqrt %96 : vector<1x32xf32>
    %98 = vector.broadcast %97 : vector<1x32xf32> to vector<2x32xf32>
    %99 = arith.mulf %89, %98 : vector<2x32xf32>
    %c264_51 = arith.constant 264 : index
    %c0_52 = arith.constant 0 : index
    %100 = vector.load %arg4[%c264_51, %c0_52] : memref<1416x128xf32, #tpu.memory_space<vmem>>, vector<1x32xf32>
    %101 = vector.broadcast %100 : vector<1x32xf32> to vector<2x32xf32>
    %102 = arith.mulf %99, %101 : vector<2x32xf32>
    %c272_53 = arith.constant 272 : index
    %c0_54 = arith.constant 0 : index
    %103 = vector.load %arg4[%c272_53, %c0_54] : memref<1416x128xf32, #tpu.memory_space<vmem>>, vector<1x32xf32>
    %104 = vector.broadcast %103 : vector<1x32xf32> to vector<2x32xf32>
    %105 = arith.addf %102, %104 : vector<2x32xf32>
    %cst_55 = arith.constant 0.000000e+00 : f32
    %106 = vector.broadcast %cst_55 : f32 to vector<2x32xf32>
    %107 = arith.cmpf ogt, %105, %106 : vector<2x32xf32>
    %cst_56 = arith.constant 2.000000e-01 : f32
    %108 = vector.broadcast %cst_56 : f32 to vector<2x32xf32>
    %109 = arith.mulf %108, %105 : vector<2x32xf32>
    %110 = arith.select %107, %105, %109 : vector<2x32xi1>, vector<2x32xf32>
    %c280_57 = arith.constant 280 : index
    %c0_58 = arith.constant 0 : index
    %111 = vector.load %arg4[%c280_57, %c0_58] : memref<1416x128xf32, #tpu.memory_space<vmem>>, vector<32x12xf32>
    %cst_59 = arith.constant dense<0.000000e+00> : vector<2x12xf32>
    %112 = tpu.matmul %110, %111, %cst_59 {dimension_numbers = #tpu.dot_dimension_numbers<[1], [0], [0], [1], [0, 0, 1, 1], [], []>} : vector<2x32xf32>, vector<32x12xf32>, vector<2x12xf32> -> vector<2x12xf32>
    %c312 = arith.constant 312 : index
    %c0_60 = arith.constant 0 : index
    %113 = vector.load %arg4[%c312, %c0_60] : memref<1416x128xf32, #tpu.memory_space<vmem>>, vector<1x12xf32>
    %114 = vector.broadcast %113 : vector<1x12xf32> to vector<2x12xf32>
    %115 = arith.addf %112, %114 : vector<2x12xf32>
    %116 = vector.extract_strided_slice %115 {offsets = [0, 0], sizes = [2, 4], strides = [1, 1]} : vector<2x12xf32> to vector<2x4xf32>
    %117 = vector.extract_strided_slice %115 {offsets = [0, 4], sizes = [2, 4], strides = [1, 1]} : vector<2x12xf32> to vector<2x4xf32>
    %118 = vector.extract_strided_slice %115 {offsets = [0, 8], sizes = [2, 4], strides = [1, 1]} : vector<2x12xf32> to vector<2x4xf32>
    %cst_61 = arith.constant 5.000000e-01 : f32
    %119 = vector.broadcast %cst_61 : f32 to vector<2x4xf32>
    %120 = arith.mulf %119, %117 : vector<2x4xf32>
    %121 = math.exp %120 : vector<2x4xf32>
    %122 = arith.mulf %121, %1 : vector<2x4xf32>
    %123 = arith.addf %116, %122 : vector<2x4xf32>
    %cst_62 = arith.constant dense<0xFF800000> : vector<2xf32>
    %124 = vector.multi_reduction <maximumf>, %118, %cst_62 [1] : vector<2x4xf32> to vector<2xf32>
    %125 = vector.shape_cast %124 : vector<2xf32> to vector<2x1xf32>
    %126 = vector.broadcast %125 : vector<2x1xf32> to vector<2x4xf32>
    %127 = arith.subf %118, %126 : vector<2x4xf32>
    %128 = math.exp %127 : vector<2x4xf32>
    %cst_63 = arith.constant dense<0.000000e+00> : vector<2xf32>
    %129 = vector.multi_reduction <add>, %128, %cst_63 [1] : vector<2x4xf32> to vector<2xf32>
    %130 = vector.shape_cast %129 : vector<2xf32> to vector<2x1xf32>
    %131 = vector.broadcast %130 : vector<2x1xf32> to vector<2x4xf32>
    %132 = arith.divf %128, %131 : vector<2x4xf32>
    %cst_64 = arith.constant 9.99999968E-21 : f32
    %133 = vector.broadcast %cst_64 : f32 to vector<2x4xf32>
    %134 = arith.addf %2, %133 : vector<2x4xf32>
    %135 = math.log %134 : vector<2x4xf32>
    %cst_65 = arith.constant 0.000000e+00 : f32
    %136 = vector.broadcast %cst_65 : f32 to vector<2x4xf32>
    %137 = arith.subf %136, %135 : vector<2x4xf32>
    %cst_66 = arith.constant 9.99999968E-21 : f32
    %138 = vector.broadcast %cst_66 : f32 to vector<2x4xf32>
    %139 = arith.addf %137, %138 : vector<2x4xf32>
    %140 = math.log %139 : vector<2x4xf32>
    %cst_67 = arith.constant 0.000000e+00 : f32
    %141 = vector.broadcast %cst_67 : f32 to vector<2x4xf32>
    %142 = arith.subf %141, %140 : vector<2x4xf32>
    %143 = arith.addf %118, %142 : vector<2x4xf32>
    %c0_68 = arith.constant 0 : index
    %c0_69 = arith.constant 0 : index
    %144 = memref.load %arg0[%c0_68, %c0_69] : memref<1x1xf32, #tpu.memory_space<smem>>
    %145 = vector.broadcast %144 : f32 to vector<2x4xf32>
    %146 = arith.divf %143, %145 : vector<2x4xf32>
    %cst_70 = arith.constant dense<0xFF800000> : vector<2xf32>
    %147 = vector.multi_reduction <maximumf>, %146, %cst_70 [1] : vector<2x4xf32> to vector<2xf32>
    %148 = vector.shape_cast %147 : vector<2xf32> to vector<2x1xf32>
    %149 = vector.broadcast %148 : vector<2x1xf32> to vector<2x4xf32>
    %150 = arith.subf %146, %149 : vector<2x4xf32>
    %151 = math.exp %150 : vector<2x4xf32>
    %cst_71 = arith.constant dense<0.000000e+00> : vector<2xf32>
    %152 = vector.multi_reduction <add>, %151, %cst_71 [1] : vector<2x4xf32> to vector<2xf32>
    %153 = vector.shape_cast %152 : vector<2xf32> to vector<2x1xf32>
    %154 = vector.broadcast %153 : vector<2x1xf32> to vector<2x4xf32>
    %155 = arith.divf %151, %154 : vector<2x4xf32>
    %156 = tpu.concatenate %123, %155 in 1 : vector<2x4xf32>, vector<2x4xf32> -> vector<2x8xf32>
    %c320 = arith.constant 320 : index
    %c0_72 = arith.constant 0 : index
    %157 = vector.load %arg4[%c320, %c0_72] : memref<1416x128xf32, #tpu.memory_space<vmem>>, vector<8x32xf32>
    %cst_73 = arith.constant dense<0.000000e+00> : vector<2x32xf32>
    %158 = tpu.matmul %156, %157, %cst_73 {dimension_numbers = #tpu.dot_dimension_numbers<[1], [0], [0], [1], [0, 0, 1, 1], [], []>} : vector<2x8xf32>, vector<8x32xf32>, vector<2x32xf32> -> vector<2x32xf32>
    %c328 = arith.constant 328 : index
    %c0_74 = arith.constant 0 : index
    %159 = vector.load %arg4[%c328, %c0_74] : memref<1416x128xf32, #tpu.memory_space<vmem>>, vector<1x32xf32>
    %160 = vector.broadcast %159 : vector<1x32xf32> to vector<2x32xf32>
    %161 = arith.addf %158, %160 : vector<2x32xf32>
    %cst_75 = arith.constant dense<0.000000e+00> : vector<32xf32>
    %162 = vector.multi_reduction <add>, %161, %cst_75 [0] : vector<2x32xf32> to vector<32xf32>
    %163 = vector.shape_cast %162 : vector<32xf32> to vector<1x32xf32>
    %cst_76 = arith.constant 2.000000e+00 : f32
    %164 = vector.broadcast %cst_76 : f32 to vector<1x32xf32>
    %165 = arith.divf %163, %164 : vector<1x32xf32>
    %166 = vector.broadcast %165 : vector<1x32xf32> to vector<2x32xf32>
    %167 = arith.subf %161, %166 : vector<2x32xf32>
    %168 = arith.mulf %167, %167 : vector<2x32xf32>
    %cst_77 = arith.constant dense<0.000000e+00> : vector<32xf32>
    %169 = vector.multi_reduction <add>, %168, %cst_77 [0] : vector<2x32xf32> to vector<32xf32>
    %170 = vector.shape_cast %169 : vector<32xf32> to vector<1x32xf32>
    %cst_78 = arith.constant 2.000000e+00 : f32
    %171 = vector.broadcast %cst_78 : f32 to vector<1x32xf32>
    %172 = arith.divf %170, %171 : vector<1x32xf32>
    %cst_79 = arith.constant 9.99999974E-6 : f32
    %173 = vector.broadcast %cst_79 : f32 to vector<1x32xf32>
    %174 = arith.addf %172, %173 : vector<1x32xf32>
    %175 = math.rsqrt %174 : vector<1x32xf32>
    %176 = vector.broadcast %175 : vector<1x32xf32> to vector<2x32xf32>
    %177 = arith.mulf %167, %176 : vector<2x32xf32>
    %c336 = arith.constant 336 : index
    %c0_80 = arith.constant 0 : index
    %178 = vector.load %arg4[%c336, %c0_80] : memref<1416x128xf32, #tpu.memory_space<vmem>>, vector<1x32xf32>
    %179 = vector.broadcast %178 : vector<1x32xf32> to vector<2x32xf32>
    %180 = arith.mulf %177, %179 : vector<2x32xf32>
    %c344 = arith.constant 344 : index
    %c0_81 = arith.constant 0 : index
    %181 = vector.load %arg4[%c344, %c0_81] : memref<1416x128xf32, #tpu.memory_space<vmem>>, vector<1x32xf32>
    %182 = vector.broadcast %181 : vector<1x32xf32> to vector<2x32xf32>
    %183 = arith.addf %180, %182 : vector<2x32xf32>
    %cst_82 = arith.constant 0.000000e+00 : f32
    %184 = vector.broadcast %cst_82 : f32 to vector<2x32xf32>
    %185 = arith.cmpf ogt, %183, %184 : vector<2x32xf32>
    %cst_83 = arith.constant 2.000000e-01 : f32
    %186 = vector.broadcast %cst_83 : f32 to vector<2x32xf32>
    %187 = arith.mulf %186, %183 : vector<2x32xf32>
    %188 = arith.select %185, %183, %187 : vector<2x32xi1>, vector<2x32xf32>
    %c352 = arith.constant 352 : index
    %c0_84 = arith.constant 0 : index
    %189 = vector.load %arg4[%c352, %c0_84] : memref<1416x128xf32, #tpu.memory_space<vmem>>, vector<32x128xf32>
    %cst_85 = arith.constant dense<0.000000e+00> : vector<2x128xf32>
    %190 = tpu.matmul %188, %189, %cst_85 {dimension_numbers = #tpu.dot_dimension_numbers<[1], [0], [0], [1], [0, 0, 1, 1], [], []>} : vector<2x32xf32>, vector<32x128xf32>, vector<2x128xf32> -> vector<2x128xf32>
    %c384 = arith.constant 384 : index
    %c0_86 = arith.constant 0 : index
    %191 = vector.load %arg4[%c384, %c0_86] : memref<1416x128xf32, #tpu.memory_space<vmem>>, vector<1x128xf32>
    %192 = vector.broadcast %191 : vector<1x128xf32> to vector<2x128xf32>
    %193 = arith.addf %190, %192 : vector<2x128xf32>
    %c512 = arith.constant 512 : index
    %c0_87 = arith.constant 0 : index
    %194 = vector.load %arg3[%c512, %c0_87] : memref<976x256xf32, #tpu.memory_space<vmem>>, vector<128x256xf32>
    %cst_88 = arith.constant dense<0.000000e+00> : vector<2x256xf32>
    %195 = tpu.matmul %193, %194, %cst_88 {dimension_numbers = #tpu.dot_dimension_numbers<[1], [0], [0], [1], [0, 0, 1, 1], [], []>} : vector<2x128xf32>, vector<128x256xf32>, vector<2x256xf32> -> vector<2x256xf32>
    %c944 = arith.constant 944 : index
    %c0_89 = arith.constant 0 : index
    %196 = vector.load %arg3[%c944, %c0_89] : memref<976x256xf32, #tpu.memory_space<vmem>>, vector<1x256xf32>
    %197 = vector.broadcast %196 : vector<1x256xf32> to vector<2x256xf32>
    %198 = arith.addf %195, %197 : vector<2x256xf32>
    %c1160 = arith.constant 1160 : index
    %c0_90 = arith.constant 0 : index
    %199 = vector.load %arg4[%c1160, %c0_90] : memref<1416x128xf32, #tpu.memory_space<vmem>>, vector<256x4xf32>
    %c912 = arith.constant 912 : index
    %c0_91 = arith.constant 0 : index
    %200 = vector.load %arg3[%c912, %c0_91] : memref<976x256xf32, #tpu.memory_space<vmem>>, vector<4x256xf32>
    %cst_92 = arith.constant dense<0.000000e+00> : vector<2x4xf32>
    %201 = tpu.matmul %198, %199, %cst_92 {dimension_numbers = #tpu.dot_dimension_numbers<[1], [0], [0], [1], [0, 0, 1, 1], [], []>} : vector<2x256xf32>, vector<256x4xf32>, vector<2x4xf32> -> vector<2x4xf32>
    %cst_93 = arith.constant dense<0.000000e+00> : vector<4xf32>
    %202 = vector.multi_reduction <add>, %201, %cst_93 [0] : vector<2x4xf32> to vector<4xf32>
    %203 = vector.shape_cast %202 : vector<4xf32> to vector<1x4xf32>
    %cst_94 = arith.constant 7.812500e-03 : f32
    %204 = vector.broadcast %cst_94 : f32 to vector<1x4xf32>
    %205 = arith.mulf %203, %204 : vector<1x4xf32>
    %cst_95 = arith.constant dense<0.000000e+00> : vector<1x256xf32>
    %206 = tpu.matmul %205, %200, %cst_95 {dimension_numbers = #tpu.dot_dimension_numbers<[1], [0], [0], [1], [0, 0, 1, 1], [], []>} : vector<1x4xf32>, vector<4x256xf32>, vector<1x256xf32> -> vector<1x256xf32>
    %207 = vector.broadcast %206 : vector<1x256xf32> to vector<2x256xf32>
    %208 = arith.subf %198, %207 : vector<2x256xf32>
    %209 = arith.mulf %208, %208 : vector<2x256xf32>
    %cst_96 = arith.constant dense<0.000000e+00> : vector<2x4xf32>
    %210 = tpu.matmul %209, %199, %cst_96 {dimension_numbers = #tpu.dot_dimension_numbers<[1], [0], [0], [1], [0, 0, 1, 1], [], []>} : vector<2x256xf32>, vector<256x4xf32>, vector<2x4xf32> -> vector<2x4xf32>
    %cst_97 = arith.constant dense<0.000000e+00> : vector<4xf32>
    %211 = vector.multi_reduction <add>, %210, %cst_97 [0] : vector<2x4xf32> to vector<4xf32>
    %212 = vector.shape_cast %211 : vector<4xf32> to vector<1x4xf32>
    %cst_98 = arith.constant 7.812500e-03 : f32
    %213 = vector.broadcast %cst_98 : f32 to vector<1x4xf32>
    %214 = arith.mulf %212, %213 : vector<1x4xf32>
    %cst_99 = arith.constant 9.99999974E-6 : f32
    %215 = vector.broadcast %cst_99 : f32 to vector<1x4xf32>
    %216 = arith.addf %214, %215 : vector<1x4xf32>
    %217 = math.rsqrt %216 : vector<1x4xf32>
    %cst_100 = arith.constant dense<0.000000e+00> : vector<1x256xf32>
    %218 = tpu.matmul %217, %200, %cst_100 {dimension_numbers = #tpu.dot_dimension_numbers<[1], [0], [0], [1], [0, 0, 1, 1], [], []>} : vector<1x4xf32>, vector<4x256xf32>, vector<1x256xf32> -> vector<1x256xf32>
    %219 = vector.broadcast %218 : vector<1x256xf32> to vector<2x256xf32>
    %220 = arith.mulf %208, %219 : vector<2x256xf32>
    %c952 = arith.constant 952 : index
    %c0_101 = arith.constant 0 : index
    %221 = vector.load %arg3[%c952, %c0_101] : memref<976x256xf32, #tpu.memory_space<vmem>>, vector<1x256xf32>
    %222 = vector.broadcast %221 : vector<1x256xf32> to vector<2x256xf32>
    %223 = arith.mulf %220, %222 : vector<2x256xf32>
    %c960 = arith.constant 960 : index
    %c0_102 = arith.constant 0 : index
    %224 = vector.load %arg3[%c960, %c0_102] : memref<976x256xf32, #tpu.memory_space<vmem>>, vector<1x256xf32>
    %225 = vector.broadcast %224 : vector<1x256xf32> to vector<2x256xf32>
    %226 = arith.addf %223, %225 : vector<2x256xf32>
    %cst_103 = arith.constant 0.000000e+00 : f32
    %227 = vector.broadcast %cst_103 : f32 to vector<2x256xf32>
    %228 = arith.cmpf ogt, %226, %227 : vector<2x256xf32>
    %cst_104 = arith.constant 2.000000e-01 : f32
    %229 = vector.broadcast %cst_104 : f32 to vector<2x256xf32>
    %230 = arith.mulf %229, %226 : vector<2x256xf32>
    %231 = arith.select %228, %226, %230 : vector<2x256xi1>, vector<2x256xf32>
    %c640 = arith.constant 640 : index
    %c0_105 = arith.constant 0 : index
    %232 = vector.load %arg3[%c640, %c0_105] : memref<976x256xf32, #tpu.memory_space<vmem>>, vector<256x256xf32>
    %cst_106 = arith.constant dense<0.000000e+00> : vector<2x256xf32>
    %233 = tpu.matmul %231, %232, %cst_106 {dimension_numbers = #tpu.dot_dimension_numbers<[1], [0], [0], [1], [0, 0, 1, 1], [], []>} : vector<2x256xf32>, vector<256x256xf32>, vector<2x256xf32> -> vector<2x256xf32>
    %c968 = arith.constant 968 : index
    %c0_107 = arith.constant 0 : index
    %234 = vector.load %arg3[%c968, %c0_107] : memref<976x256xf32, #tpu.memory_space<vmem>>, vector<1x256xf32>
    %235 = vector.broadcast %234 : vector<1x256xf32> to vector<2x256xf32>
    %236 = arith.addf %233, %235 : vector<2x256xf32>
    %237 = math.tanh %236 : vector<2x256xf32>
    %cst_108 = arith.constant 0.000000e+00 : f32
    %238 = vector.broadcast %cst_108 : f32 to vector<2x108xf32>
    %239 = tpu.concatenate %237, %156, %132, %116, %117, %238 in 1 : vector<2x256xf32>, vector<2x8xf32>, vector<2x4xf32>, vector<2x4xf32>, vector<2x4xf32>, vector<2x108xf32> -> vector<2x384xf32>
    %c0_109 = arith.constant 0 : index
    %c0_110 = arith.constant 0 : index
    %240 = vector.load %arg5[%c0_109, %c0_110] : memref<2x384xf32, #tpu.memory_space<vmem>>, vector<2x384xf32>
    tpu.vector_store %arg5[%c0_109, %c0_110], %239 {strides = array<i32>} : memref<2x384xf32, #tpu.memory_space<vmem>>, vector<2x384xf32>,
    return
  }
}

</mosaic_0001>

<bundles_post_ra>
// kernel: _lambda_.1
= control target key start
LH: loop header
LB: loop body
LE: loop exit
PB: predicated region body
PF: predicated region fallthrough
CT: control target
= control target key end

     0   :  { %11 = vsyncpa [#allocation4], 0  ;;  %s4700_s0 = inlined_call_operand.<no memory space> [shape: f32[1,1], index: 0, kind: input, shape index: {}]   ;;  %s4701_s1 = inlined_call_operand.vmem [shape: f32[2,264], index: 1, kind: input, shape index: {}]   ;;  %s4702_s2 = inlined_call_operand.hbm [shape: f32[288,512], index: 2, kind: input, shape index: {}]   ;;  %s4703_s3 = inlined_call_operand.hbm [shape: f32[976,256], index: 3, kind: input, shape index: {}]   ;;  %s4704_s4 = inlined_call_operand.hbm [shape: f32[1416,128], index: 4, kind: input, shape index: {}]   ;;  %s4705_s5 = inlined_call_operand.vmem [shape: f32[2,384], index: 5, kind: output, shape index: {}]  }
   0x1   :  { %12 = vsyncpa [#allocation6], 0  ;;  %s4195_s18 = smov [#allocation5]   ;;  %s4125_s22 = scalar_lea.hbm %s4703_s3, 31232 }
   0x2   :  { %s34_s19 = sshll.u32 %s4195_s18, 4  ;;  %p4126_p0 = scmp.ne.s32.totalorder %s4703_s3, %s4125_s22  ;;  %s35_s19 = int_to_ptr.vmem [resolvable:$true] %s34_s19 }
   0x3   :  { %p4129_p1 = scmp.lt.u32.totalorder %s4125_s22, %s4703_s3 }
   0x5   :  { %p4131_p2 = pnand %p4129_p1, %p4126_p0 }
   0x7   :  { %4134 = shalt.err (!%p4131_p2)
}
   0x8   :  { %s4135_s27 = scalar_lea.vmem %s35_s19, 31232  ;;  %p4140_p4 = scmp.lt.s32.totalorder %s35_s19, %s35_s19 }
   0x9   :  { %p4136_p3 = scmp.ne.s32.totalorder %s35_s19, %s4135_s27  ;;  %p4141_p5 = scmp.lt.s32.totalorder %s4135_s27, %s4135_s27 }
   0xb   :  { %p4142_p6 = por %p4141_p5, %p4140_p4 }
   0xd   :  { %p4143_p7 = pnand %p4142_p6, %p4136_p3 }
   0xf   :  { %4146 = shalt.err (!%p4143_p7)
}
  0x10   :  { %s4196_s28 = smov 256   ;;  %s4197_s29 = smov 16  }
  0x11   :  { %40 = dma.hbm_to_vmem [thread:$0]  %s4703_s3, 31232, %s35_s19, [#allocation6], %s4196_s28, %s4196_s28, %s4197_s29  }
  0x12   :  { %s4198_s7 = smov [#allocation3]   ;;  %s4147_s11 = scalar_lea.hbm %s4702_s2, 18432 }
  0x13   :  { %s22_s8 = sshll.u32 %s4198_s7, 4  ;;  %p4148_p8 = scmp.ne.s32.totalorder %s4702_s2, %s4147_s11  ;;  %s23_s8 = int_to_ptr.vmem [resolvable:$true] %s22_s8 }
  0x14   :  { %p4151_p9 = scmp.lt.u32.totalorder %s4147_s11, %s4702_s2 }
  0x16   :  { %p4153_p10 = pnand %p4151_p9, %p4148_p8 }
  0x18   :  { %4156 = shalt.err (!%p4153_p10)
}
  0x19   :  { %s4157_s16 = scalar_lea.vmem %s23_s8, 18432  ;;  %p4162_p12 = scmp.lt.s32.totalorder %s23_s8, %s23_s8 }
  0x1a   :  { %p4158_p11 = scmp.ne.s32.totalorder %s23_s8, %s4157_s16  ;;  %p4163_p13 = scmp.lt.s32.totalorder %s4157_s16, %s4157_s16 }
  0x1c   :  { %p4164_p0 = por %p4163_p13, %p4162_p12 }
  0x1e   :  { %p4165_p1 = pnand %p4164_p0, %p4158_p11 }
  0x20   :  { %4168 = shalt.err (!%p4165_p1)
}
  0x21   :  { %s4199_s3 = smov 512   ;;  %s4200_s17 = smov 32  }
  0x22   :  { %28 = dma.hbm_to_vmem [thread:$0]  %s4702_s2, 18432, %s23_s8, [#allocation4], %s4199_s3, %s4199_s3, %s4200_s17  }
  0x23   :  { %s4201_s20 = smov [#allocation7]   ;;  %s4169_s24 = scalar_lea.hbm %s4704_s4, 22656 }
  0x24   :  { %s46_s21 = sshll.u32 %s4201_s20, 4  ;;  %p4170_p2 = scmp.ne.s32.totalorder %s4704_s4, %s4169_s24  ;;  %s47_s21 = int_to_ptr.vmem [resolvable:$true] %s46_s21 }
  0x25   :  { %p4173_p3 = scmp.lt.u32.totalorder %s4169_s24, %s4704_s4 }
  0x27   :  { %p4175_p4 = pnand %p4173_p3, %p4170_p2 }
  0x29   :  { %4178 = shalt.err (!%p4175_p4)
}
  0x2a   :  { %s4179_s29 = scalar_lea.vmem %s47_s21, 22656  ;;  %p4184_p6 = scmp.lt.s32.totalorder %s47_s21, %s47_s21 }
  0x2b   :  { %p4180_p5 = scmp.ne.s32.totalorder %s47_s21, %s4179_s29  ;;  %p4185_p7 = scmp.lt.s32.totalorder %s4179_s29, %s4179_s29 }
  0x2d   :  { %p4186_p8 = por %p4185_p7, %p4184_p6 }
  0x2f   :  { %p4187_p9 = pnand %p4186_p8, %p4180_p5 }
  0x31   :  { %4190 = shalt.err (!%p4187_p9)
}
  0x32   :  { %s4202_s2 = smov 128   ;;  %s4203_s30 = smov 8  }
  0x33   :  { %52 = dma.hbm_to_vmem [thread:$0]  %s4704_s4, 22656, %s47_s21, [#allocation6], %s4202_s2, %s4202_s2, %s4203_s30  }
  0x34   :  { %4191 = dma.done.wait [#allocation4], 18432  }
  0x35   :  { %4192 = vsyncadd [#allocation4], 4294948864 }
  0x36   :  { %4193 = dma.done.wait [#allocation6], 53888  }
  0x37   :  { %4194 = vsyncadd [#allocation6], 4294913408  ;;  %v65_v0 = vld [vmem:[#allocation3 + $0x8] sm:$0xff]  ;;  %v67_v2 = vld [vmem:[#allocation3 + $0x18] sm:$0xff]  ;;  %vm576_vm0 = vcmask 58368   ;;  %vm585_vm1 = vcmask 64512  }
  0x38   :  { %v69_v1 = vld [vmem:[#allocation3 + $0x28] sm:$0xff]  ;;  %v71_v4 = vld [vmem:[#allocation3 + $0x38] sm:$0xff]  ;;  %v64_v5 = vld [vmem:[#allocation3] sm:$0xff]  ;;  %vm1525_vm6 = vcmask 123904   ;;  %vm1534_vm7 = vcmask 130048   ;;  %vm4206_vm10 = vmmov 0  }
  0x39   :  { %v3414_v3 = vpack.c.bf16 %v69_v1, %v65_v0  ;;  %v68_v6 = vld [vmem:[#allocation3 + $0x20] sm:$0xff]  ;;  %v3478_v7 = vpack.c.bf16 %v71_v4, %v67_v2  ;;  %v66_v9 = vld [vmem:[#allocation3 + $0x10] sm:$0xff]  ;;  %v73_v11 = vld [vmem:[#allocation3 + $0x48] sm:$0xff]  ;;  %vm1928_vm11 = vcmask 254976   ;;  %vm1975_vm13 = vcmask 261120   ;;  %s4210_s13 = smov 124  }
  0x3a   :  { %v3416_v8 = vpack.c.bf16 %v68_v6, %v64_v5  ;;  %v70_v10 = vld [vmem:[#allocation3 + $0x30] sm:$0xff]  ;;  %v77_v13 = vld [vmem:[#allocation3 + $0x68] sm:$0xff]  ;;  %v75_v14 = vld [vmem:[#allocation3 + $0x58] sm:$0xff]  ;;  %vm2069_vm14 = vcmask 91200   ;;  %vm2080_vm15 = vcmask 25600   ;;  %s4211_s14 = smov 12  }
  0x3b   :  { %3415 = vmatprep.subr.bf16.mxu0 %v3414_v3  ;;  %v3480_v12 = vpack.c.bf16 %v70_v10, %v66_v9  ;;  %v79_v15 = vld [vmem:[#allocation3 + $0x78] sm:$0xff]  ;;  %3479 = vmatprep.subr.bf16.mxu1 %v3478_v7  ;;  %v3418_v16 = vpack.c.bf16 %v77_v13, %v73_v11  ;;  %v72_v18 = vld [vmem:[#allocation3 + $0x40] sm:$0xff]  ;;  %v74_v20 = vld [vmem:[#allocation3 + $0x50] sm:$0xff] }
  0x3c   :  { %3417 = vmatpush1.bf16.msra.mxu0 %v3416_v8  ;;  %v3482_v17 = vpack.c.bf16 %v79_v15, %v75_v14  ;;  %v76_v19 = vld [vmem:[#allocation3 + $0x60] sm:$0xff]  ;;  %v78_v22 = vld [vmem:[#allocation3 + $0x70] sm:$0xff]  ;;  %v81_v23 = vld [vmem:[#allocation3 + $0x88] sm:$0xff] }
  0x3d   :  { %3481 = vmatpush1.bf16.msra.mxu1 %v3480_v12  ;;  %v3420_v21 = vpack.c.bf16 %v76_v19, %v72_v18  ;;  %v85_v24 = vld [vmem:[#allocation3 + $0xa8] sm:$0xff]  ;;  %3419 = vmatprep.subr.bf16.mxu0 %v3418_v16  ;;  %v3484_v25 = vpack.c.bf16 %v78_v22, %v74_v20  ;;  %v83_v27 = vld [vmem:[#allocation3 + $0x98] sm:$0xff]  ;;  %v80_v29 = vld [vmem:[#allocation3 + $0x80] sm:$0xff] }
  0x3e   :  { %3483 = vmatprep.subr.bf16.mxu1 %v3482_v17  ;;  %v3422_v26 = vpack.c.bf16 %v85_v24, %v81_v23  ;;  %v87_v28 = vld [vmem:[#allocation3 + $0xb8] sm:$0xff]  ;;  %v84_v31 = vld [vmem:[#allocation3 + $0xa0] sm:$0xff]  ;;  %v82_v32 = vld [vmem:[#allocation3 + $0x90] sm:$0xff] }
  0x3f   :  { %v3486_v30 = vpack.c.bf16 %v87_v28, %v83_v27  ;;  %v86_v33 = vld [vmem:[#allocation3 + $0xb0] sm:$0xff]  ;;  %v3424_v34 = vpack.c.bf16 %v84_v31, %v80_v29  ;;  %v89_v35 = vld [vmem:[#allocation3 + $0xc8] sm:$0xff]  ;;  %v91_v37 = vld [vmem:[#allocation3 + $0xd8] sm:$0xff] }
  0x40   :  { %3421 = vmatpush1.bf16.msra.mxu0 %v3420_v21  ;;  %v93_v36 = vld [vmem:[#allocation3 + $0xe8] sm:$0xff]  ;;  %v3488_v38 = vpack.c.bf16 %v86_v33, %v82_v32  ;;  %v95_v40 = vld [vmem:[#allocation3 + $0xf8] sm:$0xff]  ;;  %v88_v41 = vld [vmem:[#allocation3 + $0xc0] sm:$0xff] }
  0x41   :  { %3485 = vmatpush1.bf16.msra.mxu1 %v3484_v25  ;;  %3423 = vmatprep.subr.bf16.mxu0 %v3422_v26  ;;  %v3426_v39 = vpack.c.bf16 %v93_v36, %v89_v35  ;;  %v92_v42 = vld [vmem:[#allocation3 + $0xe0] sm:$0xff]  ;;  %v3490_v43 = vpack.c.bf16 %v95_v40, %v91_v37  ;;  %v90_v44 = vld [vmem:[#allocation3 + $0xd0] sm:$0xff]  ;;  %v97_v46 = vld [vmem:[#allocation3 + $0x108] sm:$0xff] }
  0x42   :  { %3487 = vmatprep.subr.bf16.mxu1 %v3486_v30  ;;  %v94_v45 = vld [vmem:[#allocation3 + $0xf0] sm:$0xff]  ;;  %v101_v47 = vld [vmem:[#allocation3 + $0x128] sm:$0xff]  ;;  %v99_v48 = vld [vmem:[#allocation3 + $0x118] sm:$0xff]  ;;  %v3428_v50 = vpack.c.bf16 %v92_v42, %v88_v41 }
  0x43   :  { %v103_v49 = vld [vmem:[#allocation3 + $0x138] sm:$0xff]  ;;  %v3492_v51 = vpack.c.bf16 %v94_v45, %v90_v44  ;;  %v3430_v52 = vpack.c.bf16 %v101_v47, %v97_v46  ;;  %v96_v53 = vld [vmem:[#allocation3 + $0x100] sm:$0xff]  ;;  %v98_v55 = vld [vmem:[#allocation3 + $0x110] sm:$0xff] }
  0x44   :  { %3425 = vmatpush1.bf16.msra.mxu0 %v3424_v34  ;;  %v100_v54 = vld [vmem:[#allocation3 + $0x120] sm:$0xff]  ;;  %v3494_v56 = vpack.c.bf16 %v103_v49, %v99_v48  ;;  %v102_v57 = vld [vmem:[#allocation3 + $0x130] sm:$0xff]  ;;  %v105_v58 = vld [vmem:[#allocation3 + $0x148] sm:$0xff] }
  0x45   :  { %3489 = vmatpush1.bf16.msra.mxu1 %v3488_v38  ;;  %3427 = vmatprep.subr.bf16.mxu0 %v3426_v39  ;;  %v109_v59 = vld [vmem:[#allocation3 + $0x168] sm:$0xff]  ;;  %v107_v60 = vld [vmem:[#allocation3 + $0x158] sm:$0xff]  ;;  %v3432_v62 = vpack.c.bf16 %v100_v54, %v96_v53  ;;  %v3496_v63 = vpack.c.bf16 %v102_v57, %v98_v55  ;;  %v104_v1 = vld [vmem:[#allocation3 + $0x140] sm:$0xff] }
  0x46   :  { %3491 = vmatprep.subr.bf16.mxu1 %v3490_v43  ;;  %v111_v61 = vld [vmem:[#allocation3 + $0x178] sm:$0xff]  ;;  %v3434_v0 = vpack.c.bf16 %v109_v59, %v105_v58  ;;  %v108_v2 = vld [vmem:[#allocation3 + $0x160] sm:$0xff]  ;;  %v106_v3 = vld [vmem:[#allocation3 + $0x150] sm:$0xff] }
  0x47   :  { %v3498_v4 = vpack.c.bf16 %v111_v61, %v107_v60  ;;  %v110_v5 = vld [vmem:[#allocation3 + $0x170] sm:$0xff]  ;;  %v113_v6 = vld [vmem:[#allocation3 + $0x188] sm:$0xff]  ;;  %v115_v8 = vld [vmem:[#allocation3 + $0x198] sm:$0xff]  ;;  %v3436_v10 = vpack.c.bf16 %v108_v2, %v104_v1 }
  0x48   :  { %3429 = vmatpush1.bf16.msra.mxu0 %v3428_v50  ;;  %v117_v7 = vld [vmem:[#allocation3 + $0x1a8] sm:$0xff]  ;;  %v119_v9 = vld [vmem:[#allocation3 + $0x1b8] sm:$0xff]  ;;  %v3500_v11 = vpack.c.bf16 %v110_v5, %v106_v3  ;;  %v112_v13 = vld [vmem:[#allocation3 + $0x180] sm:$0xff] }
  0x49   :  { %3493 = vmatpush1.bf16.msra.mxu1 %v3492_v51  ;;  %3431 = vmatprep.subr.bf16.mxu0 %v3430_v52  ;;  %v3438_v12 = vpack.c.bf16 %v117_v7, %v113_v6  ;;  %v116_v14 = vld [vmem:[#allocation3 + $0x1a0] sm:$0xff]  ;;  %v114_v15 = vld [vmem:[#allocation3 + $0x190] sm:$0xff]  ;;  %v3502_v16 = vpack.c.bf16 %v119_v9, %v115_v8  ;;  %v121_v18 = vld [vmem:[#allocation3 + $0x1c8] sm:$0xff] }
  0x4a   :  { %3495 = vmatprep.subr.bf16.mxu1 %v3494_v56  ;;  %v118_v17 = vld [vmem:[#allocation3 + $0x1b0] sm:$0xff]  ;;  %v125_v19 = vld [vmem:[#allocation3 + $0x1e8] sm:$0xff]  ;;  %v123_v20 = vld [vmem:[#allocation3 + $0x1d8] sm:$0xff]  ;;  %v3440_v22 = vpack.c.bf16 %v116_v14, %v112_v13 }
  0x4b   :  { %v127_v21 = vld [vmem:[#allocation3 + $0x1f8] sm:$0xff]  ;;  %v3504_v23 = vpack.c.bf16 %v118_v17, %v114_v15  ;;  %v3442_v24 = vpack.c.bf16 %v125_v19, %v121_v18  ;;  %v120_v25 = vld [vmem:[#allocation3 + $0x1c0] sm:$0xff]  ;;  %v122_v27 = vld [vmem:[#allocation3 + $0x1d0] sm:$0xff] }
  0x4c   :  { %3433 = vmatpush1.bf16.msra.mxu0 %v3432_v62  ;;  %v124_v26 = vld [vmem:[#allocation3 + $0x1e0] sm:$0xff]  ;;  %v3506_v28 = vpack.c.bf16 %v127_v21, %v123_v20  ;;  %v126_v29 = vld [vmem:[#allocation3 + $0x1f0] sm:$0xff]  ;;  %v129_v30 = vld [vmem:[#allocation3 + $0x208] sm:$0xff] }
  0x4d   :  { %3497 = vmatpush1.bf16.msra.mxu1 %v3496_v63  ;;  %3435 = vmatprep.subr.bf16.mxu0 %v3434_v0  ;;  %v133_v31 = vld [vmem:[#allocation3 + $0x228] sm:$0xff]  ;;  %v131_v32 = vld [vmem:[#allocation3 + $0x218] sm:$0xff]  ;;  %v3444_v34 = vpack.c.bf16 %v124_v26, %v120_v25  ;;  %v3508_v35 = vpack.c.bf16 %v126_v29, %v122_v27  ;;  %v128_v37 = vld [vmem:[#allocation3 + $0x200] sm:$0xff] }
  0x4e   :  { %3499 = vmatprep.subr.bf16.mxu1 %v3498_v4  ;;  %v135_v33 = vld [vmem:[#allocation3 + $0x238] sm:$0xff]  ;;  %v3446_v36 = vpack.c.bf16 %v133_v31, %v129_v30  ;;  %v132_v38 = vld [vmem:[#allocation3 + $0x220] sm:$0xff]  ;;  %v130_v39 = vld [vmem:[#allocation3 + $0x210] sm:$0xff] }
  0x4f   :  { %v3510_v40 = vpack.c.bf16 %v135_v33, %v131_v32  ;;  %v134_v41 = vld [vmem:[#allocation3 + $0x230] sm:$0xff]  ;;  %v137_v42 = vld [vmem:[#allocation3 + $0x248] sm:$0xff]  ;;  %v139_v44 = vld [vmem:[#allocation3 + $0x258] sm:$0xff]  ;;  %v3448_v46 = vpack.c.bf16 %v132_v38, %v128_v37 }
  0x50   :  { %3437 = vmatpush1.bf16.msra.mxu0 %v3436_v10  ;;  %v141_v43 = vld [vmem:[#allocation3 + $0x268] sm:$0xff]  ;;  %v143_v45 = vld [vmem:[#allocation3 + $0x278] sm:$0xff]  ;;  %v3512_v47 = vpack.c.bf16 %v134_v41, %v130_v39  ;;  %v136_v49 = vld [vmem:[#allocation3 + $0x240] sm:$0xff] }
  0x51   :  { %3501 = vmatpush1.bf16.msra.mxu1 %v3500_v11  ;;  %3439 = vmatprep.subr.bf16.mxu0 %v3438_v12  ;;  %v3450_v48 = vpack.c.bf16 %v141_v43, %v137_v42  ;;  %v140_v50 = vld [vmem:[#allocation3 + $0x260] sm:$0xff]  ;;  %v138_v51 = vld [vmem:[#allocation3 + $0x250] sm:$0xff]  ;;  %v3514_v52 = vpack.c.bf16 %v143_v45, %v139_v44  ;;  %v145_v54 = vld [vmem:[#allocation3 + $0x288] sm:$0xff] }
  0x52   :  { %3503 = vmatprep.subr.bf16.mxu1 %v3502_v16  ;;  %v142_v53 = vld [vmem:[#allocation3 + $0x270] sm:$0xff]  ;;  %v149_v55 = vld [vmem:[#allocation3 + $0x2a8] sm:$0xff]  ;;  %v147_v56 = vld [vmem:[#allocation3 + $0x298] sm:$0xff]  ;;  %v3452_v58 = vpack.c.bf16 %v140_v50, %v136_v49 }
  0x53   :  { %v151_v57 = vld [vmem:[#allocation3 + $0x2b8] sm:$0xff]  ;;  %v3516_v59 = vpack.c.bf16 %v142_v53, %v138_v51  ;;  %v3454_v60 = vpack.c.bf16 %v149_v55, %v145_v54  ;;  %v144_v61 = vld [vmem:[#allocation3 + $0x280] sm:$0xff]  ;;  %v146_v63 = vld [vmem:[#allocation3 + $0x290] sm:$0xff] }
  0x54   :  { %3441 = vmatpush1.bf16.msra.mxu0 %v3440_v22  ;;  %v148_v62 = vld [vmem:[#allocation3 + $0x2a0] sm:$0xff]  ;;  %v3518_v0 = vpack.c.bf16 %v151_v57, %v147_v56  ;;  %v150_v1 = vld [vmem:[#allocation3 + $0x2b0] sm:$0xff]  ;;  %v153_v2 = vld [vmem:[#allocation3 + $0x2c8] sm:$0xff] }
  0x55   :  { %3505 = vmatpush1.bf16.msra.mxu1 %v3504_v23  ;;  %3443 = vmatprep.subr.bf16.mxu0 %v3442_v24  ;;  %v157_v3 = vld [vmem:[#allocation3 + $0x2e8] sm:$0xff]  ;;  %v155_v4 = vld [vmem:[#allocation3 + $0x2d8] sm:$0xff]  ;;  %v3456_v6 = vpack.c.bf16 %v148_v62, %v144_v61  ;;  %v152_v7 = vld [vmem:[#allocation3 + $0x2c0] sm:$0xff]  ;;  %v3520_v8 = vpack.c.bf16 %v150_v1, %v146_v63 }
  0x56   :  { %3507 = vmatprep.subr.bf16.mxu1 %v3506_v28  ;;  %v159_v5 = vld [vmem:[#allocation3 + $0x2f8] sm:$0xff]  ;;  %v3458_v9 = vpack.c.bf16 %v157_v3, %v153_v2  ;;  %v156_v10 = vld [vmem:[#allocation3 + $0x2e0] sm:$0xff]  ;;  %v154_v11 = vld [vmem:[#allocation3 + $0x2d0] sm:$0xff] }
  0x57   :  { %v158_v12 = vld [vmem:[#allocation3 + $0x2f0] sm:$0xff]  ;;  %v3522_v13 = vpack.c.bf16 %v159_v5, %v155_v4  ;;  %v161_v14 = vld [vmem:[#allocation3 + $0x308] sm:$0xff]  ;;  %v4281_v16 = vld.sshfl [vmem:[%s4701_s1] sm:$0x33 pattern:$0x76325410]  ;;  %v3460_v20 = vpack.c.bf16 %v156_v10, %v152_v7 }
  0x58   :  { %3445 = vmatpush1.bf16.msra.mxu0 %v3444_v34  ;;  %v165_v15 = vld [vmem:[#allocation3 + $0x328] sm:$0xff]  ;;  %v163_v17 = vld [vmem:[#allocation3 + $0x318] sm:$0xff]  ;;  %v223_v19 = vcombine.high %v4281_v16, %v4281_v16  ;;  %v3524_v21 = vpack.c.bf16 %v158_v12, %v154_v11  ;;  %v160_v23 = vld [vmem:[#allocation3 + $0x300] sm:$0xff] }
  0x59   :  { %3509 = vmatpush1.bf16.msra.mxu1 %v3508_v35  ;;  %3447 = vmatprep.subr.bf16.mxu0 %v3446_v36  ;;  %v167_v18 = vld [vmem:[#allocation3 + $0x338] sm:$0xff]  ;;  %v3462_v22 = vpack.c.bf16 %v165_v15, %v161_v14  ;;  %v164_v24 = vld [vmem:[#allocation3 + $0x320] sm:$0xff]  ;;  %v162_v25 = vld [vmem:[#allocation3 + $0x310] sm:$0xff] }
  0x5a   :  { %3511 = vmatprep.subr.bf16.mxu1 %v3510_v40  ;;  %v3526_v26 = vpack.c.bf16 %v167_v18, %v163_v17  ;;  %v166_v27 = vld [vmem:[#allocation3 + $0x330] sm:$0xff]  ;;  %v169_v28 = vld [vmem:[#allocation3 + $0x348] sm:$0xff]  ;;  %290 = vmatprep.mubr.f32.mxu0 %v223_v19  ;;  %v171_v30 = vld [vmem:[#allocation3 + $0x358] sm:$0xff]  ;;  %v3464_v32 = vpack.c.bf16 %v164_v24, %v160_v23 }
  0x5b   :  { %v173_v29 = vld [vmem:[#allocation3 + $0x368] sm:$0xff]  ;;  %v175_v31 = vld [vmem:[#allocation3 + $0x378] sm:$0xff]  ;;  %361 = vmatprep.mubr.f32.mxu1 %v223_v19  ;;  %v3528_v33 = vpack.c.bf16 %v166_v27, %v162_v25  ;;  %v168_v35 = vld [vmem:[#allocation3 + $0x340] sm:$0xff] }
  0x5c   :  { %3449 = vmatpush1.bf16.msra.mxu0 %v3448_v46  ;;  %v3466_v34 = vpack.c.bf16 %v173_v29, %v169_v28  ;;  %v172_v36 = vld [vmem:[#allocation3 + $0x360] sm:$0xff]  ;;  %v170_v37 = vld [vmem:[#allocation3 + $0x350] sm:$0xff]  ;;  %v3530_v38 = vpack.c.bf16 %v175_v31, %v171_v30  ;;  %v177_v40 = vld [vmem:[#allocation3 + $0x388] sm:$0xff] }
  0x5d   :  { %3513 = vmatpush1.bf16.msra.mxu1 %v3512_v47  ;;  %3451 = vmatprep.subr.bf16.mxu0 %v3450_v48  ;;  %v174_v39 = vld [vmem:[#allocation3 + $0x370] sm:$0xff]  ;;  %v181_v41 = vld [vmem:[#allocation3 + $0x3a8] sm:$0xff]  ;;  %v179_v42 = vld [vmem:[#allocation3 + $0x398] sm:$0xff]  ;;  %v3468_v44 = vpack.c.bf16 %v172_v36, %v168_v35 }
  0x5e   :  { %3515 = vmatprep.subr.bf16.mxu1 %v3514_v52  ;;  %v183_v43 = vld [vmem:[#allocation3 + $0x3b8] sm:$0xff]  ;;  %v3532_v45 = vpack.c.bf16 %v174_v39, %v170_v37  ;;  %v3470_v46 = vpack.c.bf16 %v181_v41, %v177_v40  ;;  %v176_v47 = vld [vmem:[#allocation3 + $0x380] sm:$0xff]  ;;  %v178_v49 = vld [vmem:[#allocation3 + $0x390] sm:$0xff] }
  0x5f   :  { %v180_v48 = vld [vmem:[#allocation3 + $0x3a0] sm:$0xff]  ;;  %v3534_v50 = vpack.c.bf16 %v183_v43, %v179_v42  ;;  %v182_v51 = vld [vmem:[#allocation3 + $0x3b0] sm:$0xff]  ;;  %v185_v52 = vld [vmem:[#allocation3 + $0x3c8] sm:$0xff] }
  0x60   :  { %3453 = vmatpush1.bf16.msra.mxu0 %v3452_v58  ;;  %v189_v53 = vld [vmem:[#allocation3 + $0x3e8] sm:$0xff]  ;;  %v187_v54 = vld [vmem:[#allocation3 + $0x3d8] sm:$0xff]  ;;  %v3472_v56 = vpack.c.bf16 %v180_v48, %v176_v47  ;;  %v3536_v57 = vpack.c.bf16 %v182_v51, %v178_v49  ;;  %v186_v61 = vld [vmem:[#allocation3 + $0x3d0] sm:$0xff] }
  0x61   :  { %3517 = vmatpush1.bf16.msra.mxu1 %v3516_v59  ;;  %3455 = vmatprep.subr.bf16.mxu0 %v3454_v60  ;;  %v191_v55 = vld [vmem:[#allocation3 + $0x3f8] sm:$0xff]  ;;  %v3474_v58 = vpack.c.bf16 %v189_v53, %v185_v52  ;;  %v184_v59 = vld [vmem:[#allocation3 + $0x3c0] sm:$0xff]  ;;  %v190_v63 = vld [vmem:[#allocation3 + $0x3f0] sm:$0xff] }
  0x62   :  { %3519 = vmatprep.subr.bf16.mxu1 %v3518_v0  ;;  %v188_v60 = vld [vmem:[#allocation3 + $0x3e0] sm:$0xff]  ;;  %v3538_v62 = vpack.c.bf16 %v191_v55, %v187_v54  ;;  %v384_v0 = vld [vmem:[#allocation7 + $0x208] sm:$0xff]  ;;  %v385_v1 = vld [vmem:[#allocation7 + $0x210] sm:$0xff]  ;;  %v3540_v5 = vpack.c.bf16 %v190_v63, %v186_v61 }
  0x63   :  { %v416_v2 = vld [vmem:[#allocation7 + $0x308] sm:$0xff]  ;;  %v417_v3 = vld [vmem:[#allocation7 + $0x310] sm:$0xff]  ;;  %v3476_v4 = vpack.c.bf16 %v188_v60, %v184_v59  ;;  %v386_v12 = vld [vmem:[#allocation7 + $0x218] sm:$0xff] }
  0x64   :  { %3457 = vmatpush1.bf16.msra.mxu0 %v3456_v6  ;;  %v4285_v6 = vpack.c.bf16 %v385_v1, %v384_v0  ;;  %v368_v7 = vld [vmem:[#allocation7 + $0x188] sm:$0xff]  ;;  %v4287_v10 = vpack.c.bf16 %v417_v3, %v416_v2  ;;  %v401_v11 = vld [vmem:[#allocation7 + $0x290] sm:$0xff]  ;;  %v418_v14 = vld [vmem:[#allocation7 + $0x318] sm:$0xff] }
  0x65   :  { %3521 = vmatpush1.bf16.msra.mxu1 %v3520_v8  ;;  %3459 = vmatprep.subr.bf16.mxu0 %v3458_v9  ;;  %v369_v8 = vld [vmem:[#allocation7 + $0x190] sm:$0xff]  ;;  %v400_v9 = vld [vmem:[#allocation7 + $0x288] sm:$0xff]  ;;  %v419_v15 = vld [vmem:[#allocation7 + $0x320] sm:$0xff] }
  0x66   :  { %3523 = vmatprep.subr.bf16.mxu1 %v3522_v13  ;;  %v387_v13 = vld [vmem:[#allocation7 + $0x220] sm:$0xff]  ;;  %v4289_v17 = vpack.c.bf16 %v369_v8, %v368_v7  ;;  %v4292_v18 = vpack.c.bf16 %v401_v11, %v400_v9  ;;  %v4297_v23 = vpack.c.bf16 %v419_v15, %v418_v14  ;;  %v388_v25 = vld [vmem:[#allocation7 + $0x228] sm:$0xff]  ;;  %v421_v28 = vld [vmem:[#allocation7 + $0x330] sm:$0xff] }
  0x67   :  { %v4294_v19 = vpack.c.bf16 %v387_v13, %v386_v12  ;;  %v403_v24 = vld [vmem:[#allocation7 + $0x2a0] sm:$0xff]  ;;  %v420_v27 = vld [vmem:[#allocation7 + $0x328] sm:$0xff]  ;;  %v390_v36 = vld [vmem:[#allocation7 + $0x238] sm:$0xff] }
  0x68   :  { %3461 = vmatpush1.bf16.msra.mxu0 %v3460_v20  ;;  %v370_v20 = vld [vmem:[#allocation7 + $0x198] sm:$0xff]  ;;  %v4311_v35 = vpack.c.bf16 %v421_v28, %v420_v27  ;;  %v391_v37 = vld [vmem:[#allocation7 + $0x240] sm:$0xff]  ;;  %v392_v48 = vld [vmem:[#allocation7 + $0x248] sm:$0xff] }
  0x69   :  { %3525 = vmatpush1.bf16.msra.mxu1 %v3524_v21  ;;  %3463 = vmatprep.subr.bf16.mxu0 %v3462_v22  ;;  %v371_v21 = vld [vmem:[#allocation7 + $0x1a0] sm:$0xff]  ;;  %v402_v22 = vld [vmem:[#allocation7 + $0x298] sm:$0xff]  ;;  %v4320_v42 = vpack.c.bf16 %v391_v37, %v390_v36  ;;  %v393_v49 = vld [vmem:[#allocation7 + $0x250] sm:$0xff] }
  0x6a   :  { %3527 = vmatprep.subr.bf16.mxu1 %v3526_v26  ;;  %v389_v26 = vld [vmem:[#allocation7 + $0x230] sm:$0xff]  ;;  %v4302_v29 = vpack.c.bf16 %v371_v21, %v370_v20  ;;  %v4306_v30 = vpack.c.bf16 %v403_v24, %v402_v22  ;;  %v423_v39 = vld [vmem:[#allocation7 + $0x340] sm:$0xff]  ;;  %v374_v43 = vld [vmem:[#allocation7 + $0x1b8] sm:$0xff]  ;;  %v4332_v54 = vpack.c.bf16 %v393_v49, %v392_v48  ;;  %v195_v48 = vlaneseq }
  0x6b   :  { %v4308_v31 = vpack.c.bf16 %v389_v26, %v388_v25  ;;  %v407_v47 = vld [vmem:[#allocation7 + $0x2c0] sm:$0xff]  ;;  %v425_v51 = vld [vmem:[#allocation7 + $0x350] sm:$0xff]  ;;  %v376_v55 = vld [vmem:[#allocation7 + $0x1c8] sm:$0xff] }
  0x6c   :  { %3465 = vmatpush1.bf16.msra.mxu0 %v3464_v32  ;;  %v372_v32 = vld [vmem:[#allocation7 + $0x1a8] sm:$0xff]  ;;  %v409_v59 = vld [vmem:[#allocation7 + $0x2d0] sm:$0xff]  ;;  %v394_v60 = vld [vmem:[#allocation7 + $0x258] sm:$0xff]  ;;  %v4383_v49 = vshrl.u32 %v195_v48, 7 }
  0x6d   :  { %3529 = vmatpush1.bf16.msra.mxu1 %v3528_v33  ;;  %3467 = vmatprep.subr.bf16.mxu0 %v3466_v34  ;;  %v373_v33 = vld [vmem:[#allocation7 + $0x1b0] sm:$0xff]  ;;  %v404_v34 = vld [vmem:[#allocation7 + $0x2a8] sm:$0xff]  ;;  %v395_v61 = vld [vmem:[#allocation7 + $0x260] sm:$0xff] }
  0x6e   :  { %3531 = vmatprep.subr.bf16.mxu1 %v3530_v38  ;;  %v422_v38 = vld [vmem:[#allocation7 + $0x338] sm:$0xff]  ;;  %v4314_v40 = vpack.c.bf16 %v373_v33, %v372_v32  ;;  %v427_v63 = vld [vmem:[#allocation7 + $0x360] sm:$0xff]  ;;  %v4344_v2 = vpack.c.bf16 %v395_v61, %v394_v60  ;;  %v396_v9 = vld [vmem:[#allocation7 + $0x268] sm:$0xff] }
  0x6f   :  { %v378_v3 = vld [vmem:[#allocation7 + $0x1d8] sm:$0xff]  ;;  %v411_v8 = vld [vmem:[#allocation7 + $0x2e0] sm:$0xff]  ;;  %v397_v11 = vld [vmem:[#allocation7 + $0x270] sm:$0xff] }
  0x70   :  { %3469 = vmatpush1.bf16.msra.mxu0 %v3468_v44  ;;  %v375_v44 = vld [vmem:[#allocation7 + $0x1c0] sm:$0xff]  ;;  %v428_v12 = vld [vmem:[#allocation7 + $0x368] sm:$0xff]  ;;  %v429_v13 = vld [vmem:[#allocation7 + $0x370] sm:$0xff]  ;;  %v4356_v20 = vpack.c.bf16 %v397_v11, %v396_v9 }
  0x71   :  { %3533 = vmatpush1.bf16.msra.mxu1 %v3532_v45  ;;  %3471 = vmatprep.subr.bf16.mxu0 %v3470_v46  ;;  %v406_v45 = vld [vmem:[#allocation7 + $0x2b8] sm:$0xff]  ;;  %v4323_v46 = vpack.c.bf16 %v423_v39, %v422_v38  ;;  %v4326_v52 = vpack.c.bf16 %v375_v44, %v374_v43  ;;  %v380_v21 = vld [vmem:[#allocation7 + $0x1e8] sm:$0xff]  ;;  %v381_v22 = vld [vmem:[#allocation7 + $0x1f0] sm:$0xff]  ;;  %v4359_v24 = vpack.c.bf16 %v429_v13, %v428_v12 }
  0x72   :  { %3535 = vmatprep.subr.bf16.mxu1 %v3534_v50  ;;  %v424_v50 = vld [vmem:[#allocation7 + $0x348] sm:$0xff]  ;;  %v4330_v53 = vpack.c.bf16 %v407_v47, %v406_v45  ;;  %v413_v26 = vld [vmem:[#allocation7 + $0x2f0] sm:$0xff]  ;;  %v4362_v27 = vpack.c.bf16 %v381_v22, %v380_v21  ;;  %v398_v32 = vld [vmem:[#allocation7 + $0x278] sm:$0xff] }
  0x73   :  { %v412_v25 = vld [vmem:[#allocation7 + $0x2e8] sm:$0xff]  ;;  %v399_v33 = vld [vmem:[#allocation7 + $0x280] sm:$0xff]  ;;  %v382_v37 = vld [vmem:[#allocation7 + $0x1f8] sm:$0xff] }
  0x74   :  { %3473 = vmatpush1.bf16.msra.mxu0 %v3472_v56  ;;  %v377_v56 = vld [vmem:[#allocation7 + $0x1d0] sm:$0xff]  ;;  %v4366_v28 = vpack.c.bf16 %v413_v26, %v412_v25  ;;  %v431_v36 = vld [vmem:[#allocation7 + $0x380] sm:$0xff]  ;;  %v414_v44 = vld [vmem:[#allocation7 + $0x2f8] sm:$0xff]  ;;  %v4204_v26 = vmov 0.0  }
  0x75   :  { %3537 = vmatpush1.bf16.msra.mxu1 %v3536_v57  ;;  %3475 = vmatprep.subr.bf16.mxu0 %v3474_v58  ;;  %v408_v57 = vld [vmem:[#allocation7 + $0x2c8] sm:$0xff]  ;;  %v4335_v58 = vpack.c.bf16 %v425_v51, %v424_v50  ;;  %v4338_v0 = vpack.c.bf16 %v377_v56, %v376_v55  ;;  %v383_v38 = vld [vmem:[#allocation7 + $0x200] sm:$0xff]  ;;  %v4386_v50 = vsub.s32 1, %v4383_v49  ;;  %v4389_v55 = vsub.s32 0, %v4383_v49  ;;  %v435_v21 = vld [vmem:[#allocation3 + $0x418] sm:$0xff] }
  0x76   :  { %3539 = vmatprep.subr.bf16.mxu1 %v3538_v62  ;;  %v426_v62 = vld [vmem:[#allocation7 + $0x358] sm:$0xff]  ;;  %v4342_v1 = vpack.c.bf16 %v409_v59, %v408_v57  ;;  %v4375_v43 = vpack.c.bf16 %v383_v38, %v382_v37  ;;  %v415_v45 = vld [vmem:[#allocation7 + $0x300] sm:$0xff]  ;;  %v4392_v56 = vsub.s32 3, %v4383_v49  ;;  %v4395_v57 = vsub.s32 2, %v4383_v49  ;;  %v433_v13 = vld [vmem:[#allocation3 + $0x408] sm:$0xff] }
  0x77   :  { %v4347_v7 = vpack.c.bf16 %v427_v63, %v426_v62  ;;  %v4378_v47 = vpack.c.bf16 %v415_v45, %v414_v44  ;;  %v193_v51 = vld [vmem:[#allocation3 + $0x420] ss:$8 sm:$0xf] }
  0x78   :  { %3477 = vmatpush1.bf16.msra.mxu0 %v3476_v4  ;;  %v379_v4 = vld [vmem:[#allocation7 + $0x1e0] sm:$0xff]  ;;  %v202_v59 = vrot.slane %v193_v51, %v4386_v50  ;;  %v198_v60 = vrot.slane %v193_v51, %v4389_v55  ;;  %v210_v61 = vrot.slane %v193_v51, %v4392_v56  ;;  %v206_v63 = vrot.slane %v193_v51, %v4395_v57  ;;  %v4415_v25 = vld [vmem:[#allocation3 + $0x410] sm:$0xff] }
  0x79   :  { %3541 = vmatpush1.bf16.msra.mxu1 %v3540_v5  ;;  %3543 = vmatprep.subr.bf16.mxu0 %v4285_v6  ;;  %v410_v5 = vld [vmem:[#allocation7 + $0x2d8] sm:$0xff]  ;;  %v4350_v14 = vpack.c.bf16 %v379_v4, %v378_v3  ;;  %v4413_v22 = vld [vmem:[#allocation3 + $0x400] sm:$0xff] }
  0x7a   :  { %3575 = vmatprep.subr.bf16.mxu1 %v4287_v10  ;;  %v4354_v15 = vpack.c.bf16 %v411_v8, %v410_v5 }
  0x7b   :  { %291 = vmatmul.mubr.f32.vlgmr.msra.gmra.mrb[0].mxu0 %v4281_v16 }
  0x7c   :  { %362 = vmatmul.mubr.f32.vlgmr.msra.gmra.mrb[0].mxu1 %v4281_v16  ;;  %3545 = vmatpush3.bf16.msra.mxu0 %v4289_v17  ;;  %v405_v16 = vld [vmem:[#allocation7 + $0x2b0] sm:$0xff] }
  0x7d   :  { %3577 = vmatpush3.bf16.msra.mxu1 %v4292_v18  ;;  %3547 = vmatprep.subr.bf16.mxu0 %v4294_v19  ;;  %v4318_v41 = vpack.c.bf16 %v405_v16, %v404_v34  ;;  %v430_v34 = vld [vmem:[#allocation7 + $0x378] sm:$0xff]  ;;  %v4371_v16 = vpack.c.bf16 %v399_v33, %v398_v32 }
  0x7e   :  { %3579 = vmatprep.subr.bf16.mxu1 %v4297_v23  ;;  %v4373_v39 = vpack.c.bf16 %v431_v36, %v430_v34 }
  0x80   :  { %3549 = vmatpush3.bf16.msra.mxu0 %v4302_v29 }
  0x81   :  { %3581 = vmatpush3.bf16.msra.mxu1 %v4306_v30  ;;  %3551 = vmatprep.subr.bf16.mxu0 %v4308_v31 }
  0x82   :  { %3583 = vmatprep.subr.bf16.mxu1 %v4311_v35 }
  0x84   :  { %3553 = vmatpush3.bf16.msra.mxu0 %v4314_v40 }
  0x85   :  { %3585 = vmatpush3.bf16.msra.mxu1 %v4318_v41  ;;  %3555 = vmatprep.subr.bf16.mxu0 %v4320_v42 }
  0x86   :  { %3587 = vmatprep.subr.bf16.mxu1 %v4323_v46 }
  0x88   :  { %3557 = vmatpush3.bf16.msra.mxu0 %v4326_v52 }
  0x89   :  { %3589 = vmatpush3.bf16.msra.mxu1 %v4330_v53  ;;  %3559 = vmatprep.subr.bf16.mxu0 %v4332_v54 }
  0x8a   :  { %3591 = vmatprep.subr.bf16.mxu1 %v4335_v58 }
  0x8c   :  { %3561 = vmatpush3.bf16.msra.mxu0 %v4338_v0 }
  0x8d   :  { %3593 = vmatpush3.bf16.msra.mxu1 %v4342_v1  ;;  %3563 = vmatprep.subr.bf16.mxu0 %v4344_v2 }
  0x8e   :  { %3595 = vmatprep.subr.bf16.mxu1 %v4347_v7 }
  0x90   :  { %3565 = vmatpush3.bf16.msra.mxu0 %v4350_v14 }
  0x91   :  { %3597 = vmatpush3.bf16.msra.mxu1 %v4354_v15  ;;  %3567 = vmatprep.subr.bf16.mxu0 %v4356_v20 }
  0x92   :  { %3599 = vmatprep.subr.bf16.mxu1 %v4359_v24 }
  0x94   :  { %3569 = vmatpush3.bf16.msra.mxu0 %v4362_v27 }
  0x95   :  { %3601 = vmatpush3.bf16.msra.mxu1 %v4366_v28  ;;  %3571 = vmatprep.subr.bf16.mxu0 %v4371_v16 }
  0x96   :  { %3603 = vmatprep.subr.bf16.mxu1 %v4373_v39 }
  0x98   :  { %3573 = vmatpush3.bf16.msra.mxu0 %v4375_v43 }
  0x99   :  { %3605 = vmatpush3.bf16.msra.mxu1 %v4378_v47  ;;  %589 = vmatprep.subr.mxu0 %v433_v13 }
  0x9a   :  { %660 = vmatprep.subr.mxu1 %v435_v21 }
 0x14e   :  { %v292_v62 = vpop.f32.mrb[0].mxu0 }
 0x14f   :  { %v363_v3 = vpop.f32.mrb[0].mxu1  ;;  %v294_v4 = vpop.f32.mrb[1].mxu0  ;;  %v4403_v9 = vadd.f32 %v292_v62, %v198_v60 }
 0x150   :  { %v4401_v5 = vadd.f32 %v294_v4, %v202_v59  ;;  %v365_v8 = vpop.f32.mrb[1].mxu1  ;;  %v4407_v12 = vadd.f32 %v363_v3, %v206_v63 }
 0x151   :  { %v4405_v11 = vadd.f32 %v365_v8, %v210_v61  ;;  %v1136_v8 = vld [vmem:[#allocation5] sm:$0xff] }
 0x152   :  { %500 = vmatprep.mubr.f32.mxu0 %v4401_v5 }
 0x153   :  { %570 = vmatprep.mubr.f32.mxu1 %v4405_v11  ;;  %501 = vmatmul.mubr.f32.vlgmr.msra.gmra.mrb[2].mxu0 %v4403_v9 }
 0x154   :  { %571 = vmatmul.mubr.f32.vlgmr.msra.gmra.mrb[2].mxu1 %v4407_v12  ;;  %590 = vmatpush1.msra.mxu0 %v4413_v22 }
 0x155   :  { %661 = vmatpush1.msra.mxu1 %v4415_v25  ;;  %653 = vmatprep.mubr.f32.mxu0 %v4204_v26 }
 0x156   :  { %724 = vmatprep.mubr.f32.mxu1 %v4204_v26  ;;  %3607 = vmatprep.subr.bf16.mxu0 %v4285_v6 }
 0x157   :  { %3639 = vmatprep.subr.bf16.mxu1 %v4287_v10 }
 0x226   :  { %v3092_v32 = vpop.f32.mrb[2].mxu0 }
 0x227   :  { %v3127_v33 = vpop.f32.mrb[2].mxu1  ;;  %v3093_v34 = vpop.f32.mrb[3].mxu0 }
 0x228   :  { %v3094_v36 = vadd.f32 %v3093_v34, %v3092_v32  ;;  %v3128_v37 = vpop.f32.mrb[3].mxu1  ;;  %v1147_v34 = vld [vmem:[#allocation5 + $0x58] sm:$0xff] }
 0x229   :  { %v3129_v38 = vadd.f32 %v3128_v37, %v3127_v33  ;;  %v1145_v33 = vld [vmem:[#allocation5 + $0x48] sm:$0xff] }
 0x22a   :  { %v3678_v37 = vpack.c.bf16 %v1147_v34, %v1145_v33  ;;  %v1181_v33 = vld [vmem:[#allocation5 + $0x168] sm:$0xff]  ;;  %v1183_v34 = vld [vmem:[#allocation5 + $0x178] sm:$0xff] }
 0x22b   :  { %v573_v44 = vadd.f32 %v3129_v38, %v3094_v36  ;;  %v1144_v38 = vld [vmem:[#allocation5 + $0x40] sm:$0xff] }
 0x22d   :  { %v577_v45 = vsel %vm576_vm0, %v573_v44, 0.0  ;;  %v1146_v44 = vld [vmem:[#allocation5 + $0x50] sm:$0xff] }
 0x22e   :  { %v578_v48 = vrot.slane %v577_v45, 4 }
 0x230   :  { %v579_v51 = vadd.f32 %v578_v48, %v577_v45  ;;  %v1149_v45 = vld [vmem:[#allocation5 + $0x68] sm:$0xff]  ;;  %v1151_v48 = vld [vmem:[#allocation5 + $0x78] sm:$0xff] }
 0x232   :  { %v580_v59 = vrot.slane %v579_v51, 2 }
 0x234   :  { %v581_v60 = vadd.f32 %v580_v59, %v579_v51  ;;  %v3680_v51 = vpack.c.bf16 %v1146_v44, %v1144_v38  ;;  %v3682_v59 = vpack.c.bf16 %v1151_v48, %v1149_v45  ;;  %v1180_v38 = vld [vmem:[#allocation5 + $0x160] sm:$0xff]  ;;  %v1182_v44 = vld [vmem:[#allocation5 + $0x170] sm:$0xff]  ;;  %v1185_v45 = vld [vmem:[#allocation5 + $0x188] sm:$0xff] }
 0x235   :  { %v1187_v48 = vld [vmem:[#allocation5 + $0x198] sm:$0xff] }
 0x236   :  { %v582_v61 = vrot.slane %v581_v60, 1 }
 0x238   :  { %v583_v62 = vadd.f32 %v582_v61, %v581_v60  ;;  %v1148_v60 = vld [vmem:[#allocation5 + $0x60] sm:$0xff]  ;;  %v1150_v61 = vld [vmem:[#allocation5 + $0x70] sm:$0xff] }
 0x23a   :  { %v584_v6 = vmul.f32 0.0078125, %v583_v62  ;;  %v1153_v62 = vld [vmem:[#allocation5 + $0x88] sm:$0xff] }
 0x23c   :  { %3037 = vmatmul.mubr.msk.f32.vlgmr.msra.gmra.mrb[4].mxu0 %vm585_vm1, %v584_v6  ;;  %3038 = vmatmul.mubr.msk.f32.vlgmr.msra.gmra.mrb[4].mxu1 %vm585_vm1, %v584_v6  ;;  %v1155_v6 = vld [vmem:[#allocation5 + $0x98] sm:$0xff] }
 0x23d   :  { %3609 = vmatpush3.bf16.msra.mxu0 %v4289_v17  ;;  %3641 = vmatpush3.bf16.msra.mxu1 %v4292_v18 }
 0x23e   :  { %3611 = vmatprep.subr.bf16.mxu0 %v4294_v19  ;;  %3643 = vmatprep.subr.bf16.mxu1 %v4297_v23 }
 0x241   :  { %3613 = vmatpush3.bf16.msra.mxu0 %v4302_v29  ;;  %3645 = vmatpush3.bf16.msra.mxu1 %v4306_v30 }
 0x242   :  { %3615 = vmatprep.subr.bf16.mxu0 %v4308_v31  ;;  %3647 = vmatprep.subr.bf16.mxu1 %v4311_v35 }
 0x245   :  { %3617 = vmatpush3.bf16.msra.mxu0 %v4314_v40  ;;  %3649 = vmatpush3.bf16.msra.mxu1 %v4318_v41 }
 0x246   :  { %3619 = vmatprep.subr.bf16.mxu0 %v4320_v42  ;;  %3651 = vmatprep.subr.bf16.mxu1 %v4323_v46 }
 0x249   :  { %3621 = vmatpush3.bf16.msra.mxu0 %v4326_v52  ;;  %3653 = vmatpush3.bf16.msra.mxu1 %v4330_v53 }
 0x24a   :  { %3623 = vmatprep.subr.bf16.mxu0 %v4332_v54  ;;  %3655 = vmatprep.subr.bf16.mxu1 %v4335_v58  ;;  %v1137_v58 = vld [vmem:[#allocation5 + $0x8] sm:$0xff] }
 0x24d   :  { %3625 = vmatpush3.bf16.msra.mxu0 %v4338_v0  ;;  %3657 = vmatpush3.bf16.msra.mxu1 %v4342_v1  ;;  %v1139_v0 = vld [vmem:[#allocation5 + $0x18] sm:$0xff] }
 0x24e   :  { %3627 = vmatprep.subr.bf16.mxu0 %v4344_v2  ;;  %3659 = vmatprep.subr.bf16.mxu1 %v4347_v7  ;;  %v3670_v1 = vpack.c.bf16 %v1139_v0, %v1137_v58 }
 0x251   :  { %3629 = vmatpush3.bf16.msra.mxu0 %v4350_v14  ;;  %3661 = vmatpush3.bf16.msra.mxu1 %v4354_v15 }
 0x252   :  { %3631 = vmatprep.subr.bf16.mxu0 %v4356_v20  ;;  %3663 = vmatprep.subr.bf16.mxu1 %v4359_v24 }
 0x255   :  { %3633 = vmatpush3.bf16.msra.mxu0 %v4362_v27  ;;  %3665 = vmatpush3.bf16.msra.mxu1 %v4366_v28 }
 0x256   :  { %3635 = vmatprep.subr.bf16.mxu0 %v4371_v16  ;;  %3667 = vmatprep.subr.bf16.mxu1 %v4373_v39 }
 0x259   :  { %3637 = vmatpush3.bf16.msra.mxu0 %v4375_v43  ;;  %3669 = vmatpush3.bf16.msra.mxu1 %v4378_v47 }
 0x25a   :  { %908 = vmatprep.subr.mxu0 %v433_v13  ;;  %979 = vmatprep.subr.mxu1 %v435_v21 }
 0x30f   :  { %v655_v10 = vpop.f32.mrb[4].mxu0  ;;  %v726_v17 = vpop.f32.mrb[4].mxu1 }
 0x310   :  { %v734_v18 = vrot.slane %v655_v10, %v4389_v55  ;;  %v742_v19 = vrot.slane %v726_v17, %v4389_v55  ;;  %v657_v23 = vpop.f32.mrb[5].mxu0  ;;  %v728_v29 = vpop.f32.mrb[5].mxu1  ;;  %v3684_v10 = vpack.c.bf16 %v1150_v61, %v1148_v60  ;;  %v3686_v17 = vpack.c.bf16 %v1155_v6, %v1153_v62  ;;  %v1184_v60 = vld [vmem:[#allocation5 + $0x180] sm:$0xff]  ;;  %v1186_v61 = vld [vmem:[#allocation5 + $0x190] sm:$0xff]  ;;  %v1189_v6 = vld [vmem:[#allocation5 + $0x1a8] sm:$0xff] }
 0x311   :  { %v738_v30 = vrot.slane %v657_v23, %v4389_v55  ;;  %v746_v31 = vrot.slane %v728_v29, %v4389_v55  ;;  %v1157_v23 = vld [vmem:[#allocation5 + $0xa8] sm:$0xff]  ;;  %v1159_v29 = vld [vmem:[#allocation5 + $0xb8] sm:$0xff]  ;;  %v3720_v62 = vpack.c.bf16 %v1186_v61, %v1184_v60  ;;  %v1446_v60 = vld [vmem:[#allocation7 + $0x460] sm:$0xff] }
 0x312   :  { %v4461_v35 = vsub.f32 %v4403_v9, %v734_v18  ;;  %v4464_v40 = vsub.f32 %v4407_v12, %v742_v19  ;;  %v1138_v9 = vld [vmem:[#allocation5 + $0x10] sm:$0xff]  ;;  %v1143_v12 = vld [vmem:[#allocation5 + $0x38] sm:$0xff]  ;;  %v1152_v18 = vld [vmem:[#allocation5 + $0x80] sm:$0xff] }
 0x313   :  { %v4467_v41 = vsub.f32 %v4401_v5, %v738_v30  ;;  %v4470_v42 = vsub.f32 %v4405_v11, %v746_v31  ;;  %v1141_v11 = vld [vmem:[#allocation5 + $0x28] sm:$0xff]  ;;  %v3672_v13 = vpack.c.bf16 %v1138_v9, %v1136_v8  ;;  %v1154_v19 = vld [vmem:[#allocation5 + $0x90] sm:$0xff]  ;;  %v3690_v31 = vpack.c.bf16 %v1159_v29, %v1157_v23  ;;  %v1172_v9 = vld [vmem:[#allocation5 + $0x120] sm:$0xff] }
 0x314   :  { %v751_v53 = vmul.f32 %v4461_v35, %v4461_v35  ;;  %v753_v54 = vmul.f32 %v4464_v40, %v4464_v40  ;;  %v3674_v21 = vpack.c.bf16 %v1143_v12, %v1141_v11  ;;  %v3688_v30 = vpack.c.bf16 %v1154_v19, %v1152_v18  ;;  %v1174_v11 = vld [vmem:[#allocation5 + $0x130] sm:$0xff]  ;;  %v1177_v12 = vld [vmem:[#allocation5 + $0x148] sm:$0xff]  ;;  %v1188_v18 = vld [vmem:[#allocation5 + $0x1a0] sm:$0xff] }
 0x315   :  { %v752_v46 = vmul.f32 %v4467_v41, %v4467_v41  ;;  %v754_v52 = vmul.f32 %v4470_v42, %v4470_v42  ;;  %v1190_v19 = vld [vmem:[#allocation5 + $0x1b0] sm:$0xff]  ;;  %v1193_v29 = vld [vmem:[#allocation5 + $0x1c8] sm:$0xff] }
 0x316   :  { %v3724_v23 = vpack.c.bf16 %v1190_v19, %v1188_v18  ;;  %v1448_v18 = vld [vmem:[#allocation7 + $0x470] sm:$0xff] }
 0x317   :  { %819 = vmatprep.mubr.f32.mxu0 %v752_v46  ;;  %889 = vmatprep.mubr.f32.mxu1 %v754_v52  ;;  %v1156_v46 = vld [vmem:[#allocation5 + $0xa0] sm:$0xff]  ;;  %v1158_v52 = vld [vmem:[#allocation5 + $0xb0] sm:$0xff] }
 0x318   :  { %820 = vmatmul.mubr.f32.vlgmr.msra.gmra.mrb[6].mxu0 %v751_v53  ;;  %890 = vmatmul.mubr.f32.vlgmr.msra.gmra.mrb[6].mxu1 %v753_v54  ;;  %v1161_v53 = vld [vmem:[#allocation5 + $0xc8] sm:$0xff]  ;;  %v1163_v54 = vld [vmem:[#allocation5 + $0xd8] sm:$0xff]  ;;  %v3692_v58 = vpack.c.bf16 %v1158_v52, %v1156_v46  ;;  %v1192_v46 = vld [vmem:[#allocation5 + $0x1c0] sm:$0xff] }
 0x319   :  { %909 = vmatpush1.msra.mxu0 %v4413_v22  ;;  %972 = vmatprep.mubr.f32.mxu0 %v4204_v26  ;;  %v1140_v22 = vld [vmem:[#allocation5 + $0x20] sm:$0xff]  ;;  %v3694_v0 = vpack.c.bf16 %v1163_v54, %v1161_v53  ;;  %v1194_v52 = vld [vmem:[#allocation5 + $0x1d0] sm:$0xff]  ;;  %v1197_v54 = vld [vmem:[#allocation5 + $0x1e8] sm:$0xff] }
 0x31a   :  { %980 = vmatpush1.msra.mxu1 %v4415_v25  ;;  %1043 = vmatprep.mubr.f32.mxu1 %v4204_v26  ;;  %v1142_v25 = vld [vmem:[#allocation5 + $0x30] sm:$0xff]  ;;  %v3728_v53 = vpack.c.bf16 %v1194_v52, %v1192_v46 }
 0x31b   :  { %3671 = vmatprep.subr.bf16.mxu0 %v3670_v1  ;;  %v3676_v36 = vpack.c.bf16 %v1142_v25, %v1140_v22  ;;  %v1160_v1 = vld [vmem:[#allocation5 + $0xc0] sm:$0xff] }
 0x31c   :  { %v1176_v25 = vld [vmem:[#allocation5 + $0x140] sm:$0xff] }
 0x31d   :  { %v1071_v46 = vld [vmem:[#allocation3 + $0x440] ss:$8 sm:$0xf] }
 0x3eb   :  { %v3162_v2 = vpop.f32.mrb[6].mxu0  ;;  %v3197_v7 = vpop.f32.mrb[6].mxu1 }
 0x3ec   :  { %v3163_v14 = vpop.f32.mrb[7].mxu0  ;;  %v3198_v15 = vpop.f32.mrb[7].mxu1 }
 0x3ed   :  { %v3164_v20 = vadd.f32 %v3163_v14, %v3162_v2  ;;  %v3199_v24 = vadd.f32 %v3198_v15, %v3197_v7  ;;  %v1162_v2 = vld [vmem:[#allocation5 + $0xd0] sm:$0xff]  ;;  %v1165_v7 = vld [vmem:[#allocation5 + $0xe8] sm:$0xff]  ;;  %v1167_v14 = vld [vmem:[#allocation5 + $0xf8] sm:$0xff] }
 0x3ee   :  { %v3696_v15 = vpack.c.bf16 %v1162_v2, %v1160_v1  ;;  %v1196_v1 = vld [vmem:[#allocation5 + $0x1e0] sm:$0xff]  ;;  %v1198_v2 = vld [vmem:[#allocation5 + $0x1f0] sm:$0xff] }
 0x3ef   :  { %v892_v27 = vadd.f32 %v3199_v24, %v3164_v20  ;;  %v3698_v20 = vpack.c.bf16 %v1167_v14, %v1165_v7  ;;  %v1164_v24 = vld [vmem:[#allocation5 + $0xe0] sm:$0xff]  ;;  %v3732_v7 = vpack.c.bf16 %v1198_v2, %v1196_v1  ;;  %v1201_v14 = vld [vmem:[#allocation5 + $0x208] sm:$0xff]  ;;  %v1084_v2 = vrot.slane %v1071_v46, %v4395_v57 }
 0x3f1   :  { %v895_v28 = vsel %vm576_vm0, %v892_v27, 0.0  ;;  %v1166_v27 = vld [vmem:[#allocation5 + $0xf0] sm:$0xff]  ;;  %vm2129_vm0 = vcmask 31744  }
 0x3f2   :  { %v896_v16 = vrot.slane %v895_v28, 4 }
 0x3f4   :  { %v897_v39 = vadd.f32 %v896_v16, %v895_v28  ;;  %v1169_v28 = vld [vmem:[#allocation5 + $0x108] sm:$0xff]  ;;  %v1171_v16 = vld [vmem:[#allocation5 + $0x118] sm:$0xff] }
 0x3f6   :  { %v898_v43 = vrot.slane %v897_v39, 2 }
 0x3f8   :  { %v899_v47 = vadd.f32 %v898_v43, %v897_v39  ;;  %v3700_v39 = vpack.c.bf16 %v1166_v27, %v1164_v24  ;;  %v3702_v43 = vpack.c.bf16 %v1171_v16, %v1169_v28  ;;  %v1435_v24 = vld [vmem:[#allocation7 + $0x408] sm:$0xff]  ;;  %v1436_v27 = vld [vmem:[#allocation7 + $0x410] sm:$0xff] }
 0x3f9   :  { %v1419_v28 = vld [vmem:[#allocation7 + $0x388] sm:$0xff]  ;;  %v4487_v16 = vpack.c.bf16 %v1436_v27, %v1435_v24  ;;  %v1088_v27 = vrot.slane %v1071_v46, %v4392_v56 }
 0x3fa   :  { %v900_v63 = vrot.slane %v899_v47, 1 }
 0x3fb   :  { %3799 = vmatprep.subr.bf16.mxu1 %v4487_v16 }
 0x3fc   :  { %v901_v3 = vadd.f32 %v900_v63, %v899_v47  ;;  %v1168_v47 = vld [vmem:[#allocation5 + $0x100] sm:$0xff]  ;;  %v1170_v63 = vld [vmem:[#allocation5 + $0x110] sm:$0xff] }
 0x3fe   :  { %v902_v4 = vmul.f32 0.0078125, %v901_v3  ;;  %v1173_v3 = vld [vmem:[#allocation5 + $0x128] sm:$0xff] }
 0x400   :  { %v903_v5 = vadd.f32 1e-05, %v902_v4  ;;  %v1175_v4 = vld [vmem:[#allocation5 + $0x138] sm:$0xff] }
 0x401   :  { %v3706_v8 = vpack.c.bf16 %v1175_v4, %v1173_v3  ;;  %v1421_v4 = vld [vmem:[#allocation7 + $0x398] sm:$0xff] }
 0x402   :  { %4095 = vrsqrt.f32 %v903_v5  ;;  %v3704_v5 = vpack.c.bf16 %v1170_v63, %v1168_v47  ;;  %v1438_v47 = vld [vmem:[#allocation7 + $0x420] sm:$0xff] }
 0x40c   :  { %v4096_v32 = vpop.eup %4095 }
 0x40d   :  { %3039 = vmatmul.mubr.msk.f32.vlgmr.msra.gmra.mrb[8].mxu0 %vm585_vm1, %v4096_v32  ;;  %3040 = vmatmul.mubr.msk.f32.vlgmr.msra.gmra.mrb[8].mxu1 %vm585_vm1, %v4096_v32  ;;  %v1178_v32 = vld [vmem:[#allocation5 + $0x150] sm:$0xff] }
 0x40e   :  { %3673 = vmatpush1.bf16.msra.mxu0 %v3672_v13  ;;  %v1179_v13 = vld [vmem:[#allocation5 + $0x158] sm:$0xff] }
 0x40f   :  { %3675 = vmatprep.subr.bf16.mxu0 %v3674_v21  ;;  %v3708_v21 = vpack.c.bf16 %v1174_v11, %v1172_v9  ;;  %v3710_v22 = vpack.c.bf16 %v1179_v13, %v1177_v12  ;;  %v1440_v9 = vld [vmem:[#allocation7 + $0x430] sm:$0xff]  ;;  %v1423_v13 = vld [vmem:[#allocation7 + $0x3a8] sm:$0xff] }
 0x412   :  { %3677 = vmatpush1.bf16.msra.mxu0 %v3676_v36  ;;  %v3712_v36 = vpack.c.bf16 %v1178_v32, %v1176_v25  ;;  %v1442_v25 = vld [vmem:[#allocation7 + $0x440] sm:$0xff] }
 0x413   :  { %3679 = vmatprep.subr.bf16.mxu0 %v3678_v37  ;;  %v3714_v37 = vpack.c.bf16 %v1183_v34, %v1181_v33  ;;  %v1425_v34 = vld [vmem:[#allocation7 + $0x3b8] sm:$0xff] }
 0x416   :  { %3681 = vmatpush1.bf16.msra.mxu0 %v3680_v51  ;;  %v3716_v51 = vpack.c.bf16 %v1182_v44, %v1180_v38  ;;  %v1444_v38 = vld [vmem:[#allocation7 + $0x450] sm:$0xff] }
 0x417   :  { %3683 = vmatprep.subr.bf16.mxu0 %v3682_v59  ;;  %v3718_v59 = vpack.c.bf16 %v1187_v48, %v1185_v45  ;;  %v1427_v48 = vld [vmem:[#allocation7 + $0x3c8] sm:$0xff] }
 0x41a   :  { %3685 = vmatpush1.bf16.msra.mxu0 %v3684_v10  ;;  %v1191_v10 = vld [vmem:[#allocation5 + $0x1b8] sm:$0xff] }
 0x41b   :  { %3687 = vmatprep.subr.bf16.mxu0 %v3686_v17  ;;  %v3722_v17 = vpack.c.bf16 %v1191_v10, %v1189_v6  ;;  %v1429_v6 = vld [vmem:[#allocation7 + $0x3d8] sm:$0xff]  ;;  %v1430_v10 = vld [vmem:[#allocation7 + $0x3e0] sm:$0xff] }
 0x41c   :  { %v4519_v19 = vpack.c.bf16 %v1430_v10, %v1429_v6  ;;  %v1204_v6 = vld [vmem:[#allocation5 + $0x220] sm:$0xff]  ;;  %v1206_v10 = vld [vmem:[#allocation5 + $0x230] sm:$0xff] }
 0x41e   :  { %3689 = vmatpush1.bf16.msra.mxu0 %v3688_v30  ;;  %v1195_v30 = vld [vmem:[#allocation5 + $0x1d8] sm:$0xff] }
 0x41f   :  { %3691 = vmatprep.subr.bf16.mxu0 %v3690_v31  ;;  %v3726_v31 = vpack.c.bf16 %v1195_v30, %v1193_v29  ;;  %v1431_v29 = vld [vmem:[#allocation7 + $0x3e8] sm:$0xff]  ;;  %v1432_v30 = vld [vmem:[#allocation7 + $0x3f0] sm:$0xff] }
 0x422   :  { %3693 = vmatpush1.bf16.msra.mxu0 %v3692_v58  ;;  %v1199_v58 = vld [vmem:[#allocation5 + $0x1f8] sm:$0xff] }
 0x423   :  { %3695 = vmatprep.subr.bf16.mxu0 %v3694_v0  ;;  %v3730_v0 = vpack.c.bf16 %v1199_v58, %v1197_v54 }
 0x426   :  { %3697 = vmatpush1.bf16.msra.mxu0 %v3696_v15  ;;  %v1203_v15 = vld [vmem:[#allocation5 + $0x218] sm:$0xff] }
 0x427   :  { %3699 = vmatprep.subr.bf16.mxu0 %v3698_v20  ;;  %v3734_v20 = vpack.c.bf16 %v1203_v15, %v1201_v14 }
 0x42a   :  { %3701 = vmatpush1.bf16.msra.mxu0 %v3700_v39  ;;  %v1420_v39 = vld [vmem:[#allocation7 + $0x390] sm:$0xff] }
 0x42b   :  { %3703 = vmatprep.subr.bf16.mxu0 %v3702_v43  ;;  %v1437_v43 = vld [vmem:[#allocation7 + $0x418] sm:$0xff]  ;;  %v4489_v63 = vpack.c.bf16 %v1420_v39, %v1419_v28 }
 0x42c   :  { %v4491_v3 = vpack.c.bf16 %v1438_v47, %v1437_v43 }
 0x42d   :  { %3801 = vmatpush3.bf16.msra.mxu1 %v4489_v63 }
 0x42e   :  { %3705 = vmatpush1.bf16.msra.mxu0 %v3704_v5  ;;  %v1422_v5 = vld [vmem:[#allocation7 + $0x3a0] sm:$0xff]  ;;  %3803 = vmatprep.subr.bf16.mxu1 %v4491_v3 }
 0x42f   :  { %3707 = vmatprep.subr.bf16.mxu0 %v3706_v8  ;;  %v1439_v8 = vld [vmem:[#allocation7 + $0x428] sm:$0xff]  ;;  %v4495_v11 = vpack.c.bf16 %v1422_v5, %v1421_v4 }
 0x430   :  { %v4498_v12 = vpack.c.bf16 %v1440_v9, %v1439_v8 }
 0x431   :  { %3805 = vmatpush3.bf16.msra.mxu1 %v4495_v11 }
 0x432   :  { %3709 = vmatpush1.bf16.msra.mxu0 %v3708_v21  ;;  %v1424_v21 = vld [vmem:[#allocation7 + $0x3b0] sm:$0xff]  ;;  %3807 = vmatprep.subr.bf16.mxu1 %v4498_v12 }
 0x433   :  { %3711 = vmatprep.subr.bf16.mxu0 %v3710_v22  ;;  %v1441_v22 = vld [vmem:[#allocation7 + $0x438] sm:$0xff]  ;;  %v4501_v32 = vpack.c.bf16 %v1424_v21, %v1423_v13 }
 0x434   :  { %v4504_v33 = vpack.c.bf16 %v1442_v25, %v1441_v22 }
 0x435   :  { %3809 = vmatpush3.bf16.msra.mxu1 %v4501_v32 }
 0x436   :  { %3713 = vmatpush1.bf16.msra.mxu0 %v3712_v36  ;;  %v1426_v36 = vld [vmem:[#allocation7 + $0x3c0] sm:$0xff]  ;;  %3811 = vmatprep.subr.bf16.mxu1 %v4504_v33 }
 0x437   :  { %3715 = vmatprep.subr.bf16.mxu0 %v3714_v37  ;;  %v1443_v37 = vld [vmem:[#allocation7 + $0x448] sm:$0xff]  ;;  %v4507_v44 = vpack.c.bf16 %v1426_v36, %v1425_v34 }
 0x438   :  { %v4510_v45 = vpack.c.bf16 %v1444_v38, %v1443_v37  ;;  %v1200_v37 = vld [vmem:[#allocation5 + $0x200] sm:$0xff] }
 0x439   :  { %3813 = vmatpush3.bf16.msra.mxu1 %v4507_v44 }
 0x43a   :  { %3717 = vmatpush1.bf16.msra.mxu0 %v3716_v51  ;;  %v1428_v51 = vld [vmem:[#allocation7 + $0x3d0] sm:$0xff]  ;;  %3815 = vmatprep.subr.bf16.mxu1 %v4510_v45 }
 0x43b   :  { %3719 = vmatprep.subr.bf16.mxu0 %v3718_v59  ;;  %v1445_v59 = vld [vmem:[#allocation7 + $0x458] sm:$0xff]  ;;  %v4513_v61 = vpack.c.bf16 %v1428_v51, %v1427_v48  ;;  %v1205_v48 = vld [vmem:[#allocation5 + $0x228] sm:$0xff] }
 0x43d   :  { %3817 = vmatpush3.bf16.msra.mxu1 %v4513_v61 }
 0x43e   :  { %3721 = vmatpush1.bf16.msra.mxu0 %v3720_v62  ;;  %v4516_v62 = vpack.c.bf16 %v1446_v60, %v1445_v59 }
 0x43f   :  { %3723 = vmatprep.subr.bf16.mxu0 %v3722_v17  ;;  %v1447_v17 = vld [vmem:[#allocation7 + $0x468] sm:$0xff] }
 0x440   :  { %3819 = vmatprep.subr.bf16.mxu1 %v4516_v62 }
 0x441   :  { %3821 = vmatpush3.bf16.msra.mxu1 %v4519_v19 }
 0x442   :  { %3725 = vmatpush1.bf16.msra.mxu0 %v3724_v23  ;;  %v4522_v23 = vpack.c.bf16 %v1448_v18, %v1447_v17  ;;  %v1209_v18 = vld [vmem:[#allocation5 + $0x248] sm:$0xff] }
 0x443   :  { %3727 = vmatprep.subr.bf16.mxu0 %v3726_v31  ;;  %v4525_v31 = vpack.c.bf16 %v1432_v30, %v1431_v29  ;;  %v1211_v29 = vld [vmem:[#allocation5 + $0x258] sm:$0xff] }
 0x444   :  { %3823 = vmatprep.subr.bf16.mxu1 %v4522_v23 }
 0x445   :  { %3825 = vmatpush3.bf16.msra.mxu1 %v4525_v31 }
 0x446   :  { %3729 = vmatpush1.bf16.msra.mxu0 %v3728_v53  ;;  %v1098_v53 = vld [vmem:[#allocation3 + $0x460] ss:$8 sm:$0xf] }
 0x447   :  { %3731 = vmatprep.subr.bf16.mxu0 %v3730_v0  ;;  %v1076_v0 = vrot.slane %v1071_v46, %v4389_v55  ;;  %v1103_v39 = vrot.slane %v1098_v53, %v4389_v55  ;;  %v1111_v47 = vrot.slane %v1098_v53, %v4395_v57  ;;  %v1107_v8 = vrot.slane %v1098_v53, %v4386_v50 }
 0x448   :  { %v1115_v9 = vrot.slane %v1098_v53, %v4392_v56  ;;  %v1208_v53 = vld [vmem:[#allocation5 + $0x240] sm:$0xff] }
 0x44a   :  { %3733 = vmatpush1.bf16.msra.mxu0 %v3732_v7 }
 0x44b   :  { %3735 = vmatprep.subr.bf16.mxu0 %v3734_v20  ;;  %v1080_v20 = vrot.slane %v1071_v46, %v4386_v50  ;;  %v3740_v46 = vpack.c.bf16 %v1206_v10, %v1204_v6  ;;  %v1234_v6 = vld [vmem:[#allocation5 + $0x310] sm:$0xff]  ;;  %v1237_v10 = vld [vmem:[#allocation5 + $0x328] sm:$0xff] }
 0x4e0   :  { %v974_v52 = vpop.f32.mrb[8].mxu0  ;;  %v1045_v54 = vpop.f32.mrb[8].mxu1 }
 0x4e1   :  { %v1053_v58 = vrot.slane %v974_v52, %v4389_v55  ;;  %v1061_v1 = vrot.slane %v1045_v54, %v4389_v55  ;;  %v976_v7 = vpop.f32.mrb[9].mxu0  ;;  %v1047_v14 = vpop.f32.mrb[9].mxu1  ;;  %v3742_v52 = vpack.c.bf16 %v1211_v29, %v1209_v18  ;;  %v1210_v54 = vld [vmem:[#allocation5 + $0x250] sm:$0xff] }
 0x4e2   :  { %v1057_v15 = vrot.slane %v976_v7, %v4389_v55  ;;  %v1065_v24 = vrot.slane %v1047_v14, %v4389_v55  ;;  %v1212_v7 = vld [vmem:[#allocation5 + $0x260] sm:$0xff]  ;;  %v1214_v14 = vld [vmem:[#allocation5 + $0x270] sm:$0xff] }
 0x4e3   :  { %v1066_v28 = vmul.f32 %v1053_v58, %v4461_v35  ;;  %v1068_v43 = vmul.f32 %v1061_v1, %v4464_v40  ;;  %v1202_v40 = vld [vmem:[#allocation5 + $0x210] sm:$0xff]  ;;  %v1213_v58 = vld [vmem:[#allocation5 + $0x268] sm:$0xff]  ;;  %v3744_v1 = vpack.c.bf16 %v1210_v54, %v1208_v53  ;;  %v1243_v53 = vld [vmem:[#allocation5 + $0x358] sm:$0xff] }
 0x4e4   :  { %v1067_v4 = vmul.f32 %v1057_v15, %v4467_v41  ;;  %v1069_v5 = vmul.f32 %v1065_v24, %v4470_v42  ;;  %v1207_v41 = vld [vmem:[#allocation5 + $0x238] sm:$0xff]  ;;  %v3736_v59 = vpack.c.bf16 %v1202_v40, %v1200_v37  ;;  %v1217_v15 = vld [vmem:[#allocation5 + $0x288] sm:$0xff]  ;;  %v3748_v24 = vpack.c.bf16 %v1214_v14, %v1212_v7 }
 0x4e5   :  { %v1093_v13 = vmul.f32 %v1076_v0, %v1066_v28  ;;  %v1095_v21 = vmul.f32 %v1084_v2, %v1068_v43  ;;  %v3738_v60 = vpack.c.bf16 %v1207_v41, %v1205_v48  ;;  %v1215_v0 = vld [vmem:[#allocation5 + $0x278] sm:$0xff]  ;;  %v1216_v28 = vld [vmem:[#allocation5 + $0x280] sm:$0xff]  ;;  %v1221_v43 = vld [vmem:[#allocation5 + $0x2a8] sm:$0xff] }
 0x4e6   :  { %v1094_v22 = vmul.f32 %v1080_v20, %v1067_v4  ;;  %v1096_v25 = vmul.f32 %v1088_v27, %v1069_v5  ;;  %v3746_v2 = vpack.c.bf16 %v1215_v0, %v1213_v58  ;;  %v1219_v20 = vld [vmem:[#allocation5 + $0x298] sm:$0xff]  ;;  %v1229_v37 = vld [vmem:[#allocation5 + $0x2e8] sm:$0xff]  ;;  %v1228_v48 = vld [vmem:[#allocation5 + $0x2e0] sm:$0xff] }
 0x4e7   :  { %v1120_v34 = vadd.f32 %v1103_v39, %v1093_v13  ;;  %v4545_v35 = vadd.f32 %v1111_v47, %v1095_v21  ;;  %v3750_v27 = vpack.c.bf16 %v1219_v20, %v1217_v15  ;;  %v1218_v39 = vld [vmem:[#allocation5 + $0x290] sm:$0xff]  ;;  %v1223_v47 = vld [vmem:[#allocation5 + $0x2b8] sm:$0xff]  ;;  %v1225_v13 = vld [vmem:[#allocation5 + $0x2c8] sm:$0xff] }
 0x4e8   :  { %v1121_v36 = vadd.f32 %v1107_v8, %v1094_v22  ;;  %v1123_v38 = vadd.f32 %v1115_v9, %v1096_v25  ;;  %v3752_v4 = vpack.c.bf16 %v1218_v39, %v1216_v28  ;;  %v3754_v5 = vpack.c.bf16 %v1223_v47, %v1221_v43  ;;  %v1220_v8 = vld [vmem:[#allocation5 + $0x2a0] sm:$0xff]  ;;  %v1222_v9 = vld [vmem:[#allocation5 + $0x2b0] sm:$0xff]  ;;  %v1227_v21 = vld [vmem:[#allocation5 + $0x2d8] sm:$0xff] }
 0x4e9   :  { %v1128_v57 = vmul.f32 0.2, %v1120_v34  ;;  %vm1124_vm3 = vcmp.gt.f32.partialorder %v1120_v34, 0.0  ;;  %v3756_v22 = vpack.c.bf16 %v1222_v9, %v1220_v8  ;;  %v3758_v25 = vpack.c.bf16 %v1227_v21, %v1225_v13  ;;  %v1231_v40 = vld [vmem:[#allocation5 + $0x2f8] sm:$0xff]  ;;  %v1230_v41 = vld [vmem:[#allocation5 + $0x2f0] sm:$0xff]  ;;  %v1240_v0 = vld [vmem:[#allocation5 + $0x340] sm:$0xff] }
 0x4ea   :  { %vm1125_vm2 = vcmp.gt.f32.partialorder %v1121_v36, 0.0  ;;  %v1129_v42 = vmul.f32 0.2, %v1121_v36  ;;  %v1131_v51 = vmul.f32 0.2, %v1123_v38  ;;  %vm1127_vm4 = vcmp.gt.f32.partialorder %v1123_v38, 0.0 }
 0x4eb   :  { %v1132_v17 = vsel %vm1124_vm3, %v1120_v34, %v1128_v57  ;;  %v1224_v34 = vld [vmem:[#allocation5 + $0x2c0] sm:$0xff]  ;;  %v3762_v57 = vpack.c.bf16 %v1231_v40, %v1229_v37  ;;  %v1247_v7 = vld [vmem:[#allocation5 + $0x378] sm:$0xff]  ;;  %vm1126_vm5 = vcmp.gt.f32.partialorder %v4545_v35, 0.0  ;;  %vm2559_vm3 = vcmask 1043456  }
 0x4ec   :  { %v1133_v56 = vsel %vm1125_vm2, %v1121_v36, %v1129_v42  ;;  %v1135_v30 = vsel %vm1127_vm4, %v1123_v38, %v1131_v51  ;;  %v1226_v36 = vld [vmem:[#allocation5 + $0x2d0] sm:$0xff]  ;;  %v1233_v42 = vld [vmem:[#allocation5 + $0x308] sm:$0xff]  ;;  %v1235_v51 = vld [vmem:[#allocation5 + $0x318] sm:$0xff] }
 0x4ed   :  { %1341 = vmatprep.mubr.f32.mxu0 %v1133_v56  ;;  %v3760_v38 = vpack.c.bf16 %v1226_v36, %v1224_v34  ;;  %v3766_v56 = vpack.c.bf16 %v1235_v51, %v1233_v42  ;;  %v1244_v20 = vld [vmem:[#allocation5 + $0x360] sm:$0xff]  ;;  %v1251_v28 = vld [vmem:[#allocation5 + $0x398] sm:$0xff] }
 0x4ee   :  { %1342 = vmatmul.mubr.f32.vlgmr.msra.gmra.mrb[10].mxu0 %v1132_v17  ;;  %v1239_v17 = vld [vmem:[#allocation5 + $0x338] sm:$0xff]  ;;  %v1248_v47 = vld [vmem:[#allocation5 + $0x380] sm:$0xff] }
 0x4ef   :  { %3737 = vmatpush1.bf16.msra.mxu0 %v3736_v59  ;;  %1412 = vmatprep.mubr.f32.mxu0 %v1135_v30  ;;  %v3764_v59 = vpack.c.bf16 %v1230_v41, %v1228_v48  ;;  %v3770_v29 = vpack.c.bf16 %v1239_v17, %v1237_v10  ;;  %v1236_v30 = vld [vmem:[#allocation5 + $0x320] sm:$0xff]  ;;  %v1255_v8 = vld [vmem:[#allocation5 + $0x3b8] sm:$0xff] }
 0x4f0   :  { %3739 = vmatprep.subr.bf16.mxu0 %v3738_v60  ;;  %v1232_v60 = vld [vmem:[#allocation5 + $0x300] sm:$0xff]  ;;  %v1259_v34 = vld [vmem:[#allocation5 + $0x3d8] sm:$0xff] }
 0x4f1   :  { %v3768_v18 = vpack.c.bf16 %v1234_v6, %v1232_v60  ;;  %v1252_v21 = vld [vmem:[#allocation5 + $0x3a0] sm:$0xff]  ;;  %v1263_v48 = vld [vmem:[#allocation5 + $0x3f8] sm:$0xff]  ;;  %v1130_v60 = vmul.f32 0.2, %v4545_v35 }
 0x4f2   :  { %v1256_v40 = vld [vmem:[#allocation5 + $0x3c0] sm:$0xff]  ;;  %v1449_v10 = vld [vmem:[#allocation7 + $0x478] sm:$0xff] }
 0x4f3   :  { %3741 = vmatpush1.bf16.msra.mxu0 %v3740_v46  ;;  %v1238_v46 = vld [vmem:[#allocation5 + $0x330] sm:$0xff]  ;;  %v1260_v51 = vld [vmem:[#allocation5 + $0x3e0] sm:$0xff]  ;;  %v1134_v6 = vsel %vm1126_vm5, %v4545_v35, %v1130_v60  ;;  %v1452_v35 = vld [vmem:[#allocation5 + $0x708] sm:$0xff] }
 0x4f4   :  { %3743 = vmatprep.subr.bf16.mxu0 %v3742_v52  ;;  %v1241_v52 = vld [vmem:[#allocation5 + $0x348] sm:$0xff]  ;;  %v3772_v54 = vpack.c.bf16 %v1238_v46, %v1236_v30  ;;  %v1450_v17 = vld [vmem:[#allocation7 + $0x480] sm:$0xff] }
 0x4f5   :  { %v3774_v58 = vpack.c.bf16 %v1243_v53, %v1241_v52  ;;  %v1434_v30 = vld [vmem:[#allocation7 + $0x400] sm:$0xff]  ;;  %v1265_v52 = vld [vmem:[#allocation5 + $0x730] ss:$8 sm:$0x3] }
 0x4f6   :  { %v1274_v53 = vrot.slane %v1265_v52, %v4386_v50 }
 0x4f7   :  { %3745 = vmatpush1.bf16.msra.mxu0 %v3744_v1  ;;  %v1242_v1 = vld [vmem:[#allocation5 + $0x350] sm:$0xff] }
 0x4f8   :  { %3747 = vmatprep.subr.bf16.mxu0 %v3746_v2  ;;  %v1245_v2 = vld [vmem:[#allocation5 + $0x368] sm:$0xff]  ;;  %v3776_v14 = vpack.c.bf16 %v1242_v1, %v1240_v0 }
 0x4f9   :  { %v3778_v15 = vpack.c.bf16 %v1247_v7, %v1245_v2  ;;  %v1454_v7 = vld [vmem:[#allocation5 + $0x718] sm:$0xff] }
 0x4fb   :  { %3749 = vmatpush1.bf16.msra.mxu0 %v3748_v24  ;;  %v1246_v24 = vld [vmem:[#allocation5 + $0x370] sm:$0xff] }
 0x4fc   :  { %3751 = vmatprep.subr.bf16.mxu0 %v3750_v27  ;;  %v1249_v27 = vld [vmem:[#allocation5 + $0x388] sm:$0xff]  ;;  %v3780_v39 = vpack.c.bf16 %v1246_v24, %v1244_v20  ;;  %v1453_v20 = vld [vmem:[#allocation5 + $0x710] sm:$0xff] }
 0x4fd   :  { %v3782_v43 = vpack.c.bf16 %v1251_v28, %v1249_v27 }
 0x4ff   :  { %3753 = vmatpush1.bf16.msra.mxu0 %v3752_v4  ;;  %v1250_v4 = vld [vmem:[#allocation5 + $0x390] sm:$0xff] }
 0x500   :  { %3755 = vmatprep.subr.bf16.mxu0 %v3754_v5  ;;  %v1253_v5 = vld [vmem:[#allocation5 + $0x3a8] sm:$0xff]  ;;  %v3784_v9 = vpack.c.bf16 %v1250_v4, %v1248_v47 }
 0x501   :  { %v3786_v13 = vpack.c.bf16 %v1255_v8, %v1253_v5 }
 0x503   :  { %3757 = vmatpush1.bf16.msra.mxu0 %v3756_v22  ;;  %v1254_v22 = vld [vmem:[#allocation5 + $0x3b0] sm:$0xff] }
 0x504   :  { %3759 = vmatprep.subr.bf16.mxu0 %v3758_v25  ;;  %v1257_v25 = vld [vmem:[#allocation5 + $0x3c8] sm:$0xff]  ;;  %v3788_v36 = vpack.c.bf16 %v1254_v22, %v1252_v21 }
 0x505   :  { %v3790_v37 = vpack.c.bf16 %v1259_v34, %v1257_v25 }
 0x507   :  { %3761 = vmatpush1.bf16.msra.mxu0 %v3760_v38  ;;  %v1258_v38 = vld [vmem:[#allocation5 + $0x3d0] sm:$0xff] }
 0x508   :  { %3763 = vmatprep.subr.bf16.mxu0 %v3762_v57  ;;  %v1261_v57 = vld [vmem:[#allocation5 + $0x3e8] sm:$0xff]  ;;  %v3792_v41 = vpack.c.bf16 %v1258_v38, %v1256_v40 }
 0x509   :  { %v3794_v42 = vpack.c.bf16 %v1263_v48, %v1261_v57 }
 0x50b   :  { %3765 = vmatpush1.bf16.msra.mxu0 %v3764_v59  ;;  %v1262_v59 = vld [vmem:[#allocation5 + $0x3f0] sm:$0xff] }
 0x50c   :  { %3767 = vmatprep.subr.bf16.mxu0 %v3766_v56  ;;  %v3796_v56 = vpack.c.bf16 %v1262_v59, %v1260_v51  ;;  %v1839_v51 = vld [vmem:[#allocation7 + $0x90] sm:$0xff]  ;;  %v1840_v59 = vld [vmem:[#allocation7 + $0x98] sm:$0xff] }
 0x50d   :  { %v3874_v60 = vpack.c.bf16 %v1840_v59, %v1839_v51 }
 0x50f   :  { %3769 = vmatpush1.bf16.msra.mxu0 %v3768_v18  ;;  %v3826_v18 = vpack.c.bf16 %v1450_v17, %v1449_v10  ;;  %v1824_v10 = vld [vmem:[#allocation7 + $0x18] sm:$0xff] }
 0x510   :  { %3771 = vmatprep.subr.bf16.mxu0 %v3770_v29  ;;  %v1433_v29 = vld [vmem:[#allocation7 + $0x3f8] sm:$0xff] }
 0x511   :  { %v3828_v46 = vpack.c.bf16 %v1434_v30, %v1433_v29  ;;  %3827 = vmatprep.subr.bf16.mxu1 %v3826_v18  ;;  %v1842_v29 = vld [vmem:[#allocation7 + $0xa8] sm:$0xff] }
 0x513   :  { %3773 = vmatpush1.bf16.msra.mxu0 %v3772_v54  ;;  %3829 = vmatpush3.bf16.msra.mxu1 %v3828_v46  ;;  %v1270_v54 = vrot.slane %v1265_v52, %v4389_v55  ;;  %v1825_v52 = vld [vmem:[#allocation7 + $0x20] sm:$0xff] }
 0x514   :  { %3775 = vmatprep.subr.bf16.mxu0 %v3774_v58 }
 0x517   :  { %3777 = vmatpush1.bf16.msra.mxu0 %v3776_v14  ;;  %v3830_v14 = vpack.c.bf16 %v1454_v7, %v1452_v35  ;;  %v1828_v35 = vld [vmem:[#allocation7 + $0x38] sm:$0xff]  ;;  %v1845_v7 = vld [vmem:[#allocation7 + $0xc0] sm:$0xff] }
 0x518   :  { %3779 = vmatprep.subr.bf16.mxu0 %v3778_v15  ;;  %v1451_v15 = vld [vmem:[#allocation5 + $0x700] sm:$0xff] }
 0x519   :  { %v3832_v24 = vpack.c.bf16 %v1453_v20, %v1451_v15  ;;  %3831 = vmatprep.subr.bf16.mxu1 %v3830_v14 }
 0x51b   :  { %3781 = vmatpush1.bf16.msra.mxu0 %v3780_v39 }
 0x51c   :  { %3783 = vmatprep.subr.bf16.mxu0 %v3782_v43 }
 0x51f   :  { %3785 = vmatpush1.bf16.msra.mxu0 %v3784_v9 }
 0x520   :  { %3787 = vmatprep.subr.bf16.mxu0 %v3786_v13 }
 0x523   :  { %3789 = vmatpush1.bf16.msra.mxu0 %v3788_v36 }
 0x524   :  { %3791 = vmatprep.subr.bf16.mxu0 %v3790_v37 }
 0x527   :  { %3793 = vmatpush1.bf16.msra.mxu0 %v3792_v41  ;;  %v1821_v41 = vld [vmem:[#allocation7] sm:$0xff] }
 0x528   :  { %3795 = vmatprep.subr.bf16.mxu0 %v3794_v42  ;;  %v1822_v42 = vld [vmem:[#allocation7 + $0x8] sm:$0xff] }
 0x52b   :  { %3797 = vmatpush1.bf16.msra.mxu0 %v3796_v56  ;;  %v3872_v56 = vpack.c.bf16 %v1822_v42, %v1821_v41 }
 0x52e   :  { %1413 = vmatmul.mubr.f32.vlgmr.msra.gmra.mrb[10].mxu0 %v1134_v6  ;;  %v1823_v6 = vld [vmem:[#allocation7 + $0x10] sm:$0xff] }
 0x52f   :  { %v3876_v30 = vpack.c.bf16 %v1824_v10, %v1823_v6  ;;  %3395 = vmatprep.mubr.msk.f32.mxu0 %vm4206_vm10, %v4204_v26 }
 0x601   :  { %v1414_v58 = vpop.f32.mrb[10].mxu0 }
 0x602   :  { %v1416_v0 = vpop.f32.mrb[11].mxu0  ;;  %v4074_v2 = vadd.f32 %v1414_v58, %v1270_v54  ;;  %v1843_v54 = vld [vmem:[#allocation7 + $0xb0] sm:$0xff]  ;;  %v1844_v58 = vld [vmem:[#allocation7 + $0xb8] sm:$0xff] }
 0x603   :  { %v4075_v1 = vadd.f32 %v1416_v0, %v1274_v53  ;;  %v1826_v53 = vld [vmem:[#allocation7 + $0x28] sm:$0xff] }
 0x604   :  { %v3880_v0 = vpack.c.bf16 %v1826_v53, %v1825_v52  ;;  %v4601_v52 = vld [vmem:[%s4701_s1 + $0x4] sm:$0x3]  ;;  %s4208_s1 = smov 4  }
 0x605   :  { %1519 = vmatprep.mubr.f32.mxu1 %v4075_v1  ;;  %v2086_v53 = vadd.f32 1e-20, %v4601_v52 }
 0x606   :  { %1520 = vmatmul.mubr.f32.vlgmr.msra.gmra.mrb[10].mxu1 %v4074_v2 }
 0x607   :  { %1602 = vmatprep.mubr.f32.mxu1 %v4204_v26  ;;  %3833 = vmatpush1.bf16.msra.mxu1 %v3832_v24 }
 0x608   :  { %3835 = vmatprep.subr.bf16.mxu1 %v4487_v16 }
 0x6d9   :  { %v3232_v27 = vpop.f32.mrb[10].mxu1 }
 0x6da   :  { %v3233_v28 = vpop.f32.mrb[11].mxu1 }
 0x6db   :  { %v3234_v39 = vadd.f32 %v3233_v28, %v3232_v27  ;;  %v1830_v27 = vld [vmem:[#allocation7 + $0x48] sm:$0xff] }
 0x6dd   :  { %v1526_v43 = vsel %vm1525_vm6, %v3234_v39, 0.0  ;;  %v1847_v39 = vld [vmem:[#allocation7 + $0xd0] sm:$0xff] }
 0x6de   :  { %v1527_v47 = vrot.slane %v1526_v43, 4 }
 0x6e0   :  { %v1528_v4 = vadd.f32 %v1527_v47, %v1526_v43  ;;  %v1848_v43 = vld [vmem:[#allocation7 + $0xd8] sm:$0xff] }
 0x6e1   :  { %v3890_v47 = vpack.c.bf16 %v1848_v43, %v1847_v39  ;;  %v3043_v39 = vld [vmem:[#allocation7 + $0x100] ss:$0 sm:$0xff] }
 0x6e2   :  { %v1529_v5 = vrot.slane %v1528_v4, 2 }
 0x6e4   :  { %v1530_v8 = vadd.f32 %v1529_v5, %v1528_v4  ;;  %v1831_v4 = vld [vmem:[#allocation7 + $0x50] sm:$0xff]  ;;  %v1832_v5 = vld [vmem:[#allocation7 + $0x58] sm:$0xff] }
 0x6e6   :  { %v1531_v9 = vrot.slane %v1530_v8, 1 }
 0x6e8   :  { %v1532_v13 = vadd.f32 %v1531_v9, %v1530_v8  ;;  %v3892_v8 = vpack.c.bf16 %v1832_v5, %v1831_v4  ;;  %v1849_v9 = vld [vmem:[#allocation7 + $0xe0] sm:$0xff] }
 0x6ea   :  { %v1533_v21 = vmul.f32 0.03125, %v1532_v13  ;;  %v1850_v13 = vld [vmem:[#allocation7 + $0xe8] sm:$0xff] }
 0x6ec   :  { %3041 = vmatmul.mubr.msk.f32.vlgmr.msra.gmra.mrb[12].mxu1 %vm1534_vm7, %v1533_v21  ;;  %v3894_v21 = vpack.c.bf16 %v1850_v13, %v1849_v9 }
 0x6ed   :  { %3837 = vmatpush3.bf16.msra.mxu1 %v4489_v63 }
 0x6ee   :  { %3839 = vmatprep.subr.bf16.mxu1 %v4491_v3 }
 0x6f1   :  { %3841 = vmatpush3.bf16.msra.mxu1 %v4495_v11 }
 0x6f2   :  { %3843 = vmatprep.subr.bf16.mxu1 %v4498_v12 }
 0x6f5   :  { %3845 = vmatpush3.bf16.msra.mxu1 %v4501_v32 }
 0x6f6   :  { %3847 = vmatprep.subr.bf16.mxu1 %v4504_v33 }
 0x6f9   :  { %3849 = vmatpush3.bf16.msra.mxu1 %v4507_v44 }
 0x6fa   :  { %3851 = vmatprep.subr.bf16.mxu1 %v4510_v45  ;;  %v1837_v45 = vld [vmem:[#allocation7 + $0x80] sm:$0xff] }
 0x6fd   :  { %3853 = vmatpush3.bf16.msra.mxu1 %v4513_v61  ;;  %v1838_v61 = vld [vmem:[#allocation7 + $0x88] sm:$0xff] }
 0x6fe   :  { %3855 = vmatprep.subr.bf16.mxu1 %v4516_v62  ;;  %v3870_v62 = vpack.c.bf16 %v1838_v61, %v1837_v45  ;;  %v1836_v61 = vld [vmem:[#allocation7 + $0x78] sm:$0xff] }
 0x701   :  { %3857 = vmatpush3.bf16.msra.mxu1 %v4519_v19 }
 0x702   :  { %3859 = vmatprep.subr.bf16.mxu1 %v4522_v23 }
 0x705   :  { %3861 = vmatpush3.bf16.msra.mxu1 %v4525_v31 }
 0x706   :  { %3863 = vmatprep.subr.bf16.mxu1 %v3826_v18  ;;  %v1841_v18 = vld [vmem:[#allocation7 + $0xa0] sm:$0xff] }
 0x709   :  { %3865 = vmatpush3.bf16.msra.mxu1 %v3828_v46  ;;  %v3878_v46 = vpack.c.bf16 %v1842_v29, %v1841_v18  ;;  %v4205_v29 = vmov 0.0|0.0  }
 0x70a   :  { %3867 = vmatprep.subr.bf16.mxu1 %v3830_v14  ;;  %v1846_v14 = vld [vmem:[#allocation7 + $0xc8] sm:$0xff]  ;;  %3902 = vmatprep.subr.bf16.mxu0 %v4205_v29 }
 0x70b   :  { %v3886_v20 = vpack.c.bf16 %v1846_v14, %v1845_v7 }
 0x7bf   :  { %v1604_v16 = vpop.f32.mrb[12].mxu1 }
 0x7c0   :  { %v1612_v63 = vrot.slane %v1604_v16, %v4389_v55  ;;  %v1606_v3 = vpop.f32.mrb[13].mxu1  ;;  %v1833_v16 = vld [vmem:[#allocation7 + $0x60] sm:$0xff] }
 0x7c1   :  { %v1616_v11 = vrot.slane %v1606_v3, %v4389_v55 }
 0x7c2   :  { %v4571_v12 = vsub.f32 %v4074_v2, %v1612_v63  ;;  %v1827_v2 = vld [vmem:[#allocation7 + $0x30] sm:$0xff]  ;;  %v1834_v63 = vld [vmem:[#allocation7 + $0x68] sm:$0xff] }
 0x7c3   :  { %v4573_v32 = vsub.f32 %v4075_v1, %v1616_v11  ;;  %v3882_v1 = vpack.c.bf16 %v1844_v58, %v1843_v54  ;;  %v3884_v15 = vpack.c.bf16 %v1828_v35, %v1827_v2  ;;  %v3896_v3 = vpack.c.bf16 %v1834_v63, %v1833_v16  ;;  %v1851_v11 = vld [vmem:[#allocation7 + $0xf0] sm:$0xff] }
 0x7c4   :  { %v1619_v44 = vmul.f32 %v4571_v12, %v4571_v12  ;;  %v4207_v2 = vmov 1983009808  }
 0x7c5   :  { %v1620_v33 = vmul.f32 %v4573_v32, %v4573_v32  ;;  %v2054_v35 = vunpack.c.l.s4 %v4207_v2 }
 0x7c7   :  { %1685 = vmatprep.mubr.f32.mxu1 %v1620_v33  ;;  %v1852_v33 = vld [vmem:[#allocation7 + $0xf8] sm:$0xff]  ;;  %v2055_v7 = vunpack.c.0.s8 %v2054_v35 }
 0x7c8   :  { %1686 = vmatmul.mubr.f32.vlgmr.msra.gmra.mrb[14].mxu1 %v1619_v44  ;;  %v1835_v44 = vld [vmem:[#allocation7 + $0x70] sm:$0xff]  ;;  %v3898_v45 = vpack.c.bf16 %v1852_v33, %v1851_v11 }
 0x7c9   :  { %3869 = vmatpush1.bf16.msra.mxu1 %v3832_v24  ;;  %1768 = vmatprep.mubr.f32.mxu1 %v4204_v26  ;;  %v1829_v24 = vld [vmem:[#allocation7 + $0x40] sm:$0xff] }
 0x7ca   :  { %3871 = vmatprep.subr.bf16.mxu1 %v3870_v62  ;;  %v3888_v28 = vpack.c.bf16 %v1830_v27, %v1829_v24  ;;  %v3900_v62 = vpack.c.bf16 %v1836_v61, %v1835_v44 }
 0x89b   :  { %v3267_v19 = vpop.f32.mrb[14].mxu1 }
 0x89c   :  { %v3268_v23 = vpop.f32.mrb[15].mxu1 }
 0x89d   :  { %v3269_v31 = vadd.f32 %v3268_v23, %v3267_v19  ;;  %v1786_v19 = vld [vmem:[#allocation5 + $0x740] ss:$8 sm:$0x3] }
 0x89f   :  { %v1691_v22 = vsel %vm1525_vm6, %v3269_v31, 0.0  ;;  %v1801_v31 = vld [vmem:[#allocation5 + $0x750] ss:$8 sm:$0x3]  ;;  %vm3004_vm6 = vcmask 97280  }
 0x8a0   :  { %v1692_v25 = vrot.slane %v1691_v22, 4 }
 0x8a2   :  { %v1693_v34 = vadd.f32 %v1692_v25, %v1691_v22  ;;  %v1791_v25 = vrot.slane %v1786_v19, %v4389_v55 }
 0x8a4   :  { %v1694_v36 = vrot.slane %v1693_v34, 2 }
 0x8a6   :  { %v1695_v37 = vadd.f32 %v1694_v36, %v1693_v34 }
 0x8a8   :  { %v1696_v40 = vrot.slane %v1695_v37, 1 }
 0x8aa   :  { %v1697_v38 = vadd.f32 %v1696_v40, %v1695_v37  ;;  %v1795_v37 = vrot.slane %v1786_v19, %v4386_v50 }
 0x8ac   :  { %v1698_v57 = vmul.f32 0.03125, %v1697_v38  ;;  %v1806_v38 = vrot.slane %v1801_v31, %v4389_v55 }
 0x8ae   :  { %v1699_v48 = vadd.f32 1e-05, %v1698_v57 }
 0x8b0   :  { %4097 = vrsqrt.f32 %v1699_v48  ;;  %v1810_v48 = vrot.slane %v1801_v31, %v4386_v50 }
 0x8b1   :  { %4099 = vlog2.f32 %v2086_v53 }
 0x8ba   :  { %v4098_v17 = vpop.eup %4097 }
 0x8bb   :  { %3042 = vmatmul.mubr.msk.f32.vlgmr.msra.gmra.mrb[16].mxu1 %vm1534_vm7, %v4098_v17  ;;  %v1966_v17 = vld [vmem:[#allocation7 + $0x118] sm:$0xff]  ;;  %v4100_v54 = vpop.eup %4099 }
 0x8bc   :  { %3873 = vmatpush3.bf16.msra.mxu1 %v3872_v56  ;;  %v2088_v58 = vmul.f32 0.6931472, %v4100_v54 }
 0x8bd   :  { %3875 = vmatprep.subr.bf16.mxu1 %v3874_v60 }
 0x8c0   :  { %3877 = vmatpush3.bf16.msra.mxu1 %v3876_v30  ;;  %v1969_v30 = vld [vmem:[#allocation7 + $0x130] sm:$0xff] }
 0x8c1   :  { %3879 = vmatprep.subr.bf16.mxu1 %v3878_v46 }
 0x8c4   :  { %3881 = vmatpush3.bf16.msra.mxu1 %v3880_v0  ;;  %v2089_v0 = vsub.f32 0.0, %v2088_v58 }
 0x8c5   :  { %3883 = vmatprep.subr.bf16.mxu1 %v3882_v1 }
 0x8c6   :  { %v2090_v1 = vadd.f32 1e-20, %v2089_v0 }
 0x8c8   :  { %3885 = vmatpush3.bf16.msra.mxu1 %v3884_v15  ;;  %4101 = vlog2.f32 %v2090_v1  ;;  %v4605_v15 = vsub.s32 %v2055_v7, %v4383_v49 }
 0x8c9   :  { %3887 = vmatprep.subr.bf16.mxu1 %v3886_v20 }
 0x8cc   :  { %3889 = vmatpush3.bf16.msra.mxu1 %v3888_v28 }
 0x8cd   :  { %3891 = vmatprep.subr.bf16.mxu1 %v3890_v47 }
 0x8d0   :  { %3893 = vmatpush3.bf16.msra.mxu1 %v3892_v8 }
 0x8d1   :  { %3895 = vmatprep.subr.bf16.mxu1 %v3894_v21 }
 0x8d2   :  { %v4102_v14 = vpop.eup %4101 }
 0x8d3   :  { %v2092_v20 = vmul.f32 0.6931472, %v4102_v14  ;;  %v2131_v14 = vld [vmem:[#allocation7 + $0x140] sm:$0xff] }
 0x8d4   :  { %3897 = vmatpush3.bf16.msra.mxu1 %v3896_v3 }
 0x8d5   :  { %3899 = vmatprep.subr.bf16.mxu1 %v3898_v45  ;;  %v2093_v24 = vsub.f32 0.0, %v2092_v20 }
 0x8d7   :  { %v2101_v27 = vrot.slane %v2093_v24, %v4605_v15 }
 0x8d8   :  { %3901 = vmatpush3.bf16.msra.mxu1 %v3900_v62 }
 0x8d9   :  { %3398 = vmatprep.subr.mxu1 %v4204_v26  ;;  %2102 = vrot.lane.b32.xlu0 %v2101_v27, %s4208_s1 }
 0x98e   :  { %v1770_v23 = vpop.f32.mrb[16].mxu1 }
 0x98f   :  { %v1778_v22 = vrot.slane %v1770_v23, %v4389_v55  ;;  %v1772_v34 = vpop.f32.mrb[17].mxu1 }
 0x990   :  { %v1782_v36 = vrot.slane %v1772_v34, %v4389_v55  ;;  %v3044_v34 = vld [vmem:[#allocation7 + $0x108] ss:$0 sm:$0xff] }
 0x991   :  { %v1783_v40 = vmul.f32 %v1778_v22, %v4571_v12  ;;  %v1967_v12 = vld [vmem:[#allocation7 + $0x120] sm:$0xff] }
 0x992   :  { %v1784_v57 = vmul.f32 %v1782_v36, %v4573_v32  ;;  %v3903_v18 = vpack.c.bf16 %v1967_v12, %v1966_v17  ;;  %v1968_v32 = vld [vmem:[#allocation7 + $0x128] sm:$0xff] }
 0x993   :  { %v1798_v41 = vmul.f32 %v1791_v25, %v1783_v40  ;;  %v3906_v46 = vpack.c.bf16 %v1969_v30, %v1968_v32 }
 0x994   :  { %v1799_v42 = vmul.f32 %v1795_v37, %v1784_v57  ;;  %3904 = vmatpush3.bf16.msra.mxu0 %v3903_v18  ;;  %v3045_v37 = vld [vmem:[#allocation7 + $0x110] ss:$0 sm:$0xff]  ;;  %v2059_v18 = vrot.slane %v4601_v52, %v4605_v15 }
 0x995   :  { %v1813_v51 = vadd.f32 %v1806_v38, %v1798_v41  ;;  %3905 = vmatprep.subr.bf16.mxu0 %v4205_v29  ;;  %v2107_v41 = vstv %s4700_s0  ;;  %s4209_s0 = smov 120  }
 0x996   :  { %v1814_v59 = vadd.f32 %v1810_v48, %v1799_v42  ;;  %v3046_v42 = vld [vmem:[#allocation7 + $0x138] ss:$0 sm:$0xff] }
 0x997   :  { %v1817_v56 = vmul.f32 0.2, %v1813_v51  ;;  %vm1815_vm9 = vcmp.gt.f32.partialorder %v1813_v51, 0.0 }
 0x998   :  { %vm1816_vm8 = vcmp.gt.f32.partialorder %v1814_v59, 0.0  ;;  %v1818_v60 = vmul.f32 0.2, %v1814_v59  ;;  %3907 = vmatpush3.bf16.msra.mxu0 %v3906_v46 }
 0x999   :  { %v1819_v10 = vsel %vm1815_vm9, %v1813_v51, %v1817_v56  ;;  %3908 = vmatprep.subr.bf16.mxu0 %v4205_v29 }
 0x99a   :  { %v1820_v6 = vsel %vm1816_vm8, %v1814_v59, %v1818_v60  ;;  %v2103_v59 = vpop.permute.xlu0 %2102  ;;  %vm3007_vm8 = vcmask 162816  }
 0x99b   :  { %1922 = vmatprep.mubr.f32.mxu1 %v1820_v6 }
 0x99c   :  { %1923 = vmatmul.mubr.f32.vlgmr.msra.gmra.mrb[18].mxu1 %v1819_v10 }
 0x99d   :  { %3400 = vmatprep.mubr.msk.f32.mxu1 %vm4206_vm10, %v4204_v26  ;;  %3399 = vmatpush3.msra.mxu1 %v2131_v14  ;;  %v2354_v14 = vld [vmem:[#allocation5 + $0x4d0] sm:$0xff] }
 0xa6f   :  { %v3302_v28 = vpop.f32.mrb[18].mxu1 }
 0xa70   :  { %v3303_v43 = vpop.f32.mrb[19].mxu1 }
 0xa71   :  { %v3304_v47 = vadd.f32 %v3303_v43, %v3302_v28 }
 0xa73   :  { %v1925_v4 = vadd.f32 %v3304_v47, %v3043_v39 }
 0xa75   :  { %v1929_v5 = vsel %vm1928_vm11, %v1925_v4, 0.0 }
 0xa76   :  { %v1930_v8 = vrot.slane %v1929_v5, 4 }
 0xa78   :  { %v1931_v9 = vadd.f32 %v1930_v8, %v1929_v5 }
 0xa7a   :  { %v1932_v13 = vrot.slane %v1931_v9, 2 }
 0xa7c   :  { %v1933_v49 = vadd.f32 %v1932_v13, %v1931_v9 }
 0xa7e   :  { %v1934_v21 = vrot.slane %v1933_v49, 1 }
 0xa80   :  { %v1935_v16 = vadd.f32 %v1934_v21, %v1933_v49  ;;  %v2246_v21 = vld [vmem:[#allocation7 + $0x160] sm:$0xff] }
 0xa82   :  { %v1937_v63 = vmul.f32 0.5, %v1935_v16  ;;  %v2247_v16 = vld [vmem:[#allocation7 + $0x168] sm:$0xff] }
 0xa84   :  { %v1938_v3 = vsub.f32 %v1925_v4, %v1937_v63  ;;  %v3909_v63 = vpack.c.bf16 %v2247_v16, %v2246_v21 }
 0xa86   :  { %v1939_v11 = vmul.f32 %v1938_v3, %v1938_v3 }
 0xa88   :  { %v1940_v33 = vsel %vm1928_vm11, %v1939_v11, 0.0  ;;  %v2249_v11 = vld [vmem:[#allocation7 + $0x178] sm:$0xff] }
 0xa89   :  { %v1941_v44 = vrot.slane %v1940_v33, 4 }
 0xa8b   :  { %v1942_v45 = vadd.f32 %v1941_v44, %v1940_v33  ;;  %v2329_v44 = vld [vmem:[#allocation5 + $0x408] sm:$0xff] }
 0xa8d   :  { %v1943_v61 = vrot.slane %v1942_v45, 2 }
 0xa8f   :  { %v1944_v62 = vadd.f32 %v1943_v61, %v1942_v45  ;;  %v2331_v45 = vld [vmem:[#allocation5 + $0x418] sm:$0xff]  ;;  %v2328_v61 = vld [vmem:[#allocation5 + $0x400] sm:$0xff] }
 0xa91   :  { %v1945_v19 = vrot.slane %v1944_v62, 1 }
 0xa93   :  { %v1946_v23 = vadd.f32 %v1945_v19, %v1944_v62  ;;  %v3914_v62 = vpack.c.bf16 %v2331_v45, %v2329_v44  ;;  %v2330_v19 = vld [vmem:[#allocation5 + $0x410] sm:$0xff] }
 0xa95   :  { %v1947_v31 = vmul.f32 0.5, %v1946_v23  ;;  %v2333_v23 = vld [vmem:[#allocation5 + $0x428] sm:$0xff]  ;;  %3915 = vmatprep.subr.bf16.mxu1 %v3914_v62 }
 0xa97   :  { %v1948_v22 = vadd.f32 1e-05, %v1947_v31  ;;  %v2335_v31 = vld [vmem:[#allocation5 + $0x438] sm:$0xff] }
 0xa99   :  { %4103 = vrsqrt.f32 %v1948_v22  ;;  %v3916_v22 = vpack.c.bf16 %v2330_v19, %v2328_v61 }
 0xa9a   :  { %4105 = vrcp.f32 %v2107_v41  ;;  %v2341_v41 = vld [vmem:[#allocation5 + $0x468] sm:$0xff] }
 0xaa3   :  { %v4104_v25 = vpop.eup %4103 }
 0xaa4   :  { %v1950_v36 = vmul.f32 %v4104_v25, %v1938_v3  ;;  %v4106_v6 = vpop.eup %4105  ;;  %v2248_v3 = vld [vmem:[#allocation7 + $0x170] sm:$0xff]  ;;  %v3918_v25 = vpack.c.bf16 %v2335_v31, %v2333_v23 }
 0xaa5   :  { %v3912_v33 = vpack.c.bf16 %v2249_v11, %v2248_v3 }
 0xaa6   :  { %v1956_v40 = vmul.f32 %v3044_v34, %v1950_v36  ;;  %v2332_v34 = vld [vmem:[#allocation5 + $0x420] sm:$0xff]  ;;  %v2334_v36 = vld [vmem:[#allocation5 + $0x430] sm:$0xff] }
 0xaa8   :  { %v1962_v38 = vadd.f32 %v3045_v37, %v1956_v40  ;;  %v2337_v37 = vld [vmem:[#allocation5 + $0x448] sm:$0xff]  ;;  %v2339_v40 = vld [vmem:[#allocation5 + $0x458] sm:$0xff] }
 0xaaa   :  { %vm1963_vm12 = vcmp.gt.f32.partialorder %v1962_v38, 0.0  ;;  %v1964_v57 = vmul.f32 0.2, %v1962_v38 }
 0xaac   :  { %v1965_v48 = vsel %vm1963_vm12, %v1962_v38, %v1964_v57  ;;  %v3922_v38 = vpack.c.bf16 %v2339_v40, %v2337_v37  ;;  %v2336_v57 = vld [vmem:[#allocation5 + $0x440] sm:$0xff]  ;;  %v3050_v37 = vld [vmem:[#allocation7 + $0x150] ss:$0 sm:$0xff] }
 0xaad   :  { %3396 = vmatmul.mubr.msk.f32.vlgmr.msra.gmra.mrb[12].mxu0 %vm1975_vm13, %v1965_v48  ;;  %v2338_v48 = vld [vmem:[#allocation5 + $0x450] sm:$0xff] }
 0xaae   :  { %3411 = vmatprep.mubr.msk.f32.mxu0 %vm4206_vm10, %v4204_v26  ;;  %3910 = vmatpush3.bf16.msra.mxu0 %v3909_v63 }
 0xaaf   :  { %3911 = vmatprep.subr.bf16.mxu0 %v4205_v29  ;;  %v3920_v29 = vpack.c.bf16 %v2334_v36, %v2332_v34 }
 0xab2   :  { %3913 = vmatpush3.bf16.msra.mxu0 %v3912_v33 }
 0xb80   :  { %v2045_v51 = vpop.f32.mrb[12].mxu0 }
 0xb81   :  { %v2046_v56 = vadd.f32 %v3046_v42, %v2045_v51  ;;  %v3397_v60 = vpop.f32.mrb[13].mxu0  ;;  %v2343_v42 = vld [vmem:[#allocation5 + $0x478] sm:$0xff]  ;;  %v3924_v51 = vpack.c.bf16 %v2338_v48, %v2336_v57 }
 0xb82   :  { %v2342_v60 = vld [vmem:[#allocation5 + $0x470] sm:$0xff] }
 0xb83   :  { %v2105_v10 = vadd.f32 %v2103_v59, %v2046_v56  ;;  %v2049_v54 = vmul.f32 0.5, %v2046_v56  ;;  %v2070_v7 = vsel %vm2069_vm14, %v2046_v56, -inf  ;;  %v3926_v59 = vpack.c.bf16 %v2343_v42, %v2341_v41  ;;  %v2356_v42 = vld [vmem:[#allocation5 + $0x4e0] sm:$0xff] }
 0xb85   :  { %v2109_v17 = vmul.f32 %v4106_v6, %v2105_v10  ;;  %v2050_v1 = vmul.f32 1.442695, %v2049_v54  ;;  %v2345_v6 = vld [vmem:[#allocation5 + $0x488] sm:$0xff]  ;;  %v2347_v10 = vld [vmem:[#allocation5 + $0x498] sm:$0xff] }
 0xb87   :  { %v2110_v12 = vsel %vm2069_vm14, %v2109_v17, -inf }
 0xb88   :  { %2111 = vmax.xlane.f32.xlu0 %v2110_v12  ;;  %v3930_v12 = vpack.c.bf16 %v2347_v10, %v2345_v6  ;;  %v2444_v6 = vld [vmem:[#allocation7 + $0x488] sm:$0xff] }
 0xb9e   :  { %2060 = vrot.lane.b32.xlu0 %v2059_v18, %s4208_s1  ;;  %v2344_v18 = vld [vmem:[#allocation5 + $0x480] sm:$0xff] }
 0xc15   :  { %v2112_v32 = vpop.xlane.xlu0 %2111 }
 0xc16   :  { %v2113_v30 = vsub.f32 %v2109_v17, %v2112_v32  ;;  %v2346_v32 = vld [vmem:[#allocation5 + $0x490] sm:$0xff] }
 0xc18   :  { %v2114_v46 = vmul.f32 1.442695, %v2113_v30  ;;  %v2349_v30 = vld [vmem:[#allocation5 + $0x4a8] sm:$0xff] }
 0xc19   :  { %v2061_v2 = vpop.permute.xlu0 %2060 }
 0xc1a   :  { %4107 = vpow2.f32 %v2114_v46  ;;  %v2351_v46 = vld [vmem:[#allocation5 + $0x4b8] sm:$0xff] }
 0xc1b   :  { %4109 = vpow2.f32 %v2050_v1  ;;  %v3934_v54 = vpack.c.bf16 %v2351_v46, %v2349_v30  ;;  %v2353_v1 = vld [vmem:[#allocation5 + $0x4c8] sm:$0xff]  ;;  %v2446_v46 = vld [vmem:[#allocation7 + $0x498] sm:$0xff] }
 0xc24   :  { %v4108_v53 = vpop.eup %4107 }
 0xc25   :  { %2117 = vrot.lane.b32.xlu1 %v4108_v53, %s4209_s0  ;;  %v4110_v52 = vpop.eup %4109 }
 0xc26   :  { %v2063_v35 = vmul.f32 %v4110_v52, %v2061_v2  ;;  %v2355_v2 = vld [vmem:[#allocation5 + $0x4d8] sm:$0xff] }
 0xc97   :  { %v2118_v58 = vpop.permute.xlu1 %2117 }
 0xc98   :  { %v2120_v0 = vsel %vm2080_vm15, %v2118_v58, 0.0  ;;  %v2348_v58 = vld [vmem:[#allocation5 + $0x4a0] sm:$0xff] }
 0xc99   :  { %2121 = vadd.xlane.f32.xlu1 %v2120_v0  ;;  %v2350_v0 = vld [vmem:[#allocation5 + $0x4b0] sm:$0xff] }
 0xc9a   :  { %v3936_v52 = vpack.c.bf16 %v2350_v0, %v2348_v58  ;;  %v2465_v58 = vld [vmem:[#allocation7 + $0x530] sm:$0xff] }
 0xcaa   :  { %2065 = vrot.lane.b32.xlu1 %v2063_v35, %s4210_s13  ;;  %v3938_v35 = vpack.c.bf16 %v2355_v2, %v2353_v1  ;;  %v2448_v2 = vld [vmem:[#allocation7 + $0x4a8] sm:$0xff] }
 0xcce   :  { %2071 = vmax.xlane.f32.xlu1 %v2070_v7  ;;  %v2352_v7 = vld [vmem:[#allocation5 + $0x4c0] sm:$0xff] }
 0xcdf   :  { %3000 = vrot.lane.b32.xlu1 %v2046_v56, %s4211_s14 }
 0xd26   :  { %v2122_v20 = vpop.xlane.xlu1 %2121 }
 0xd27   :  { %4111 = vrcp.f32 %v2122_v20  ;;  %v2357_v20 = vld [vmem:[#allocation5 + $0x4e8] sm:$0xff] }
 0xd2a   :  { %v2066_v28 = vpop.permute.xlu1 %2065 }
 0xd2b   :  { %v2068_v5 = vadd.f32 %v2066_v28, %v2046_v56 }
 0xd31   :  { %v4112_v24 = vpop.eup %4111 }
 0xd32   :  { %v2124_v27 = vmul.f32 %v4112_v24, %v4108_v53  ;;  %v3932_v53 = vpack.c.bf16 %v2346_v32, %v2344_v18  ;;  %v2359_v24 = vld [vmem:[#allocation5 + $0x4f8] sm:$0xff]  ;;  %v2463_v18 = vld [vmem:[#allocation7 + $0x520] sm:$0xff] }
 0xd33   :  { %v3942_v28 = vpack.c.bf16 %v2359_v24, %v2357_v20  ;;  %v2450_v24 = vld [vmem:[#allocation7 + $0x4b8] sm:$0xff] }
 0xd34   :  { %2126 = vrot.lane.b32.xlu0 %v2124_v27, %s4210_s13  ;;  %v3940_v27 = vpack.c.bf16 %v2354_v14, %v2352_v7  ;;  %v2467_v7 = vld [vmem:[#allocation7 + $0x540] sm:$0xff] }
 0xd5b   :  { %v2072_v39 = vpop.xlane.xlu1 %2071 }
 0xd5c   :  { %v2073_v43 = vsub.f32 %v2046_v56, %v2072_v39  ;;  %v2340_v56 = vld [vmem:[#allocation5 + $0x460] sm:$0xff]  ;;  %v3048_v39 = vld [vmem:[#allocation7 + $0x148] ss:$0 sm:$0xff] }
 0xd5d   :  { %v3928_v17 = vpack.c.bf16 %v2342_v60, %v2340_v56  ;;  %v2460_v56 = vld [vmem:[#allocation7 + $0x508] sm:$0xff]  ;;  %v2461_v60 = vld [vmem:[#allocation7 + $0x510] sm:$0xff] }
 0xd5e   :  { %v2074_v47 = vmul.f32 1.442695, %v2073_v43  ;;  %v4639_v10 = vpack.c.bf16 %v2461_v60, %v2460_v56  ;;  %v2477_v60 = vld [vmem:[#allocation5 + $0x728] sm:$0xf] }
 0xd60   :  { %4113 = vpow2.f32 %v2074_v47  ;;  %3947 = vmatprep.subr.bf16.mxu0 %v4639_v10 }
 0xd6a   :  { %v4624_v4 = vpop.eup %4113 }
 0xd6b   :  { %2077 = vrot.lane.b32.xlu0 %v4624_v4, %s4209_s0 }
 0xda6   :  { %v2127_v8 = vpop.permute.xlu0 %2126 }
 0xda7   :  { %v4629_v9 = vsel %vm2129_vm0, %v2068_v5, %v2127_v8 }
 0xda8   :  { %3401 = vmatmul.mubr.msk.f32.vlgmr.msra.gmra.mrb[20].mxu1 %vm585_vm1, %v4629_v9 }
 0xda9   :  { %2437 = vmatprep.mubr.f32.mxu1 %v4204_v26  ;;  %3917 = vmatpush1.bf16.msra.mxu1 %v3916_v22 }
 0xdaa   :  { %3919 = vmatprep.subr.bf16.mxu1 %v3918_v25 }
 0xdad   :  { %3921 = vmatpush1.bf16.msra.mxu1 %v3920_v29  ;;  %v3051_v29 = vld [vmem:[#allocation7 + $0x158] ss:$0 sm:$0xff] }
 0xdae   :  { %3923 = vmatprep.subr.bf16.mxu1 %v3922_v38 }
 0xdb1   :  { %3925 = vmatpush1.bf16.msra.mxu1 %v3924_v51  ;;  %v2358_v51 = vld [vmem:[#allocation5 + $0x4f0] sm:$0xff] }
 0xdb2   :  { %3927 = vmatprep.subr.bf16.mxu1 %v3926_v59  ;;  %v3944_v59 = vpack.c.bf16 %v2358_v51, %v2356_v42 }
 0xdb5   :  { %3929 = vmatpush1.bf16.msra.mxu1 %v3928_v17  ;;  %v2445_v17 = vld [vmem:[#allocation7 + $0x490] sm:$0xff] }
 0xdb6   :  { %3931 = vmatprep.subr.bf16.mxu1 %v3930_v12  ;;  %v2462_v12 = vld [vmem:[#allocation7 + $0x518] sm:$0xff]  ;;  %v4641_v32 = vpack.c.bf16 %v2445_v17, %v2444_v6  ;;  %v2476_v6 = vld [vmem:[#allocation5 + $0x720] sm:$0xf] }
 0xdb7   :  { %v4643_v30 = vpack.c.bf16 %v2463_v18, %v2462_v12 }
 0xdb9   :  { %3933 = vmatpush1.bf16.msra.mxu1 %v3932_v53  ;;  %v2447_v53 = vld [vmem:[#allocation7 + $0x4a0] sm:$0xff] }
 0xdba   :  { %3935 = vmatprep.subr.bf16.mxu1 %v3934_v54  ;;  %v2464_v54 = vld [vmem:[#allocation7 + $0x528] sm:$0xff]  ;;  %v4647_v0 = vpack.c.bf16 %v2447_v53, %v2446_v46 }
 0xdbb   :  { %v4650_v1 = vpack.c.bf16 %v2465_v58, %v2464_v54 }
 0xdbd   :  { %3937 = vmatpush1.bf16.msra.mxu1 %v3936_v52  ;;  %v2449_v52 = vld [vmem:[#allocation7 + $0x4b0] sm:$0xff] }
 0xdbe   :  { %3939 = vmatprep.subr.bf16.mxu1 %v3938_v35  ;;  %v2466_v35 = vld [vmem:[#allocation7 + $0x538] sm:$0xff]  ;;  %v3956_v14 = vpack.c.bf16 %v2449_v52, %v2448_v2 }
 0xdbf   :  { %v3958_v20 = vpack.c.bf16 %v2467_v7, %v2466_v35 }
 0xdc1   :  { %3941 = vmatpush1.bf16.msra.mxu1 %v3940_v27  ;;  %v2451_v27 = vld [vmem:[#allocation7 + $0x4c0] sm:$0xff] }
 0xdc2   :  { %3943 = vmatprep.subr.bf16.mxu1 %v3942_v28  ;;  %v2468_v28 = vld [vmem:[#allocation7 + $0x548] sm:$0xff] }
 0xdc5   :  { %3945 = vmatpush1.bf16.msra.mxu1 %v3944_v59 }
 0xdc6   :  { %3054 = vmatprep.subr.msk.mxu1 %vm2559_vm3, %v2477_v60 }
 0xddd   :  { %v2078_v13 = vpop.permute.xlu0 %2077 }
 0xdde   :  { %v2081_v49 = vsel %vm2080_vm15, %v2078_v13, 0.0 }
 0xddf   :  { %2082 = vadd.xlane.f32.xlu0 %v2081_v49 }
 0xe7b   :  { %v2206_v43 = vpop.f32.mrb[20].mxu1 }
 0xe7c   :  { %v2207_v47 = vadd.f32 %v3048_v39, %v2206_v43  ;;  %v3402_v5 = vpop.f32.mrb[21].mxu1  ;;  %v2469_v39 = vld [vmem:[#allocation7 + $0x550] sm:$0xff]  ;;  %v3960_v43 = vpack.c.bf16 %v2451_v27, %v2450_v24  ;;  %v2850_v27 = vld [vmem:[#allocation5 + $0x508] sm:$0xff] }
 0xe7d   :  { %v2452_v5 = vld [vmem:[#allocation7 + $0x4c8] sm:$0xff] }
 0xe7e   :  { %v2210_v8 = vsel %vm1928_vm11, %v2207_v47, 0.0 }
 0xe7f   :  { %v2211_v13 = vrot.slane %v2210_v8, 4 }
 0xe81   :  { %v2212_v49 = vadd.f32 %v2211_v13, %v2210_v8  ;;  %v2453_v8 = vld [vmem:[#allocation7 + $0x4d0] sm:$0xff]  ;;  %v2470_v13 = vld [vmem:[#allocation7 + $0x558] sm:$0xff] }
 0xe83   :  { %v2213_v21 = vrot.slane %v2212_v49, 2 }
 0xe85   :  { %v2214_v16 = vadd.f32 %v2213_v21, %v2212_v49  ;;  %v2471_v49 = vld [vmem:[#allocation7 + $0x560] sm:$0xff]  ;;  %v3964_v21 = vpack.c.bf16 %v2453_v8, %v2452_v5 }
 0xe87   :  { %v2215_v63 = vrot.slane %v2214_v16, 1 }
 0xe89   :  { %v2216_v3 = vadd.f32 %v2215_v63, %v2214_v16  ;;  %v3966_v16 = vpack.c.bf16 %v2471_v49, %v2470_v13  ;;  %v2454_v63 = vld [vmem:[#allocation7 + $0x4d8] sm:$0xff] }
 0xe8b   :  { %v2217_v11 = vmul.f32 0.5, %v2216_v3  ;;  %v2455_v3 = vld [vmem:[#allocation7 + $0x4e0] sm:$0xff] }
 0xe8d   :  { %v2218_v33 = vsub.f32 %v2207_v47, %v2217_v11  ;;  %v3962_v47 = vpack.c.bf16 %v2469_v39, %v2468_v28  ;;  %v2472_v11 = vld [vmem:[#allocation7 + $0x568] sm:$0xff] }
 0xe8f   :  { %v2219_v44 = vmul.f32 %v2218_v33, %v2218_v33 }
 0xe91   :  { %v2220_v45 = vsel %vm1928_vm11, %v2219_v44, 0.0  ;;  %v3968_v44 = vpack.c.bf16 %v2455_v3, %v2454_v63 }
 0xe92   :  { %v2221_v61 = vrot.slane %v2220_v45, 4 }
 0xe94   :  { %v2222_v62 = vadd.f32 %v2221_v61, %v2220_v45  ;;  %v2456_v61 = vld [vmem:[#allocation7 + $0x4e8] sm:$0xff] }
 0xe96   :  { %v2223_v19 = vrot.slane %v2222_v62, 2 }
 0xe98   :  { %v2224_v23 = vadd.f32 %v2223_v19, %v2222_v62  ;;  %v2457_v62 = vld [vmem:[#allocation7 + $0x4f0] sm:$0xff] }
 0xe99   :  { %v3972_v19 = vpack.c.bf16 %v2457_v62, %v2456_v61  ;;  %v2856_v61 = vld [vmem:[#allocation5 + $0x538] sm:$0xff] }
 0xe9a   :  { %v2225_v31 = vrot.slane %v2224_v23, 1 }
 0xe9c   :  { %v2226_v22 = vadd.f32 %v2225_v31, %v2224_v23  ;;  %v3052_v23 = vld [vmem:[#allocation7 + $0x180] ss:$0 sm:$0xff] }
 0xe9e   :  { %v2227_v25 = vmul.f32 0.5, %v2226_v22 }
 0xea0   :  { %v2228_v34 = vadd.f32 1e-05, %v2227_v25 }
 0xea2   :  { %4115 = vrsqrt.f32 %v2228_v34  ;;  %v2474_v34 = vld [vmem:[#allocation7 + $0x578] sm:$0xff] }
 0xeac   :  { %v4116_v36 = vpop.eup %4115 }
 0xead   :  { %v2230_v40 = vmul.f32 %v4116_v36, %v2218_v33  ;;  %v2473_v33 = vld [vmem:[#allocation7 + $0x570] sm:$0xff]  ;;  %v2475_v36 = vld [vmem:[#allocation7 + $0x580] sm:$0xff] }
 0xeae   :  { %v3970_v45 = vpack.c.bf16 %v2473_v33, %v2472_v11  ;;  %v2849_v33 = vld [vmem:[#allocation5 + $0x500] sm:$0xff] }
 0xeaf   :  { %v2236_v38 = vmul.f32 %v3050_v37, %v2230_v40  ;;  %v3974_v37 = vpack.c.bf16 %v2475_v36, %v2474_v34  ;;  %v2458_v40 = vld [vmem:[#allocation7 + $0x4f8] sm:$0xff] }
 0xeb0   :  { %v2860_v34 = vld [vmem:[#allocation5 + $0x558] sm:$0xff] }
 0xeb1   :  { %v2242_v57 = vadd.f32 %v3051_v29, %v2236_v38  ;;  %v2459_v29 = vld [vmem:[#allocation7 + $0x500] sm:$0xff] }
 0xeb2   :  { %v3976_v38 = vpack.c.bf16 %v2459_v29, %v2458_v40  ;;  %v2857_v40 = vld [vmem:[#allocation5 + $0x540] sm:$0xff]  ;;  %v2859_v29 = vld [vmem:[#allocation5 + $0x550] sm:$0xff] }
 0xeb3   :  { %vm2243_vm2 = vcmp.gt.f32.partialorder %v2242_v57, 0.0  ;;  %v2244_v48 = vmul.f32 0.2, %v2242_v57 }
 0xeb5   :  { %v2245_v41 = vsel %vm2243_vm2, %v2242_v57, %v2244_v48  ;;  %v2361_v57 = vld [vmem:[#allocation5 + $0x760] ss:$8 sm:$0x3] }
 0xeb6   :  { %3412 = vmatmul.mubr.msk.f32.vlgmr.msra.gmra.mrb[14].mxu0 %vm1975_vm13, %v2245_v41  ;;  %v2370_v48 = vrot.slane %v2361_v57, %v4386_v50  ;;  %v2366_v41 = vrot.slane %v2361_v57, %v4389_v55  ;;  %v2864_v57 = vld [vmem:[#allocation5 + $0x578] sm:$0xff] }
 0xeb7   :  { %3949 = vmatpush3.bf16.msra.mxu0 %v4641_v32 }
 0xeb8   :  { %3951 = vmatprep.subr.bf16.mxu0 %v4643_v30 }
 0xebb   :  { %3953 = vmatpush3.bf16.msra.mxu0 %v4647_v0 }
 0xebc   :  { %3955 = vmatprep.subr.bf16.mxu0 %v4650_v1 }
 0xebf   :  { %3957 = vmatpush3.bf16.msra.mxu0 %v3956_v14 }
 0xec0   :  { %3959 = vmatprep.subr.bf16.mxu0 %v3958_v20 }
 0xec3   :  { %3961 = vmatpush3.bf16.msra.mxu0 %v3960_v43 }
 0xec4   :  { %3963 = vmatprep.subr.bf16.mxu0 %v3962_v47 }
 0xec7   :  { %3965 = vmatpush3.bf16.msra.mxu0 %v3964_v21 }
 0xec8   :  { %3967 = vmatprep.subr.bf16.mxu0 %v3966_v16 }
 0xecb   :  { %3969 = vmatpush3.bf16.msra.mxu0 %v3968_v44 }
 0xecc   :  { %3971 = vmatprep.subr.bf16.mxu0 %v3970_v45 }
 0xecf   :  { %3973 = vmatpush3.bf16.msra.mxu0 %v3972_v19 }
 0xed0   :  { %3975 = vmatprep.subr.bf16.mxu0 %v3974_v37 }
 0xed3   :  { %3977 = vmatpush3.bf16.msra.mxu0 %v3976_v38 }
 0xed4   :  { %3979 = vmatprep.subr.bf16.mxu0 %v4639_v10 }
 0xf89   :  { %v2324_v31 = vpop.f32.mrb[14].mxu0 }
 0xf8a   :  { %v2325_v22 = vadd.f32 %v3052_v23, %v2324_v31  ;;  %v3413_v25 = vpop.f32.mrb[15].mxu0  ;;  %v2853_v23 = vld [vmem:[#allocation5 + $0x520] sm:$0xff]  ;;  %v2855_v31 = vld [vmem:[#allocation5 + $0x530] sm:$0xff] }
 0xf8b   :  { %v2858_v25 = vld [vmem:[#allocation5 + $0x548] sm:$0xff]  ;;  %v4016_v36 = vpack.c.bf16 %v2855_v31, %v2853_v23  ;;  %v2896_v31 = vld [vmem:[#allocation5 + $0x678] sm:$0xff] }
 0xf8c   :  { %2438 = vmatmul.mubr.f32.vlgmr.msra.gmra.mrb[22].mxu1 %v2325_v22  ;;  %v2894_v23 = vld [vmem:[#allocation5 + $0x668] sm:$0xff] }
 0xf8d   :  { %2630 = vmatprep.mubr.f32.mxu1 %v4204_v26  ;;  %3055 = vmatpush1.msk.msra.mxu1 %vm2559_vm3, %v2476_v6 }
 0xf8e   :  { %3057 = vmatprep.subr.msk.mxu1 %vm2559_vm3, %v2477_v60 }
0x105f   :  { %v2439_v42 = vpop.f32.mrb[22].mxu1 }
0x1060   :  { %v2441_v51 = vpop.f32.mrb[23].mxu1  ;;  %v2440_v56 = vadd.f32 %v2439_v42, %v2366_v41  ;;  %v2861_v42 = vld [vmem:[#allocation5 + $0x560] sm:$0xff] }
0x1061   :  { %v2442_v59 = vadd.f32 %v2441_v51, %v2370_v48  ;;  %v4020_v48 = vpack.c.bf16 %v2859_v29, %v2857_v40  ;;  %v2863_v51 = vld [vmem:[#allocation5 + $0x570] sm:$0xff]  ;;  %v2900_v40 = vld [vmem:[#allocation5 + $0x698] sm:$0xff] }
0x1062   :  { %v4024_v60 = vpack.c.bf16 %v2863_v51, %v2861_v42  ;;  %v2902_v42 = vld [vmem:[#allocation5 + $0x6a8] sm:$0xff]  ;;  %v2904_v51 = vld [vmem:[#allocation5 + $0x6b8] sm:$0xff] }
0x1063   :  { %2542 = vmatprep.mubr.f32.mxu0 %v2442_v59 }
0x1064   :  { %2543 = vmatmul.mubr.f32.vlgmr.msra.gmra.mrb[16].mxu0 %v2440_v56 }
0x1065   :  { %3981 = vmatpush3.bf16.msra.mxu0 %v4641_v32 }
0x1066   :  { %3983 = vmatprep.subr.bf16.mxu0 %v4643_v30 }
0x1069   :  { %3985 = vmatpush3.bf16.msra.mxu0 %v4647_v0 }
0x106a   :  { %3987 = vmatprep.subr.bf16.mxu0 %v4650_v1 }
0x106d   :  { %3989 = vmatpush3.bf16.msra.mxu0 %v3956_v14 }
0x106e   :  { %3991 = vmatprep.subr.bf16.mxu0 %v3958_v20 }
0x1071   :  { %3993 = vmatpush3.bf16.msra.mxu0 %v3960_v43 }
0x1072   :  { %3995 = vmatprep.subr.bf16.mxu0 %v3962_v47 }
0x1075   :  { %3997 = vmatpush3.bf16.msra.mxu0 %v3964_v21 }
0x1076   :  { %3999 = vmatprep.subr.bf16.mxu0 %v3966_v16 }
0x1079   :  { %4001 = vmatpush3.bf16.msra.mxu0 %v3968_v44  ;;  %v2851_v44 = vld [vmem:[#allocation5 + $0x510] sm:$0xff] }
0x107a   :  { %4003 = vmatprep.subr.bf16.mxu0 %v3970_v45  ;;  %v2854_v45 = vld [vmem:[#allocation5 + $0x528] sm:$0xff]  ;;  %v4012_v62 = vpack.c.bf16 %v2851_v44, %v2849_v33  ;;  %v2892_v44 = vld [vmem:[#allocation5 + $0x658] sm:$0xff] }
0x107b   :  { %v2890_v33 = vld [vmem:[#allocation5 + $0x648] sm:$0xff] }
0x107d   :  { %4005 = vmatpush3.bf16.msra.mxu0 %v3972_v19  ;;  %v4014_v19 = vpack.c.bf16 %v2856_v61, %v2854_v45  ;;  %v4050_v61 = vpack.c.bf16 %v2892_v44, %v2890_v33  ;;  %v2083_v33 = vpop.xlane.xlu0 %2082 }
0x107e   :  { %4007 = vmatprep.subr.bf16.mxu0 %v3974_v37  ;;  %v4018_v37 = vpack.c.bf16 %v2860_v34, %v2858_v25  ;;  %v4054_v25 = vpack.c.bf16 %v2896_v31, %v2894_v23  ;;  %v2893_v34 = vld [vmem:[#allocation5 + $0x660] sm:$0xff] }
0x1081   :  { %4009 = vmatpush3.bf16.msra.mxu0 %v3976_v38  ;;  %v2862_v38 = vld [vmem:[#allocation5 + $0x568] sm:$0xff] }
0x1082   :  { %v4022_v41 = vpack.c.bf16 %v2864_v57, %v2862_v38  ;;  %v2897_v57 = vld [vmem:[#allocation5 + $0x680] sm:$0xff] }
0x1137   :  { %v3349_v10 = vpop.f32.mrb[16].mxu0 }
0x1138   :  { %v3350_v17 = vpop.f32.mrb[17].mxu0 }
0x1139   :  { %v3351_v12 = vadd.f32 %v3350_v17, %v3349_v10  ;;  %v2865_v10 = vld [vmem:[#allocation5 + $0x580] sm:$0xff]  ;;  %v2867_v17 = vld [vmem:[#allocation5 + $0x590] sm:$0xff] }
0x113b   :  { %v2548_v18 = vsel %vm2080_vm15, %v3351_v12, 0.0  ;;  %v2870_v12 = vld [vmem:[#allocation5 + $0x5a8] sm:$0xff] }
0x113c   :  { %v2549_v32 = vrot.slane %v2548_v18, 4 }
0x113e   :  { %v2550_v30 = vadd.f32 %v2549_v32, %v2548_v18  ;;  %v2872_v18 = vld [vmem:[#allocation5 + $0x5b8] sm:$0xff]  ;;  %v4028_v32 = vpack.c.bf16 %v2867_v17, %v2865_v10  ;;  %v2906_v10 = vld [vmem:[#allocation5 + $0x6c8] sm:$0xff] }
0x113f   :  { %v2908_v17 = vld [vmem:[#allocation5 + $0x6d8] sm:$0xff] }
0x1140   :  { %v2551_v46 = vrot.slane %v2550_v30, 2 }
0x1142   :  { %v2552_v53 = vadd.f32 %v2551_v46, %v2550_v30  ;;  %v4030_v30 = vpack.c.bf16 %v2872_v18, %v2870_v12  ;;  %v2869_v46 = vld [vmem:[#allocation5 + $0x5a0] sm:$0xff]  ;;  %v4066_v12 = vpack.c.bf16 %v2908_v17, %v2906_v10 }
0x1143   :  { %v2905_v18 = vld [vmem:[#allocation5 + $0x6c0] sm:$0xff] }
0x1144   :  { %v2553_v54 = vrot.slane %v2552_v53, 1 }
0x1146   :  { %v2554_v58 = vadd.f32 %v2553_v54, %v2552_v53  ;;  %v2871_v53 = vld [vmem:[#allocation5 + $0x5b0] sm:$0xff]  ;;  %v2874_v54 = vld [vmem:[#allocation5 + $0x5c8] sm:$0xff] }
0x1148   :  { %v2555_v0 = vmul.f32 0.0078125, %v2554_v58  ;;  %v2876_v58 = vld [vmem:[#allocation5 + $0x5d8] sm:$0xff] }
0x114a   :  { %3056 = vmatmul.mubr.msk.f32.vlgmr.msra.gmra.mrb[24].mxu1 %vm2129_vm0, %v2555_v0  ;;  %v4032_v0 = vpack.c.bf16 %v2871_v53, %v2869_v46  ;;  %v2910_v46 = vld [vmem:[#allocation5 + $0x6e8] sm:$0xff]  ;;  %v2912_v53 = vld [vmem:[#allocation5 + $0x6f8] sm:$0xff] }
0x114b   :  { %3058 = vmatpush1.msk.msra.mxu1 %vm2559_vm3, %v2476_v6  ;;  %2796 = vmatprep.mubr.f32.mxu1 %v4204_v26  ;;  %v2852_v26 = vld [vmem:[#allocation5 + $0x518] sm:$0xff] }
0x114c   :  { %v4010_v28 = vpack.c.bf16 %v2852_v26, %v2850_v27  ;;  %v2877_v26 = vld [vmem:[#allocation5 + $0x5e0] sm:$0xff] }
0x114e   :  { %4011 = vmatprep.subr.bf16.mxu1 %v4010_v28  ;;  %v2879_v28 = vld [vmem:[#allocation5 + $0x5f0] sm:$0xff] }
0x121d   :  { %v2632_v1 = vpop.f32.mrb[24].mxu1 }
0x121e   :  { %v2640_v2 = vrot.slane %v2632_v1, %v4389_v55  ;;  %v2634_v52 = vpop.f32.mrb[25].mxu1  ;;  %v4034_v1 = vpack.c.bf16 %v2876_v58, %v2874_v54  ;;  %v2909_v54 = vld [vmem:[#allocation5 + $0x6e0] sm:$0xff]  ;;  %v4070_v58 = vpack.c.bf16 %v2912_v53, %v2910_v46 }
0x121f   :  { %v2644_v35 = vrot.slane %v2634_v52, %v4389_v55  ;;  %v2875_v52 = vld [vmem:[#allocation5 + $0x5d0] sm:$0xff] }
0x1220   :  { %v4671_v7 = vsub.f32 %v2440_v56, %v2640_v2  ;;  %v2868_v56 = vld [vmem:[#allocation5 + $0x598] sm:$0xff]  ;;  %v2873_v2 = vld [vmem:[#allocation5 + $0x5c0] sm:$0xff] }
0x1221   :  { %v4673_v14 = vsub.f32 %v2442_v59, %v2644_v35  ;;  %v2866_v59 = vld [vmem:[#allocation5 + $0x588] sm:$0xff] }
0x1222   :  { %v2647_v24 = vmul.f32 %v4671_v7, %v4671_v7  ;;  %v4026_v6 = vpack.c.bf16 %v2868_v56, %v2866_v59  ;;  %v2878_v35 = vld [vmem:[#allocation5 + $0x5e8] sm:$0xff]  ;;  %v4062_v59 = vpack.c.bf16 %v2904_v51, %v2902_v42  ;;  %v2901_v56 = vld [vmem:[#allocation5 + $0x6a0] sm:$0xff] }
0x1223   :  { %v2648_v20 = vmul.f32 %v4673_v14, %v4673_v14 }
0x1225   :  { %2713 = vmatprep.mubr.f32.mxu0 %v2648_v20  ;;  %v2880_v20 = vld [vmem:[#allocation5 + $0x5f8] sm:$0xff] }
0x1226   :  { %2714 = vmatmul.mubr.f32.vlgmr.msra.gmra.mrb[18].mxu0 %v2647_v24  ;;  %v4036_v24 = vpack.c.bf16 %v2875_v52, %v2873_v2  ;;  %v4038_v27 = vpack.c.bf16 %v2880_v20, %v2878_v35  ;;  %v2814_v2 = vld [vmem:[#allocation5 + $0x770] ss:$8 sm:$0x3]  ;;  %v2829_v35 = vld [vmem:[#allocation5 + $0x780] ss:$8 sm:$0x3] }
0x12f9   :  { %v3384_v39 = vpop.f32.mrb[18].mxu0 }
0x12fa   :  { %v3385_v43 = vpop.f32.mrb[19].mxu0 }
0x12fb   :  { %v3386_v47 = vadd.f32 %v3385_v43, %v3384_v39  ;;  %v2882_v39 = vld [vmem:[#allocation5 + $0x608] sm:$0xff]  ;;  %v2884_v43 = vld [vmem:[#allocation5 + $0x618] sm:$0xff] }
0x12fd   :  { %v2719_v5 = vsel %vm2080_vm15, %v3386_v47, 0.0  ;;  %v4040_v47 = vpack.c.bf16 %v2879_v28, %v2877_v26  ;;  %v2823_v28 = vrot.slane %v2814_v2, %v4386_v50 }
0x12fe   :  { %v2720_v8 = vrot.slane %v2719_v5, 4 }
0x1300   :  { %v2721_v13 = vadd.f32 %v2720_v8, %v2719_v5  ;;  %v4042_v5 = vpack.c.bf16 %v2884_v43, %v2882_v39  ;;  %v2881_v8 = vld [vmem:[#allocation5 + $0x600] sm:$0xff]  ;;  %v2834_v43 = vrot.slane %v2829_v35, %v4389_v55 }
0x1302   :  { %v2722_v49 = vrot.slane %v2721_v13, 2 }
0x1304   :  { %v2723_v21 = vadd.f32 %v2722_v49, %v2721_v13  ;;  %v2883_v13 = vld [vmem:[#allocation5 + $0x610] sm:$0xff]  ;;  %v2886_v49 = vld [vmem:[#allocation5 + $0x628] sm:$0xff] }
0x1306   :  { %v2724_v16 = vrot.slane %v2723_v21, 1 }
0x1308   :  { %v2725_v63 = vadd.f32 %v2724_v16, %v2723_v21  ;;  %v2888_v21 = vld [vmem:[#allocation5 + $0x638] sm:$0xff]  ;;  %v4044_v16 = vpack.c.bf16 %v2883_v13, %v2881_v8 }
0x130a   :  { %v2726_v3 = vmul.f32 0.0078125, %v2725_v63  ;;  %v4046_v63 = vpack.c.bf16 %v2888_v21, %v2886_v49 }
0x130c   :  { %v2727_v11 = vadd.f32 1e-05, %v2726_v3  ;;  %v2885_v3 = vld [vmem:[#allocation5 + $0x620] sm:$0xff] }
0x130e   :  { %4117 = vrsqrt.f32 %v2727_v11  ;;  %v2887_v11 = vld [vmem:[#allocation5 + $0x630] sm:$0xff] }
0x130f   :  { %v4048_v45 = vpack.c.bf16 %v2887_v11, %v2885_v3  ;;  %4119 = vrcp.f32 %v2083_v33 }
0x1318   :  { %v4118_v22 = vpop.eup %4117 }
0x1319   :  { %3059 = vmatmul.mubr.msk.f32.vlgmr.msra.gmra.mrb[26].mxu1 %vm2129_vm0, %v4118_v22 }
0x131a   :  { %4013 = vmatpush1.bf16.msra.mxu1 %v4012_v62  ;;  %v2889_v62 = vld [vmem:[#allocation5 + $0x640] sm:$0xff] }
0x131b   :  { %4015 = vmatprep.subr.bf16.mxu1 %v4014_v19  ;;  %v2891_v19 = vld [vmem:[#allocation5 + $0x650] sm:$0xff] }
0x131c   :  { %v4052_v22 = vpack.c.bf16 %v2891_v19, %v2889_v62 }
0x131e   :  { %4017 = vmatpush1.bf16.msra.mxu1 %v4016_v36  ;;  %v2895_v36 = vld [vmem:[#allocation5 + $0x670] sm:$0xff] }
0x131f   :  { %4019 = vmatprep.subr.bf16.mxu1 %v4018_v37  ;;  %v2898_v37 = vld [vmem:[#allocation5 + $0x688] sm:$0xff]  ;;  %v4056_v29 = vpack.c.bf16 %v2895_v36, %v2893_v34 }
0x1320   :  { %v4058_v38 = vpack.c.bf16 %v2900_v40, %v2898_v37 }
0x1322   :  { %4021 = vmatpush1.bf16.msra.mxu1 %v4020_v48  ;;  %v2899_v48 = vld [vmem:[#allocation5 + $0x690] sm:$0xff] }
0x1323   :  { %4023 = vmatprep.subr.bf16.mxu1 %v4022_v41  ;;  %v4060_v41 = vpack.c.bf16 %v2899_v48, %v2897_v57 }
0x1326   :  { %4025 = vmatpush1.bf16.msra.mxu1 %v4024_v60  ;;  %v2903_v60 = vld [vmem:[#allocation5 + $0x6b0] sm:$0xff] }
0x1327   :  { %4027 = vmatprep.subr.bf16.mxu1 %v4026_v6  ;;  %v4064_v6 = vpack.c.bf16 %v2903_v60, %v2901_v56 }
0x132a   :  { %4029 = vmatpush1.bf16.msra.mxu1 %v4028_v32  ;;  %v2907_v32 = vld [vmem:[#allocation5 + $0x6d0] sm:$0xff] }
0x132b   :  { %4031 = vmatprep.subr.bf16.mxu1 %v4030_v30  ;;  %v4068_v30 = vpack.c.bf16 %v2907_v32, %v2905_v18 }
0x132e   :  { %4033 = vmatpush1.bf16.msra.mxu1 %v4032_v0  ;;  %v2911_v0 = vld [vmem:[#allocation5 + $0x6f0] sm:$0xff] }
0x132f   :  { %4035 = vmatprep.subr.bf16.mxu1 %v4034_v1  ;;  %v4072_v1 = vpack.c.bf16 %v2911_v0, %v2909_v54 }
0x1332   :  { %4037 = vmatpush1.bf16.msra.mxu1 %v4036_v24  ;;  %v2819_v24 = vrot.slane %v2814_v2, %v4389_v55 }
0x1333   :  { %4039 = vmatprep.subr.bf16.mxu1 %v4038_v27 }
0x1336   :  { %4041 = vmatpush1.bf16.msra.mxu1 %v4040_v47 }
0x1337   :  { %4043 = vmatprep.subr.bf16.mxu1 %v4042_v5  ;;  %v2838_v5 = vrot.slane %v2829_v35, %v4386_v50 }
0x133a   :  { %4045 = vmatpush1.bf16.msra.mxu1 %v4044_v16 }
0x133b   :  { %4047 = vmatprep.subr.bf16.mxu1 %v4046_v63 }
0x133e   :  { %4049 = vmatpush1.bf16.msra.mxu1 %v4048_v45 }
0x133f   :  { %4051 = vmatprep.subr.bf16.mxu1 %v4050_v61 }
0x1342   :  { %4053 = vmatpush1.bf16.msra.mxu1 %v4052_v22 }
0x1343   :  { %4055 = vmatprep.subr.bf16.mxu1 %v4054_v25  ;;  %v3001_v25 = vpop.permute.xlu1 %3000 }
0x1346   :  { %4057 = vmatpush1.bf16.msra.mxu1 %v4056_v29 }
0x1347   :  { %4059 = vmatprep.subr.bf16.mxu1 %v4058_v38 }
0x134a   :  { %4061 = vmatpush1.bf16.msra.mxu1 %v4060_v41 }
0x134b   :  { %4063 = vmatprep.subr.bf16.mxu1 %v4062_v59 }
0x134e   :  { %4065 = vmatpush1.bf16.msra.mxu1 %v4064_v6 }
0x134f   :  { %4067 = vmatprep.subr.bf16.mxu1 %v4066_v12 }
0x1352   :  { %4069 = vmatpush1.bf16.msra.mxu1 %v4068_v30 }
0x1353   :  { %4071 = vmatprep.subr.bf16.mxu1 %v4070_v58 }
0x1356   :  { %4073 = vmatpush1.bf16.msra.mxu1 %v4072_v1 }
0x13ec   :  { %v2798_v52 = vpop.f32.mrb[26].mxu1 }
0x13ed   :  { %v2806_v20 = vrot.slane %v2798_v52, %v4389_v55  ;;  %v2800_v27 = vpop.f32.mrb[27].mxu1 }
0x13ee   :  { %v2810_v26 = vrot.slane %v2800_v27, %v4389_v55 }
0x13ef   :  { %v2811_v39 = vmul.f32 %v2806_v20, %v4671_v7  ;;  %v2914_v7 = vld [vmem:[#allocation5 + $0x790] ss:$8 sm:$0x3] }
0x13f0   :  { %v2812_v47 = vmul.f32 %v2810_v26, %v4673_v14  ;;  %v2919_v44 = vrot.slane %v2914_v7, %v4389_v55  ;;  %v4120_v14 = vpop.eup %4119  ;;  %v2923_v45 = vrot.slane %v2914_v7, %v4386_v50 }
0x13f1   :  { %v2826_v8 = vmul.f32 %v2819_v24, %v2811_v39  ;;  %v2085_v62 = vmul.f32 %v4120_v14, %v4624_v4 }
0x13f2   :  { %v2827_v13 = vmul.f32 %v2823_v28, %v2812_v47 }
0x13f3   :  { %v2841_v49 = vadd.f32 %v2834_v43, %v2826_v8  ;;  %v3003_v22 = vsel %vm585_vm1, %v4629_v9, %v2085_v62 }
0x13f4   :  { %v2842_v21 = vadd.f32 %v2838_v5, %v2827_v13  ;;  %v3005_v34 = vsel %vm3004_vm6, %v3003_v22, %v3001_v25 }
0x13f5   :  { %v2845_v16 = vmul.f32 0.2, %v2841_v49  ;;  %vm2843_vm5 = vcmp.gt.f32.partialorder %v2841_v49, 0.0  ;;  %v3006_v36 = vsel %vm1534_vm7, %v3005_v34, %v3001_v25 }
0x13f6   :  { %vm2844_vm4 = vcmp.gt.f32.partialorder %v2842_v21, 0.0  ;;  %v2846_v63 = vmul.f32 0.2, %v2842_v21  ;;  %v3008_v50 = vsel %vm3007_vm8, %v3006_v36, 0.0 }
0x13f7   :  { %v2847_v11 = vsel %vm2843_vm5, %v2841_v49, %v2845_v16  ;;  %v3026_v29 = vrot.slane %v3008_v50, %v4605_v15 }
0x13f8   :  { %v2848_v3 = vsel %vm2844_vm4, %v2842_v21, %v2846_v63 }
0x13f9   :  { %2990 = vmatprep.mubr.f32.mxu1 %v2848_v3 }
0x13fa   :  { %2991 = vmatmul.mubr.f32.vlgmr.msra.gmra.mrb[28].mxu1 %v2847_v11 }
0x14cd   :  { %v2992_v61 = vpop.f32.mrb[28].mxu1 }
0x14ce   :  { %v2993_v19 = vadd.f32 %v2992_v61, %v2919_v44  ;;  %v2994_v23 = vpop.f32.mrb[29].mxu1 }
0x14cf   :  { %v2995_v31 = vadd.f32 %v2994_v23, %v2923_v45 }
0x14d0   :  { %4121 = vtanh.f32 %v2993_v19 }
0x14d1   :  { %4123 = vtanh.f32 %v2995_v31 }
0x14da   :  { %v4122_v55 = vpop.eup %4121 }
0x14db   :  { %v4124_v37 = vpop.eup %4123 }
0x14dc   :  { %v3012_v40 = vcombine.low %v4122_v55, %v4124_v37 }
0x14de   :  { %v3019_v4 = vrot.slane %v3012_v40, %v4605_v15 }
0x14e0   :  { %v3027_v38 = vcombine.low %v3019_v4, %v3026_v29 }
0x14e2   :  { %3029 = vst [vmem:[%s4705_s5] sm:$0x3f] %v3027_v38 }
0x14e3   :  { %3034 = vsyncpa [#allocation4], 1 }
0x14e4   :  { %3035 = vsyncpa [#allocation6], 1 }

</bundles_post_ra>
